<compile_context>
chip_gen: v7x
topology: tpu7x:2x2x1
jax: 0.10.0
libtpu: 0.0.40
codegen_flags: <defaults>
</compile_context>

<pallas_src>
import jax
import jax.numpy as jnp
from jax.experimental import pallas as pl
from jax.experimental.pallas import tpu as pltpu

LANE = 128       # vreg lane width
SUBLANE = 8      # f32 sublanes per vreg


def _round_up(x, m):
    return (x + m - 1) // m * m


def _pick_images_per_step(n, h, w, target_rows=512, min_steps=2):
    """Smallest divisor nb of n giving nb*h*w >= target_rows MXU rows per
    step, while keeping at least min_steps grid steps (v7x shards the
    "parallel" axis over 2 TensorCores, and >=2 steps keeps the DMA pipeline
    overlapped)."""
    divisors = [d for d in range(1, n + 1) if n % d == 0]
    usable = [d for d in divisors if n // d >= min_steps] or divisors
    for d in usable:
        if d * h * w >= target_rows:
            return d
    return usable[-1]


# -----------------------------------------------------------------------------
# Pallas kernel: nb images per grid step, all three conv stages fused.
# -----------------------------------------------------------------------------
def bottleneck_kernel(x_ref, w1_ref, s1_ref, b1_ref,
                      w2_ref, s2_ref, b2_ref,
                      w3_ref, s3_ref, b3_ref,
                      out_ref, pad_ref):
    # x_ref   : (nb, H, W, Cp)     bf16   input tile   (Cp = padded in/out chans)
    # w1_ref  : (Cp, Cm)           bf16   1x1 conv     (Cm = padded mid chans)
    # w2_ref  : (9, Cm, Cm)        bf16   3x3 conv taps, k = ky*3 + kx
    # w3_ref  : (Cm, Cp)           bf16   1x1 conv
    # s*/b*   : (1, C)             f32    folded BatchNorm scale / bias
    # out_ref : (nb, H, W, Cp)     bf16
    # pad_ref : (nb, H+2, Wp, Cm)  f32    stage-2 scratch: data at W offset 0,
    #                                     zero halo rows + zero cols [W:Wp)
    nb, H, W, Cp = x_ref.shape
    Wp = pad_ref.shape[2]
    Cm = w1_ref.shape[1]
    rows = nb * H * W
    rows_p = nb * H * Wp
    mm_dtype = w1_ref.dtype

    # ---- stage 1: 1x1 conv = one (rows, Cp)@(Cp, Cm) MXU matmul + BN + ReLU --
    t1 = jnp.dot(x_ref[...].reshape(rows, Cp), w1_ref[...],
                 preferred_element_type=jnp.float32)
    t1 = jnp.maximum(t1 * s1_ref[...] + b1_ref[...], 0.0)          # (rows, Cm) f32

    # ---- stage 2: 3x3 conv, stride=1, pad=1 ----------------------------------
    # Aligned writes: the activation goes in at W offset 0; the halo is two
    # zero H rows plus the zero columns [W:Wp).  The halo is re-zeroed every
    # step (scratch is per-core, so this stays correct with the "parallel"
    # batch axis); the data region is fully overwritten each step.
    zrow = jnp.zeros((nb, 1, Wp, Cm), pad_ref.dtype)
    pad_ref[:, 0:1, :, :] = zrow
    pad_ref[:, H + 1:H + 2, :, :] = zrow
    pad_ref[:, 1:H + 1, W:Wp, :] = jnp.zeros((nb, H, Wp - W, Cm), pad_ref.dtype)
    pad_ref[:, 1:H + 1, 0:W, :] = t1.reshape(nb, H, W, Cm)

    # 9 accumulating K=Cm matmuls (no im2col concat / 9x tap materialization).
    # The kx=-1/+1 taps are produced with pltpu.roll along the flattened
    # sublane axis: the zero pad columns roll in at the image borders, so no
    # misaligned offset slices are needed and the roll runs on the XLU.
    acc = None
    for ky in range(3):
        plane = pad_ref[:, ky:ky + H, :, :].reshape(rows_p, Cm)     # f32, aligned
        for kx in range(3):
            if kx == 1:
                tap = plane
            else:
                tap = pltpu.roll(plane, shift=(1 - kx) % rows_p, axis=0)
            d = jnp.dot(tap.astype(mm_dtype), w2_ref[ky * 3 + kx],
                        preferred_element_type=jnp.float32)
            acc = d if acc is None else acc + d
    # drop the Wp - W pad columns, then BN + ReLU (f32 epilogue)
    t2 = acc.reshape(nb, H, Wp, Cm)[:, :, 0:W, :].reshape(rows, Cm)
    t2 = jnp.maximum(t2 * s2_ref[...] + b2_ref[...], 0.0)

    # ---- stage 3: 1x1 conv + BN, residual add (f32), ReLU --------------------
    t3 = jnp.dot(t2.astype(mm_dtype), w3_ref[...],
                 preferred_element_type=jnp.float32)
    t3 = t3 * s3_ref[...] + b3_ref[...]
    # Residual is re-read here (not held in f32 across all three stages).
    identity = x_ref[...].reshape(rows, Cp).astype(jnp.float32)
    out = jnp.maximum(t3 + identity, 0.0)
    out_ref[...] = out.reshape(nb, H, W, Cp).astype(out_ref.dtype)


# -----------------------------------------------------------------------------
# Wrappers (glue): layout + pallas_call plumbing.
# -----------------------------------------------------------------------------
def bottleneck_pallas_nhwc(x_nhwc, kernel_params, images_per_step=None):
    """Fused Bottleneck forward on NHWC input.  Preferred entry point: no
    layout transposes, bf16 activations at the HBM boundary.  Returns
    (N, H, W, Cout) in bf16."""
    w1, s1, b1, w2, s2, b2, w3, s3, b3 = kernel_params
    N, H, W, cin = x_nhwc.shape
    Cp, Cm = w1.shape
    assert w3.shape == (Cm, Cp) and w2.shape == (9, Cm, Cm)
    assert cin <= Cp, "input channels exceed padded weight width"
    cout = cin                       # identity add requires Cout == Cin

    # bf16 boundary activations; channel pad to the lane-dense width (a no-op
    # when the model's channels are already multiples of 128).
    x = x_nhwc if x_nhwc.dtype == w1.dtype else x_nhwc.astype(w1.dtype)
    if cin < Cp:
        x = jnp.pad(x, ((0, 0), (0, 0), (0, 0), (0, Cp - cin)))

    nb = images_per_step or _pick_images_per_step(N, H, W)
    assert N % nb == 0
    wp = _round_up(W + 1, SUBLANE)   # >= W+1 zero cols: right halo + roll border

    def full_spec(a):
        nd = a.ndim
        return pl.BlockSpec(a.shape, lambda n, _nd=nd: (0,) * _nd)

    # Explicit VMEM budget (double-buffered x/out tiles, double-buffered
    # constant-index weights, pad scratch, f32 stage-2 live values).  Only
    # raise the scoped limit when needed; stay below v7x's 64 MiB physical.
    bpe = jnp.dtype(w1.dtype).itemsize
    tile = nb * H * W * Cp * bpe
    wbytes = ((w1.size + w2.size + w3.size) * bpe
              + (s1.size + b1.size + s2.size + b2.size + s3.size + b3.size) * 4)
    vmem_est = (2 * 2 * tile                        # x + out blocks, double-buffered
                + 2 * wbytes                        # weights / BN params
                + nb * (H + 2) * wp * Cm * 4        # pad scratch (f32)
                + 3 * nb * H * wp * Cm * 4)         # acc / t1 / t2 live values
    cp_kwargs = dict(dimension_semantics=("parallel",))
    if vmem_est > 24 << 20:
        cp_kwargs["vmem_limit_bytes"] = int(min(1.5 * vmem_est, 60 << 20))
    # TODO(synk): for very large Cmid, single-buffer the constant-index weight
    # blocks (pl.Buffered(1)) to reclaim VMEM headroom on v7x.

    out = pl.pallas_call(
        bottleneck_kernel,
        out_shape=jax.ShapeDtypeStruct((N, H, W, Cp), w1.dtype),
        grid=(N // nb,),
        in_specs=[
            pl.BlockSpec((nb, H, W, Cp), lambda n: (n, 0, 0, 0)),
            full_spec(w1), full_spec(s1), full_spec(b1),
            full_spec(w2), full_spec(s2), full_spec(b2),
            full_spec(w3), full_spec(s3), full_spec(b3),
        ],
        out_specs=pl.BlockSpec((nb, H, W, Cp), lambda n: (n, 0, 0, 0)),
        scratch_shapes=[pltpu.VMEM((nb, H + 2, wp, Cm), jnp.float32)],
        compiler_params=pltpu.CompilerParams(**cp_kwargs),
    )(x, w1, s1, b1, w2, s2, b2, w3, s3, b3)
    if cout < Cp:
        out = out[..., :cout]
    return out


def bottleneck_pallas(x_nchw, kernel_params, images_per_step=None):
    # NCHW boundary kept only for parity with the PyTorch module.  The two
    # transposes are full HBM round trips; an NHWC/bf16 model should call
    # bottleneck_pallas_nhwc directly (see __main__).
    x = jnp.transpose(x_nchw, (0, 2, 3, 1))       # NCHW -> NHWC
    out = bottleneck_pallas_nhwc(x, kernel_params, images_per_step)
    return jnp.transpose(out, (0, 3, 1, 2))       # NHWC -> NCHW


# -----------------------------------------------------------------------------
# Deterministic parameter construction (synthetic, no checkpoint).
# -----------------------------------------------------------------------------
def make_params(key, cin, cmid, cout, matmul_dtype=jnp.bfloat16, eps=1e-5):
    """Returns:
      kernel_params: lane-dense (channel-padded) MXU-ready operands -- bf16
        weights w1:(Cp,Cm), w2:(9,Cm,Cm), w3:(Cm,Cp) and f32 folded-BN rows.
      hwio_params:   unpadded f32 HWIO weights + scale/bias (reference)."""
    assert cout == cmid * 4, "Bottleneck expansion is 4"
    assert cin == cout, "identity add (downsample=None) requires Cin == Cout"
    ks = jax.random.split(key, 6)
    w1_hwio = 0.1 * jax.random.normal(ks[0], (1, 1, cin, cmid), jnp.float32)
    w2_hwio = 0.1 * jax.random.normal(ks[1], (3, 3, cmid, cmid), jnp.float32)
    w3_hwio = 0.1 * jax.random.normal(ks[2], (1, 1, cmid, cout), jnp.float32)

    def folded_bn(k, c):
        k1, k2, k3, k4 = jax.random.split(k, 4)
        gamma = 1.0 + 0.1 * jax.random.normal(k1, (c,), jnp.float32)
        beta = 0.1 * jax.random.normal(k2, (c,), jnp.float32)
        mean = 0.1 * jax.random.normal(k3, (c,), jnp.float32)
        var = jnp.abs(jax.random.normal(k4, (c,), jnp.float32)) + 0.5
        scale = gamma / jnp.sqrt(var + eps)
        bias = beta - mean * scale
        return scale.reshape(1, c), bias.reshape(1, c)

    s1, b1 = folded_bn(ks[3], cmid)
    s2, b2 = folded_bn(ks[4], cmid)
    s3, b3 = folded_bn(ks[5], cout)
    hwio_params = (w1_hwio, s1, b1, w2_hwio, s2, b2, w3_hwio, s3, b3)

    # Lane-dense, kernel-ready forms: zero-pad every channel dim to a multiple
    # of 128; fold the 3x3 taps into a leading axis of 9 (k = ky*3 + kx).
    cp = _round_up(cin, LANE)
    cm = _round_up(cmid, LANE)

    def pad_to(a, axis, size):
        widths = [(0, 0)] * a.ndim
        widths[axis] = (0, size - a.shape[axis])
        return jnp.pad(a, widths)

    w1 = pad_to(pad_to(w1_hwio[0, 0], 0, cp), 1, cm).astype(matmul_dtype)
    w2 = pad_to(pad_to(w2_hwio, 2, cm), 3, cm).reshape(9, cm, cm).astype(matmul_dtype)
    w3 = pad_to(pad_to(w3_hwio[0, 0], 0, cm), 1, cp).astype(matmul_dtype)
    kernel_params = (w1, pad_to(s1, 1, cm), pad_to(b1, 1, cm),
                     w2, pad_to(s2, 1, cm), pad_to(b2, 1, cm),
                     w3, pad_to(s3, 1, cp), pad_to(b3, 1, cp))
    return kernel_params, hwio_params


# -----------------------------------------------------------------------------
# Pure-JAX references (for correctness checks).
# -----------------------------------------------------------------------------
def bottleneck_ref_nhwc(x_nhwc, hwio_params, matmul_dtype=None):
    """matmul_dtype=None -> full f32 module semantics; jnp.bfloat16 -> same
    operand precision as the kernel (f32 accumulation either way)."""
    w1, s1, b1, w2, s2, b2, w3, s3, b3 = hwio_params
    dn = ('NHWC', 'HWIO', 'NHWC')

    def conv(a, w):
        if matmul_dtype is not None:
            a = a.astype(matmul_dtype)
            w = w.astype(matmul_dtype)
        return jax.lax.conv_general_dilated(
            a, w, window_strides=(1, 1), padding='SAME',
            dimension_numbers=dn, preferred_element_type=jnp.float32)

    x = x_nhwc
    t = jnp.maximum(conv(x, w1) * s1 + b1, 0.0)
    t = jnp.maximum(conv(t, w2) * s2 + b2, 0.0)
    t = conv(t, w3) * s3 + b3
    return jnp.maximum(t + x.astype(jnp.float32), 0.0)


if __name__ == "__main__":
    # Small shapes: batch=2, in_channels=32, mid_channels=8 (expansion 4),
    # spatial 16x16; downsample=None requires in_channels == mid*4.
    N, CIN, CMID, H, W = 2, 32, 8, 16, 16
    COUT = CMID * 4

    key = jax.random.PRNGKey(0)
    k_x, k_p = jax.random.split(key)
    x_nhwc = jax.random.normal(k_x, (N, H, W, CIN), jnp.float32)
    kernel_params, hwio_params = make_params(k_p, CIN, CMID, COUT)

    # Primary transpose-free NHWC path with bf16 boundary activations
    # (what an NHWC/bf16 model would call directly).
    x_bf16 = x_nhwc.astype(jnp.bfloat16)
    out = jax.block_until_ready(bottleneck_pallas_nhwc(x_bf16, kernel_params))
    assert out.shape == (N, H, W, COUT) and out.dtype == jnp.bfloat16
    out32 = out.astype(jnp.float32)

    # Tight check against a reference at matching (bf16 operand) precision.
    ref_bf = jax.block_until_ready(
        bottleneck_ref_nhwc(x_bf16, hwio_params, matmul_dtype=jnp.bfloat16))
    max_err = float(jnp.max(jnp.abs(out32 - ref_bf)))
    assert jnp.allclose(out32, ref_bf, atol=5e-2, rtol=5e-2), max_err

    # Loose sanity check against full-f32 module semantics (bf16 rounding only).
    ref_f32 = jax.block_until_ready(bottleneck_ref_nhwc(x_nhwc, hwio_params))
    assert float(jnp.mean(jnp.abs(out32 - ref_f32))) < 5e-2

    # NCHW wrapper: parity with the PyTorch module's layout.
    x_nchw = jnp.transpose(x_nhwc, (0, 3, 1, 2))
    out_nchw = jax.block_until_ready(bottleneck_pallas(x_nchw, kernel_params))
    assert out_nchw.shape == (N, COUT, H, W)
    assert jnp.allclose(out_nchw.astype(jnp.float32),
                        jnp.transpose(ref_bf, (0, 3, 1, 2)),
                        atol=5e-2, rtol=5e-2)

    print("KERNEL_OK")
</pallas_src>

<mosaic_0001>
module attributes {stable_mosaic.version = 11 : i64} {
  func.func @bottleneck_kernel(%arg0: i32, %arg1: memref<1x16x16x128xbf16, #tpu.memory_space<vmem>>, %arg2: memref<128x128xbf16, #tpu.memory_space<vmem>>, %arg3: memref<1x128xf32, #tpu.memory_space<vmem>>, %arg4: memref<1x128xf32, #tpu.memory_space<vmem>>, %arg5: memref<9x128x128xbf16, #tpu.memory_space<vmem>>, %arg6: memref<1x128xf32, #tpu.memory_space<vmem>>, %arg7: memref<1x128xf32, #tpu.memory_space<vmem>>, %arg8: memref<128x128xbf16, #tpu.memory_space<vmem>>, %arg9: memref<1x128xf32, #tpu.memory_space<vmem>>, %arg10: memref<1x128xf32, #tpu.memory_space<vmem>>, %arg11: memref<1x16x16x128xbf16, #tpu.memory_space<vmem>>, %arg12: memref<1x18x24x128xf32, #tpu.memory_space<vmem>>) attributes {dimension_semantics = [#tpu.dimension_semantics<parallel>], iteration_bounds = array<i64: 2>, scalar_prefetch = 0 : i64, scratch_operands = 1 : i64, tpu.core_type = #tpu.core_type<tc>, window_params = [{transform_indices = @transform_0, window_bounds = array<i64: 1, 16, 16, 128>}, {pipeline_mode = #tpu.pipeline_mode<synchronous>, transform_indices = @transform_1, window_bounds = array<i64: 128, 128>}, {pipeline_mode = #tpu.pipeline_mode<synchronous>, transform_indices = @transform_2, window_bounds = array<i64: 1, 128>}, {pipeline_mode = #tpu.pipeline_mode<synchronous>, transform_indices = @transform_3, window_bounds = array<i64: 1, 128>}, {pipeline_mode = #tpu.pipeline_mode<synchronous>, transform_indices = @transform_4, window_bounds = array<i64: 9, 128, 128>}, {pipeline_mode = #tpu.pipeline_mode<synchronous>, transform_indices = @transform_5, window_bounds = array<i64: 1, 128>}, {pipeline_mode = #tpu.pipeline_mode<synchronous>, transform_indices = @transform_6, window_bounds = array<i64: 1, 128>}, {pipeline_mode = #tpu.pipeline_mode<synchronous>, transform_indices = @transform_7, window_bounds = array<i64: 128, 128>}, {pipeline_mode = #tpu.pipeline_mode<synchronous>, transform_indices = @transform_8, window_bounds = array<i64: 1, 128>}, {pipeline_mode = #tpu.pipeline_mode<synchronous>, transform_indices = @transform_9, window_bounds = array<i64: 1, 128>}, {transform_indices = @transform_10, window_bounds = array<i64: 1, 16, 16, 128>}]} {
    %c0 = arith.constant 0 : index
    %c0_0 = arith.constant 0 : index
    %c0_1 = arith.constant 0 : index
    %c0_2 = arith.constant 0 : index
    %0 = vector.load %arg1[%c0, %c0_0, %c0_1, %c0_2] : memref<1x16x16x128xbf16, #tpu.memory_space<vmem>>, vector<1x16x16x128xbf16>
    %1 = vector.shape_cast %0 : vector<1x16x16x128xbf16> to vector<256x128xbf16>
    %c0_3 = arith.constant 0 : index
    %c0_4 = arith.constant 0 : index
    %2 = vector.load %arg2[%c0_3, %c0_4] : memref<128x128xbf16, #tpu.memory_space<vmem>>, vector<128x128xbf16>
    %cst = arith.constant dense<0.000000e+00> : vector<256x128xf32>
    %3 = tpu.matmul %1, %2, %cst {dimension_numbers = #tpu.dot_dimension_numbers<[1], [0], [0], [1], [0, 0, 1, 1], [], []>} : vector<256x128xbf16>, vector<128x128xbf16>, vector<256x128xf32> -> vector<256x128xf32>
    %c0_5 = arith.constant 0 : index
    %c0_6 = arith.constant 0 : index
    %4 = vector.load %arg3[%c0_5, %c0_6] : memref<1x128xf32, #tpu.memory_space<vmem>>, vector<1x128xf32>
    %5 = vector.broadcast %4 : vector<1x128xf32> to vector<256x128xf32>
    %6 = arith.mulf %3, %5 : vector<256x128xf32>
    %c0_7 = arith.constant 0 : index
    %c0_8 = arith.constant 0 : index
    %7 = vector.load %arg4[%c0_7, %c0_8] : memref<1x128xf32, #tpu.memory_space<vmem>>, vector<1x128xf32>
    %8 = vector.broadcast %7 : vector<1x128xf32> to vector<256x128xf32>
    %9 = arith.addf %6, %8 : vector<256x128xf32>
    %cst_9 = arith.constant 0.000000e+00 : f32
    %10 = vector.broadcast %cst_9 : f32 to vector<256x128xf32>
    %11 = arith.maximumf %9, %10 : vector<256x128xf32>
    %cst_10 = arith.constant 0.000000e+00 : f32
    %12 = vector.broadcast %cst_10 : f32 to vector<1x1x24x128xf32>
    %c0_11 = arith.constant 0 : index
    %c0_12 = arith.constant 0 : index
    %c0_13 = arith.constant 0 : index
    %c0_14 = arith.constant 0 : index
    %13 = vector.load %arg12[%c0_11, %c0_12, %c0_13, %c0_14] : memref<1x18x24x128xf32, #tpu.memory_space<vmem>>, vector<1x1x24x128xf32>
    tpu.vector_store %arg12[%c0_11, %c0_12, %c0_13, %c0_14], %12 {strides = array<i32>} : memref<1x18x24x128xf32, #tpu.memory_space<vmem>>, vector<1x1x24x128xf32>,
    %c0_15 = arith.constant 0 : index
    %c17 = arith.constant 17 : index
    %c0_16 = arith.constant 0 : index
    %c0_17 = arith.constant 0 : index
    %14 = vector.load %arg12[%c0_15, %c17, %c0_16, %c0_17] : memref<1x18x24x128xf32, #tpu.memory_space<vmem>>, vector<1x1x24x128xf32>
    tpu.vector_store %arg12[%c0_15, %c17, %c0_16, %c0_17], %12 {strides = array<i32>} : memref<1x18x24x128xf32, #tpu.memory_space<vmem>>, vector<1x1x24x128xf32>,
    %cst_18 = arith.constant 0.000000e+00 : f32
    %15 = vector.broadcast %cst_18 : f32 to vector<1x16x8x128xf32>
    %c0_19 = arith.constant 0 : index
    %c1 = arith.constant 1 : index
    %c16 = arith.constant 16 : index
    %c0_20 = arith.constant 0 : index
    %16 = vector.load %arg12[%c0_19, %c1, %c16, %c0_20] : memref<1x18x24x128xf32, #tpu.memory_space<vmem>>, vector<1x16x8x128xf32>
    tpu.vector_store %arg12[%c0_19, %c1, %c16, %c0_20], %15 {strides = array<i32>} : memref<1x18x24x128xf32, #tpu.memory_space<vmem>>, vector<1x16x8x128xf32>,
    %17 = vector.shape_cast %11 : vector<256x128xf32> to vector<1x16x16x128xf32>
    %c0_21 = arith.constant 0 : index
    %c1_22 = arith.constant 1 : index
    %c0_23 = arith.constant 0 : index
    %c0_24 = arith.constant 0 : index
    %18 = vector.load %arg12[%c0_21, %c1_22, %c0_23, %c0_24] : memref<1x18x24x128xf32, #tpu.memory_space<vmem>>, vector<1x16x16x128xf32>
    tpu.vector_store %arg12[%c0_21, %c1_22, %c0_23, %c0_24], %17 {strides = array<i32>} : memref<1x18x24x128xf32, #tpu.memory_space<vmem>>, vector<1x16x16x128xf32>,
    %c0_25 = arith.constant 0 : index
    %c0_26 = arith.constant 0 : index
    %c0_27 = arith.constant 0 : index
    %c0_28 = arith.constant 0 : index
    %19 = vector.load %arg12[%c0_25, %c0_26, %c0_27, %c0_28] : memref<1x18x24x128xf32, #tpu.memory_space<vmem>>, vector<1x16x24x128xf32>
    %20 = vector.shape_cast %19 : vector<1x16x24x128xf32> to vector<384x128xf32>
    %c1_i32 = arith.constant 1 : i32
    %21 = tpu.dynamic_rotate %20 by %c1_i32 dim 0 : vector<384x128xf32>, i32 -> vector<384x128xf32>
    %22 = arith.truncf %21 : vector<384x128xf32> to vector<384x128xbf16>
    %c0_29 = arith.constant 0 : index
    %c0_30 = arith.constant 0 : index
    %c0_31 = arith.constant 0 : index
    %23 = vector.load %arg5[%c0_29, %c0_30, %c0_31] : memref<9x128x128xbf16, #tpu.memory_space<vmem>>, vector<1x128x128xbf16>
    %24 = vector.shape_cast %23 : vector<1x128x128xbf16> to vector<128x128xbf16>
    %cst_32 = arith.constant dense<0.000000e+00> : vector<384x128xf32>
    %25 = tpu.matmul %22, %24, %cst_32 {dimension_numbers = #tpu.dot_dimension_numbers<[1], [0], [0], [1], [0, 0, 1, 1], [], []>} : vector<384x128xbf16>, vector<128x128xbf16>, vector<384x128xf32> -> vector<384x128xf32>
    %26 = arith.truncf %20 : vector<384x128xf32> to vector<384x128xbf16>
    %c1_33 = arith.constant 1 : index
    %c0_34 = arith.constant 0 : index
    %c0_35 = arith.constant 0 : index
    %27 = vector.load %arg5[%c1_33, %c0_34, %c0_35] : memref<9x128x128xbf16, #tpu.memory_space<vmem>>, vector<1x128x128xbf16>
    %28 = vector.shape_cast %27 : vector<1x128x128xbf16> to vector<128x128xbf16>
    %cst_36 = arith.constant dense<0.000000e+00> : vector<384x128xf32>
    %29 = tpu.matmul %26, %28, %cst_36 {dimension_numbers = #tpu.dot_dimension_numbers<[1], [0], [0], [1], [0, 0, 1, 1], [], []>} : vector<384x128xbf16>, vector<128x128xbf16>, vector<384x128xf32> -> vector<384x128xf32>
    %30 = arith.addf %25, %29 : vector<384x128xf32>
    %c383_i32 = arith.constant 383 : i32
    %31 = tpu.dynamic_rotate %20 by %c383_i32 dim 0 : vector<384x128xf32>, i32 -> vector<384x128xf32>
    %32 = arith.truncf %31 : vector<384x128xf32> to vector<384x128xbf16>
    %c2 = arith.constant 2 : index
    %c0_37 = arith.constant 0 : index
    %c0_38 = arith.constant 0 : index
    %33 = vector.load %arg5[%c2, %c0_37, %c0_38] : memref<9x128x128xbf16, #tpu.memory_space<vmem>>, vector<1x128x128xbf16>
    %34 = vector.shape_cast %33 : vector<1x128x128xbf16> to vector<128x128xbf16>
    %cst_39 = arith.constant dense<0.000000e+00> : vector<384x128xf32>
    %35 = tpu.matmul %32, %34, %cst_39 {dimension_numbers = #tpu.dot_dimension_numbers<[1], [0], [0], [1], [0, 0, 1, 1], [], []>} : vector<384x128xbf16>, vector<128x128xbf16>, vector<384x128xf32> -> vector<384x128xf32>
    %36 = arith.addf %30, %35 : vector<384x128xf32>
    %c0_40 = arith.constant 0 : index
    %c1_41 = arith.constant 1 : index
    %c0_42 = arith.constant 0 : index
    %c0_43 = arith.constant 0 : index
    %37 = vector.load %arg12[%c0_40, %c1_41, %c0_42, %c0_43] : memref<1x18x24x128xf32, #tpu.memory_space<vmem>>, vector<1x16x24x128xf32>
    %38 = vector.shape_cast %37 : vector<1x16x24x128xf32> to vector<384x128xf32>
    %c1_i32_44 = arith.constant 1 : i32
    %39 = tpu.dynamic_rotate %38 by %c1_i32_44 dim 0 : vector<384x128xf32>, i32 -> vector<384x128xf32>
    %40 = arith.truncf %39 : vector<384x128xf32> to vector<384x128xbf16>
    %c3 = arith.constant 3 : index
    %c0_45 = arith.constant 0 : index
    %c0_46 = arith.constant 0 : index
    %41 = vector.load %arg5[%c3, %c0_45, %c0_46] : memref<9x128x128xbf16, #tpu.memory_space<vmem>>, vector<1x128x128xbf16>
    %42 = vector.shape_cast %41 : vector<1x128x128xbf16> to vector<128x128xbf16>
    %cst_47 = arith.constant dense<0.000000e+00> : vector<384x128xf32>
    %43 = tpu.matmul %40, %42, %cst_47 {dimension_numbers = #tpu.dot_dimension_numbers<[1], [0], [0], [1], [0, 0, 1, 1], [], []>} : vector<384x128xbf16>, vector<128x128xbf16>, vector<384x128xf32> -> vector<384x128xf32>
    %44 = arith.addf %36, %43 : vector<384x128xf32>
    %45 = arith.truncf %38 : vector<384x128xf32> to vector<384x128xbf16>
    %c4 = arith.constant 4 : index
    %c0_48 = arith.constant 0 : index
    %c0_49 = arith.constant 0 : index
    %46 = vector.load %arg5[%c4, %c0_48, %c0_49] : memref<9x128x128xbf16, #tpu.memory_space<vmem>>, vector<1x128x128xbf16>
    %47 = vector.shape_cast %46 : vector<1x128x128xbf16> to vector<128x128xbf16>
    %cst_50 = arith.constant dense<0.000000e+00> : vector<384x128xf32>
    %48 = tpu.matmul %45, %47, %cst_50 {dimension_numbers = #tpu.dot_dimension_numbers<[1], [0], [0], [1], [0, 0, 1, 1], [], []>} : vector<384x128xbf16>, vector<128x128xbf16>, vector<384x128xf32> -> vector<384x128xf32>
    %49 = arith.addf %44, %48 : vector<384x128xf32>
    %c383_i32_51 = arith.constant 383 : i32
    %50 = tpu.dynamic_rotate %38 by %c383_i32_51 dim 0 : vector<384x128xf32>, i32 -> vector<384x128xf32>
    %51 = arith.truncf %50 : vector<384x128xf32> to vector<384x128xbf16>
    %c5 = arith.constant 5 : index
    %c0_52 = arith.constant 0 : index
    %c0_53 = arith.constant 0 : index
    %52 = vector.load %arg5[%c5, %c0_52, %c0_53] : memref<9x128x128xbf16, #tpu.memory_space<vmem>>, vector<1x128x128xbf16>
    %53 = vector.shape_cast %52 : vector<1x128x128xbf16> to vector<128x128xbf16>
    %cst_54 = arith.constant dense<0.000000e+00> : vector<384x128xf32>
    %54 = tpu.matmul %51, %53, %cst_54 {dimension_numbers = #tpu.dot_dimension_numbers<[1], [0], [0], [1], [0, 0, 1, 1], [], []>} : vector<384x128xbf16>, vector<128x128xbf16>, vector<384x128xf32> -> vector<384x128xf32>
    %55 = arith.addf %49, %54 : vector<384x128xf32>
    %c0_55 = arith.constant 0 : index
    %c2_56 = arith.constant 2 : index
    %c0_57 = arith.constant 0 : index
    %c0_58 = arith.constant 0 : index
    %56 = vector.load %arg12[%c0_55, %c2_56, %c0_57, %c0_58] : memref<1x18x24x128xf32, #tpu.memory_space<vmem>>, vector<1x16x24x128xf32>
    %57 = vector.shape_cast %56 : vector<1x16x24x128xf32> to vector<384x128xf32>
    %c1_i32_59 = arith.constant 1 : i32
    %58 = tpu.dynamic_rotate %57 by %c1_i32_59 dim 0 : vector<384x128xf32>, i32 -> vector<384x128xf32>
    %59 = arith.truncf %58 : vector<384x128xf32> to vector<384x128xbf16>
    %c6 = arith.constant 6 : index
    %c0_60 = arith.constant 0 : index
    %c0_61 = arith.constant 0 : index
    %60 = vector.load %arg5[%c6, %c0_60, %c0_61] : memref<9x128x128xbf16, #tpu.memory_space<vmem>>, vector<1x128x128xbf16>
    %61 = vector.shape_cast %60 : vector<1x128x128xbf16> to vector<128x128xbf16>
    %cst_62 = arith.constant dense<0.000000e+00> : vector<384x128xf32>
    %62 = tpu.matmul %59, %61, %cst_62 {dimension_numbers = #tpu.dot_dimension_numbers<[1], [0], [0], [1], [0, 0, 1, 1], [], []>} : vector<384x128xbf16>, vector<128x128xbf16>, vector<384x128xf32> -> vector<384x128xf32>
    %63 = arith.addf %55, %62 : vector<384x128xf32>
    %64 = arith.truncf %57 : vector<384x128xf32> to vector<384x128xbf16>
    %c7 = arith.constant 7 : index
    %c0_63 = arith.constant 0 : index
    %c0_64 = arith.constant 0 : index
    %65 = vector.load %arg5[%c7, %c0_63, %c0_64] : memref<9x128x128xbf16, #tpu.memory_space<vmem>>, vector<1x128x128xbf16>
    %66 = vector.shape_cast %65 : vector<1x128x128xbf16> to vector<128x128xbf16>
    %cst_65 = arith.constant dense<0.000000e+00> : vector<384x128xf32>
    %67 = tpu.matmul %64, %66, %cst_65 {dimension_numbers = #tpu.dot_dimension_numbers<[1], [0], [0], [1], [0, 0, 1, 1], [], []>} : vector<384x128xbf16>, vector<128x128xbf16>, vector<384x128xf32> -> vector<384x128xf32>
    %68 = arith.addf %63, %67 : vector<384x128xf32>
    %c383_i32_66 = arith.constant 383 : i32
    %69 = tpu.dynamic_rotate %57 by %c383_i32_66 dim 0 : vector<384x128xf32>, i32 -> vector<384x128xf32>
    %70 = arith.truncf %69 : vector<384x128xf32> to vector<384x128xbf16>
    %c8 = arith.constant 8 : index
    %c0_67 = arith.constant 0 : index
    %c0_68 = arith.constant 0 : index
    %71 = vector.load %arg5[%c8, %c0_67, %c0_68] : memref<9x128x128xbf16, #tpu.memory_space<vmem>>, vector<1x128x128xbf16>
    %72 = vector.shape_cast %71 : vector<1x128x128xbf16> to vector<128x128xbf16>
    %cst_69 = arith.constant dense<0.000000e+00> : vector<384x128xf32>
    %73 = tpu.matmul %70, %72, %cst_69 {dimension_numbers = #tpu.dot_dimension_numbers<[1], [0], [0], [1], [0, 0, 1, 1], [], []>} : vector<384x128xbf16>, vector<128x128xbf16>, vector<384x128xf32> -> vector<384x128xf32>
    %74 = arith.addf %68, %73 : vector<384x128xf32>
    %75 = vector.shape_cast %74 : vector<384x128xf32> to vector<1x16x24x128xf32>
    %76 = vector.extract_strided_slice %75 {offsets = [0, 0, 0, 0], sizes = [1, 16, 16, 128], strides = [1, 1, 1, 1]} : vector<1x16x24x128xf32> to vector<1x16x16x128xf32>
    %77 = vector.shape_cast %76 : vector<1x16x16x128xf32> to vector<256x128xf32>
    %c0_70 = arith.constant 0 : index
    %c0_71 = arith.constant 0 : index
    %78 = vector.load %arg6[%c0_70, %c0_71] : memref<1x128xf32, #tpu.memory_space<vmem>>, vector<1x128xf32>
    %79 = vector.broadcast %78 : vector<1x128xf32> to vector<256x128xf32>
    %80 = arith.mulf %77, %79 : vector<256x128xf32>
    %c0_72 = arith.constant 0 : index
    %c0_73 = arith.constant 0 : index
    %81 = vector.load %arg7[%c0_72, %c0_73] : memref<1x128xf32, #tpu.memory_space<vmem>>, vector<1x128xf32>
    %82 = vector.broadcast %81 : vector<1x128xf32> to vector<256x128xf32>
    %83 = arith.addf %80, %82 : vector<256x128xf32>
    %cst_74 = arith.constant 0.000000e+00 : f32
    %84 = vector.broadcast %cst_74 : f32 to vector<256x128xf32>
    %85 = arith.maximumf %83, %84 : vector<256x128xf32>
    %86 = arith.truncf %85 : vector<256x128xf32> to vector<256x128xbf16>
    %c0_75 = arith.constant 0 : index
    %c0_76 = arith.constant 0 : index
    %87 = vector.load %arg8[%c0_75, %c0_76] : memref<128x128xbf16, #tpu.memory_space<vmem>>, vector<128x128xbf16>
    %cst_77 = arith.constant dense<0.000000e+00> : vector<256x128xf32>
    %88 = tpu.matmul %86, %87, %cst_77 {dimension_numbers = #tpu.dot_dimension_numbers<[1], [0], [0], [1], [0, 0, 1, 1], [], []>} : vector<256x128xbf16>, vector<128x128xbf16>, vector<256x128xf32> -> vector<256x128xf32>
    %c0_78 = arith.constant 0 : index
    %c0_79 = arith.constant 0 : index
    %89 = vector.load %arg9[%c0_78, %c0_79] : memref<1x128xf32, #tpu.memory_space<vmem>>, vector<1x128xf32>
    %90 = vector.broadcast %89 : vector<1x128xf32> to vector<256x128xf32>
    %91 = arith.mulf %88, %90 : vector<256x128xf32>
    %c0_80 = arith.constant 0 : index
    %c0_81 = arith.constant 0 : index
    %92 = vector.load %arg10[%c0_80, %c0_81] : memref<1x128xf32, #tpu.memory_space<vmem>>, vector<1x128xf32>
    %93 = vector.broadcast %92 : vector<1x128xf32> to vector<256x128xf32>
    %94 = arith.addf %91, %93 : vector<256x128xf32>
    %c0_82 = arith.constant 0 : index
    %c0_83 = arith.constant 0 : index
    %c0_84 = arith.constant 0 : index
    %c0_85 = arith.constant 0 : index
    %95 = vector.load %arg1[%c0_82, %c0_83, %c0_84, %c0_85] : memref<1x16x16x128xbf16, #tpu.memory_space<vmem>>, vector<1x16x16x128xbf16>
    %96 = vector.shape_cast %95 : vector<1x16x16x128xbf16> to vector<256x128xbf16>
    %97 = arith.extf %96 : vector<256x128xbf16> to vector<256x128xf32>
    %98 = arith.addf %94, %97 : vector<256x128xf32>
    %cst_86 = arith.constant 0.000000e+00 : f32
    %99 = vector.broadcast %cst_86 : f32 to vector<256x128xf32>
    %100 = arith.maximumf %98, %99 : vector<256x128xf32>
    %101 = vector.shape_cast %100 : vector<256x128xf32> to vector<1x16x16x128xf32>
    %102 = arith.truncf %101 : vector<1x16x16x128xf32> to vector<1x16x16x128xbf16>
    %c0_87 = arith.constant 0 : index
    %c0_88 = arith.constant 0 : index
    %c0_89 = arith.constant 0 : index
    %c0_90 = arith.constant 0 : index
    %103 = vector.load %arg11[%c0_87, %c0_88, %c0_89, %c0_90] : memref<1x16x16x128xbf16, #tpu.memory_space<vmem>>, vector<1x16x16x128xbf16>
    tpu.vector_store %arg11[%c0_87, %c0_88, %c0_89, %c0_90], %102 {strides = array<i32>} : memref<1x16x16x128xbf16, #tpu.memory_space<vmem>>, vector<1x16x16x128xbf16>,
    return
  }
  func.func @transform_0(%arg0: i32) -> (i32, i32, i32, i32) {
    %c0_i32 = arith.constant 0 : i32
    %c0_i32_0 = arith.constant 0 : i32
    %c0_i32_1 = arith.constant 0 : i32
    %c0_i32_2 = arith.constant 0 : i32
    return %arg0, %c0_i32, %c0_i32_0, %c0_i32_1 : i32, i32, i32, i32
  }
  func.func @transform_1(%arg0: i32) -> (i32, i32) {
    %c0_i32 = arith.constant 0 : i32
    %c0_i32_0 = arith.constant 0 : i32
    %c0_i32_1 = arith.constant 0 : i32
    return %c0_i32, %c0_i32_0 : i32, i32
  }
  func.func @transform_2(%arg0: i32) -> (i32, i32) {
    %c0_i32 = arith.constant 0 : i32
    %c0_i32_0 = arith.constant 0 : i32
    %c0_i32_1 = arith.constant 0 : i32
    return %c0_i32, %c0_i32_0 : i32, i32
  }
  func.func @transform_3(%arg0: i32) -> (i32, i32) {
    %c0_i32 = arith.constant 0 : i32
    %c0_i32_0 = arith.constant 0 : i32
    %c0_i32_1 = arith.constant 0 : i32
    return %c0_i32, %c0_i32_0 : i32, i32
  }
  func.func @transform_4(%arg0: i32) -> (i32, i32, i32) {
    %c0_i32 = arith.constant 0 : i32
    %c0_i32_0 = arith.constant 0 : i32
    %c0_i32_1 = arith.constant 0 : i32
    %c0_i32_2 = arith.constant 0 : i32
    return %c0_i32, %c0_i32_0, %c0_i32_1 : i32, i32, i32
  }
  func.func @transform_5(%arg0: i32) -> (i32, i32) {
    %c0_i32 = arith.constant 0 : i32
    %c0_i32_0 = arith.constant 0 : i32
    %c0_i32_1 = arith.constant 0 : i32
    return %c0_i32, %c0_i32_0 : i32, i32
  }
  func.func @transform_6(%arg0: i32) -> (i32, i32) {
    %c0_i32 = arith.constant 0 : i32
    %c0_i32_0 = arith.constant 0 : i32
    %c0_i32_1 = arith.constant 0 : i32
    return %c0_i32, %c0_i32_0 : i32, i32
  }
  func.func @transform_7(%arg0: i32) -> (i32, i32) {
    %c0_i32 = arith.constant 0 : i32
    %c0_i32_0 = arith.constant 0 : i32
    %c0_i32_1 = arith.constant 0 : i32
    return %c0_i32, %c0_i32_0 : i32, i32
  }
  func.func @transform_8(%arg0: i32) -> (i32, i32) {
    %c0_i32 = arith.constant 0 : i32
    %c0_i32_0 = arith.constant 0 : i32
    %c0_i32_1 = arith.constant 0 : i32
    return %c0_i32, %c0_i32_0 : i32, i32
  }
  func.func @transform_9(%arg0: i32) -> (i32, i32) {
    %c0_i32 = arith.constant 0 : i32
    %c0_i32_0 = arith.constant 0 : i32
    %c0_i32_1 = arith.constant 0 : i32
    return %c0_i32, %c0_i32_0 : i32, i32
  }
  func.func @transform_10(%arg0: i32) -> (i32, i32, i32, i32) {
    %c0_i32 = arith.constant 0 : i32
    %c0_i32_0 = arith.constant 0 : i32
    %c0_i32_1 = arith.constant 0 : i32
    %c0_i32_2 = arith.constant 0 : i32
    return %arg0, %c0_i32, %c0_i32_0, %c0_i32_1 : i32, i32, i32, i32
  }
}

</mosaic_0001>

<bundles_post_ra>
// kernel: tpu_custom_call.1
= control target key start
LH: loop header
LB: loop body
LE: loop exit
PB: predicated region body
PF: predicated region fallthrough
CT: control target
= control target key end

     0   :  { %s9666_s0 = inlined_call_operand.hbm [shape: bf16[2,16,16,128], index: 0, kind: input, shape index: {}]   ;;  %s9667_s1 = inlined_call_operand.hbm [shape: bf16[128,128], index: 1, kind: input, shape index: {}]   ;;  %s9668_s2 = inlined_call_operand.vmem [shape: f32[1,128], index: 2, kind: input, shape index: {}]   ;;  %s9669_s3 = inlined_call_operand.vmem [shape: f32[1,128], index: 3, kind: input, shape index: {}]   ;;  %s9670_s4 = inlined_call_operand.hbm [shape: bf16[9,128,128], index: 4, kind: input, shape index: {}]   ;;  %s9671_s5 = inlined_call_operand.vmem [shape: f32[1,128], index: 5, kind: input, shape index: {}]   ;;  %s9672_s6 = inlined_call_operand.vmem [shape: f32[1,128], index: 6, kind: input, shape index: {}]   ;;  %s9673_s7 = inlined_call_operand.hbm [shape: bf16[128,128], index: 7, kind: input, shape index: {}]   ;;  %s9674_s8 = inlined_call_operand.vmem [shape: f32[1,128], index: 8, kind: input, shape index: {}]   ;;  %s9675_s9 = inlined_call_operand.vmem [shape: f32[1,128], index: 9, kind: input, shape index: {}]   ;;  %s9676_s10 = inlined_call_operand.hbm [shape: bf16[2,16,16,128], index: 10, kind: output, shape index: {}]  }
   0x1   :  { %9807 = sst [smem:[#allocation123_spill]] %s9675_s9 }
   0x2   :  { %9808 = sst [smem:[#allocation124_spill]] %s9676_s10 }
   0x3   :  { %15 = vsyncpa [#allocation4], 0 }
   0x4   :  { %17 = vsyncpa [#allocation4 + $0x1], 0 }
   0x5   :  { %18 = vsyncpa [#allocation7], 0 }
   0x6   :  { %19 = vsyncpa [#allocation10], 0 }
   0x7   :  { %20 = vsyncpa [#allocation5], 0 }
   0x8   :  { %22 = vsyncpa [#allocation5 + $0x1], 0  ;;  %s7597_s13 = smov 0   ;;  %s7599_s14 = smov 0  }
   0x9   :  { %s7601_s15 = smov 0   ;;  %s7603_s16 = smov 0  }
   0xa LB: > { %9809 = sst [smem:[#allocation16_spill]] %s7517_s13  ;;  %s7618_s17 = sadd.s32 4294967295, %s7529_s16   ;;  %s7529_s16 = sphi %s7603_s16, %s10135_s16   ;;  %s7525_s15 = sphi %s7601_s15, %s10134_s15   ;;  %s7521_s14 = sphi %s7599_s14, %s10133_s14   ;;  %s7517_s13 = sphi %s7597_s13, %s10132_s13  }
   0xb   : > { %s5405_s18 = sadd.s32 4294967294, %s7529_s16   ;;  %p48_p0 = scmp.ne.s32.totalorder %s7521_s14, %s7517_s13 }
   0xc   : > { %p9677_p1 = scmp.eq.s32.totalorder %s7618_s17, 0  ;;  %p267_p3 = scmp.eq.s32.totalorder %s5405_s18, 1 }
   0xd   : > { %p5406_p5 = scmp.ge.s32.totalorder %s7529_s16, 1  ;;  %p274_p7 = scmp.lt.s32.totalorder %s7529_s16, 3 }
   0xe   : > { %p7627_p4 = por %p9677_p1, %p48_p0  ;;  %p7632_p6 = por %p267_p3, %p48_p0 }
   0xf   : > { %p7637_p8 = pnand %p5406_p5, %p274_p7  ;;  %s7531_s22 = smov [#allocation6]  }
  0x10   : > { %s9810_s19 = scalar_select %p7627_p4, 1, 0 }
  0x11   : > { %s9811_s20 = scalar_select %p7632_p6, 1, 0 }
  0x12   : > { %s9813_s21 = scalar_select %p7637_p8, 1, 0 }
  0x13   : > { %9812 = sst [smem:[#allocation17_spill]] %s9811_s20  ;;  %s286_s23 = sshll.u32 %s7531_s22, 4  ;;  %s7641_s23 = int_to_ptr.vmem [resolvable:$true] %s286_s23 }
  0x14   : > { %p7170_p9 = pneg %p7637_p8  ;;  %s7532_s25 = smov [#allocation8]  }
  0x15   : > { %s305_s26 = sshll.u32 %s7532_s25, 4  ;;  %s7533_s27 = smov [#allocation9]   ;;  %s7652_s26 = int_to_ptr.vmem [resolvable:$true] %s305_s26 }
  0x16   : > { %p7648_p11 = pnand %p7170_p9, %p9677_p1  ;;  %s7654_s28 = sshll.u32 %s7533_s27, 4  ;;  %s325_s28 = int_to_ptr.vmem [resolvable:$true] %s7654_s28 }
  0x17   : > { %s7341_s11 = scalar_lea.hbm %s9667_s1, 1024 }
  0x18   : > { %p7342_p12 = scmp.ne.s32.totalorder %s9667_s1, %s7341_s11  ;;  %p7664_p13 = pneg %p7648_p11 }
  0x19   : > { %p7348_p5 = scmp.lt.u32.totalorder %s7341_s11, %s9667_s1 }
  0x1a   : > { %p7344_p0 = pnand %p7664_p13, %p7342_p12 }
  0x1c   : > { %p7345_p3 = pneg %p7344_p0 }
  0x1e   : > { %p7350_p7 = pnand %p7348_p5, %p7345_p3 }
  0x20   : > { %7353 = shalt.err (!%p7350_p7)
}
  0x21   : > { %s7354_s29 = scalar_lea.vmem %s7641_s23, 1024  ;;  %p7362_p2 = scmp.lt.s32.totalorder %s7641_s23, %s7641_s23 }
  0x22   : > { %p7355_p9 = scmp.ne.s32.totalorder %s7641_s23, %s7354_s29  ;;  %p7363_p6 = scmp.lt.s32.totalorder %s7354_s29, %s7354_s29 }
  0x24   : > { %p7357_p10 = pnand %p7355_p9, %p7664_p13  ;;  %p7364_p12 = por %p7363_p6, %p7362_p2 }
  0x26   : > { %p7358_p1 = pneg %p7357_p10 }
  0x28   : > { %p7365_p0 = pnand %p7364_p12, %p7358_p1 }
  0x2a   : > { %7368 = shalt.err (!%p7365_p0)
}
  0x2b   : > { %s7534_s30 = smov 64   ;;  %s7535_s11 = smov 4  }
  0x2c   : > { %7173 = dma.hbm_to_vmem [thread:$0]  (!%p7648_p11), %s9667_s1, 1024, %s7641_s23, [#allocation7], %s7534_s30, %s7534_s30, %s7535_s11  }
  0x2d   : > { %s7369_s29 = scalar_lea.hbm %s9670_s4, 9216 }
  0x2e   : > { %p7370_p1 = scmp.ne.s32.totalorder %s9670_s4, %s7369_s29  ;;  %p7376_p10 = scmp.lt.u32.totalorder %s7369_s29, %s9670_s4 }
  0x30   : > { %p7372_p2 = pnand %p7370_p1, %p7664_p13 }
  0x32   : > { %p7373_p6 = pneg %p7372_p2 }
  0x34   : > { %p7378_p3 = pnand %p7376_p10, %p7373_p6 }
  0x36   : > { %7381 = shalt.err (!%p7378_p3)
}
  0x37   : > { %s7382_s23 = scalar_lea.vmem %s7652_s26, 9216  ;;  %p7390_p12 = scmp.lt.s32.totalorder %s7652_s26, %s7652_s26 }
  0x38   : > { %p7383_p5 = scmp.ne.s32.totalorder %s7652_s26, %s7382_s23  ;;  %p7391_p0 = scmp.lt.s32.totalorder %s7382_s23, %s7382_s23 }
  0x3a   : > { %p7385_p7 = pnand %p7383_p5, %p7664_p13  ;;  %p7392_p1 = por %p7391_p0, %p7390_p12 }
  0x3c   : > { %p7386_p9 = pneg %p7385_p7 }
  0x3e   : > { %p7393_p2 = pnand %p7392_p1, %p7386_p9 }
  0x40   : > { %7396 = shalt.err (!%p7393_p2)
}
  0x41   : > { %7176 = dma.hbm_to_vmem [thread:$0]  (!%p7648_p11), %s9670_s4, 9216, %s7652_s26, [#allocation7], %s7534_s30, %s7534_s30, %s7535_s11  }
  0x42   : > { %s7397_s12 = scalar_lea.hbm %s9673_s7, 1024 }
  0x43   : > { %p7398_p6 = scmp.ne.s32.totalorder %s9673_s7, %s7397_s12  ;;  %p7404_p5 = scmp.lt.u32.totalorder %s7397_s12, %s9673_s7 }
  0x45   : > { %p7400_p10 = pnand %p7398_p6, %p7664_p13 }
  0x47   : > { %p7401_p3 = pneg %p7400_p10 }
  0x49   : > { %p7406_p7 = pnand %p7404_p5, %p7401_p3 }
  0x4b   : > { %7409 = shalt.err (!%p7406_p7)
}
  0x4c   : > { %s7410_s23 = scalar_lea.vmem %s325_s28, 1024  ;;  %p7418_p1 = scmp.lt.s32.totalorder %s325_s28, %s325_s28 }
  0x4d   : > { %p7411_p9 = scmp.ne.s32.totalorder %s325_s28, %s7410_s23  ;;  %p7419_p2 = scmp.lt.s32.totalorder %s7410_s23, %s7410_s23 }
  0x4f   : > { %p7413_p12 = pnand %p7411_p9, %p7664_p13  ;;  %p7420_p4 = por %p7419_p2, %p7418_p1 }
  0x51   : > { %p7414_p0 = pneg %p7413_p12 }
  0x53   : > { %p7421_p8 = pnand %p7420_p4, %p7414_p0 }
  0x55   : > { %7424 = shalt.err (!%p7421_p8)
}
  0x56   : > { %7179 = dma.hbm_to_vmem [thread:$0]  (!%p7648_p11), %s9673_s7, 1024, %s325_s28, [#allocation10], %s7534_s30, %s7534_s30, %s7535_s11  }
  0x57   : > { %s7737_s22 = sadd.s32 1, %s7529_s16   ;;  %s35_s10 = sadd.s32 1, %s7525_s15 }
  0x58   : > { %s32_s24 = ssub.s32 %s7529_s16, %s7737_s22  ;;  %p42_p8 = scmp.ne.s32.totalorder %s7525_s15, %s7521_s14 }
  0x59   : > { %p33_p4 = scmp.eq.s32.totalorder %s32_s24, 0  ;;  %p43_p13 = scmp.eq.s32.totalorder %s7529_s16, 0 }
  0x5a   : > { %p7191_p6 = scmp.lt.s32.totalorder %s7529_s16, 2  ;;  %p9816_p3 = scmp.eq.s32.totalorder %s7618_s17, 1 }
  0x5b   : > { %s7747_s13 = scalar_select %p33_p4, %s7525_s15, %s35_s10  }
  0x5c   : > { %p44_p10 = por %p43_p13, %p42_p8  ;;  %p7751_p5 = por %p9816_p3, %p42_p8 }
  0x5d   : > { %s344_s12 = sand.u32 1, %s7525_s15   ;;  %s5567_s18 = sshll.u32 %s7529_s16, 11 }
  0x5e   : > { %s5411_s28 = sshll.u32 %s344_s12, 7  ;;  %s7760_s29 = scalar_lea.hbm %s9666_s0, %s5567_s18 }
  0x5f   : > { %s348_s23 = scalar_lea.vmem [#allocation3], %s5411_s28  ;;  %p7762_p11 = pnand %p7191_p6, %p44_p10 }
  0x60   : > { %s355_s26 = sshll.u32 %s348_s23, 4  ;;  %s7768_s24 = scalar_lea.sflag [#allocation4], %s344_s12  ;;  %s7766_s26 = int_to_ptr.vmem [resolvable:$true] %s355_s26 }
  0x61   : > { %s7425_s10 = scalar_lea.hbm %s7760_s29, 2048  ;;  %p7427_p9 = pneg %p7762_p11 }
  0x62   : > { %p7426_p7 = scmp.ne.s32.totalorder %s7760_s29, %s7425_s10  ;;  %s7430_s25 = scalar_lea.hbm %s9666_s0, 4096 }
  0x63   : > { %p7431_p1 = scmp.lt.u32.totalorder %s7760_s29, %s9666_s0  ;;  %p7432_p2 = scmp.lt.u32.totalorder %s7430_s25, %s7425_s10 }
  0x64   : > { %p7428_p12 = pnand %p7427_p9, %p7426_p7  ;;  %p7434_p8 = scmp.lt.u32.totalorder %s7425_s10, %s7760_s29 }
  0x65   : > { %p7433_p4 = por %p7432_p2, %p7431_p1 }
  0x66   : > { %p7429_p0 = pneg %p7428_p12 }
  0x67   : > { %p7435_p13 = por %p7434_p8, %p7433_p4 }
  0x69   : > { %p7436_p6 = pnand %p7435_p13, %p7429_p0 }
  0x6b   : > { %7439 = shalt.err (!%p7436_p6)
}
  0x6c   : > { %s7440_s12 = scalar_lea.vmem %s7766_s26, 2048  ;;  %s7536_s18 = smov [#allocation3]  }
  0x6d   : > { %p7441_p10 = scmp.ne.s32.totalorder %s7766_s26, %s7440_s12  ;;  %s7445_s28 = sshll.u32 %s7536_s18, 4  ;;  %s7446_s28 = int_to_ptr.vmem [resolvable:$false] %s7445_s28 }
  0x6e   : > { %s7447_s27 = scalar_lea.vmem %s7446_s28, 4096  ;;  %p7448_p12 = scmp.lt.s32.totalorder %s7766_s26, %s7446_s28 }
  0x6f   : > { %p7443_p3 = pnand %p7441_p10, %p7427_p9  ;;  %p7449_p1 = scmp.lt.s32.totalorder %s7447_s27, %s7440_s12 }
  0x71   : > { %p7444_p7 = pneg %p7443_p3  ;;  %p7450_p2 = por %p7449_p1, %p7448_p12 }
  0x73   : > { %p7451_p4 = pnand %p7450_p2, %p7444_p7 }
  0x75   : > { %7454 = shalt.err (!%p7451_p4)
}
  0x76   : > { %7183 = dma.hbm_to_vmem [thread:$0]  (!%p7762_p11), %s7760_s29, 2048, %s7766_s26, %s7768_s24, %s7534_s30, %s7534_s30, %s7535_s11  }
  0x77   : > { %p9819_p9 = scmp.ne.s32.totalorder %s9813_s21, 0 }
  0x79   : > { %367 = sbr.rel (%p9819_p9) target bundleno = 1353 (0x549), region = 60 }
  0x80   : > { %s7802_s10 = sand.u32 1, %s7521_s14   ;;  %p9820_p0 = scmp.ne.s32.totalorder %s9810_s19, 0 }
  0x81   : > { %s5415_s25 = sshll.u32 %s7802_s10, 7  ;;  %s370_s23 = scalar_lea.sflag [#allocation4], %s7802_s10 }
  0x82   : > { %s7808_s9 = scalar_lea.vmem [#allocation3], %s5415_s25 }
  0x83   : > { %7500 = dma.done.wait (%p9820_p0), %s370_s23, 2048  }
  0x84   : > { %7502 = vsyncadd (%p9820_p0), %s370_s23, 4294965248  ;;  %p9821_p11 = scmp.eq.s32.totalorder %s7618_s17, 0 }
  0x86   : > { %7504 = dma.done.wait (%p9821_p11), [#allocation7], 10240   ;;  %p9822_p8 = pmov %p9821_p11 }
  0x88   : > { %7506 = vsyncadd (%p9822_p8), [#allocation7], 4294957056  ;;  %p9823_p13 = pmov %p9822_p8 }
  0x89   : > { %p9824_p6 = pmov %p9822_p8 }
  0x8a   : > { %7508 = dma.done.wait (%p9823_p13), [#allocation10], 1024  }
  0x8b   : > { %7510 = vsyncadd (%p9824_p6), [#allocation10], 4294966272  ;;  %v7237_v0 = vld [vmem:[#allocation6] sm:$0xff]   ;;  %v7238_v1 = vld [vmem:[#allocation6 + $0x8] sm:$0xff]   ;;  %v9683_v39 = vmov 0.0|0.0   ;;  %v1038_v44 = vlaneseq  ;;  %v9685_v61 = vmov 0.0  }
  0x8c   : > { %6111 = vmatprep.subr.bf16.mxu0 %v7237_v0  ;;  %v7239_v2 = vld [vmem:[#allocation6 + $0x10] sm:$0xff]   ;;  %v7240_v3 = vld [vmem:[#allocation6 + $0x18] sm:$0xff]   ;;  %v7245_v4 = vld [vmem:[%s7808_s9] sm:$0xff]   ;;  %v7867_v62 = vrot.slane %v9685_v61, 7  ;;  %s10125_s19 = sld [smem:[#allocation123_spill]]  ;;  %s9531_s21 = scalar_lea.vmem [#allocation11], %s5415_s25 }
  0x8d   : > { %6112 = vmatpush3.bf16.msra.mxu0 %v7237_v0  ;;  %6127 = vmatprep.mubr.bf16.mxu0 %v7245_v4  ;;  %v7241_v5 = vld [vmem:[#allocation6 + $0x20] sm:$0xff]   ;;  %v7242_v6 = vld [vmem:[#allocation6 + $0x28] sm:$0xff]   ;;  %v7243_v7 = vld [vmem:[#allocation6 + $0x30] sm:$0xff]   ;;  %v7856_v54 = vshrl.u32 %v1038_v44, 7  ;;  %s5600_s25 = sshll.u32 %s7618_s17, 11  ;;  %s10126_s29 = sld [smem:[#allocation124_spill]] }
  0x8e   : > { %6113 = vmatprep.subr.bf16.mxu0 %v7238_v1  ;;  %v7244_v8 = vld [vmem:[#allocation6 + $0x38] sm:$0xff]   ;;  %v7263_v9 = vld [vmem:[#allocation8 + $0xc0] sm:$0xff]   ;;  %v7265_v11 = vld [vmem:[#allocation8 + $0xc8] sm:$0xff]   ;;  %9825 = vst [vmem:[#allocation18_spill] sm:$0xff] %v7867_v62  ;;  %s5290_s17 = scalar_lea.sflag [#allocation5], %s7802_s10  ;;  %s7539_s12 = smov [#allocation11]  }
  0x8f   : > { %v7261_v10 = vld [vmem:[#allocation8 + $0x40] sm:$0xff]   ;;  %6351 = vmatprep.subr.bf16.mxu1 %v7263_v9  ;;  %v7246_v12 = vld [vmem:[%s7808_s9 + $0x8] sm:$0xff]   ;;  %v7267_v13 = vld [vmem:[#allocation8 + $0xd0] sm:$0xff]   ;;  %vm1040_vm0 = vcmp.lt.s32.totalorder %v7856_v54, 1  ;;  %vm1732_vm1 = vcmp.lt.s32.totalorder %v7856_v54, 7  ;;  %s7459_s18 = sshll.u32 %s7539_s12, 4  ;;  %s7460_s18 = int_to_ptr.vmem [resolvable:$false] %s7459_s18 }
  0x90   : > { %6352 = vmatpush3.bf16.msra.mxu1 %v7263_v9  ;;  %v7247_v14 = vld [vmem:[%s7808_s9 + $0x10] sm:$0xff]   ;;  %v7262_v15 = vld [vmem:[#allocation8 + $0x48] sm:$0xff]   ;;  %v7269_v17 = vld [vmem:[#allocation8 + $0xd8] sm:$0xff]   ;;  %s7461_s28 = scalar_lea.vmem %s7460_s18, 4096 }
  0x91   : > { %6114 = vmatpush3.bf16.msra.mxu0 %v7238_v1  ;;  %6353 = vmatprep.subr.bf16.mxu1 %v7265_v11  ;;  %v7264_v16 = vld [vmem:[#allocation8 + $0x50] sm:$0xff]   ;;  %v7248_v18 = vld [vmem:[%s7808_s9 + $0x18] sm:$0xff]   ;;  %v7271_v19 = vld [vmem:[#allocation8 + $0xe0] sm:$0xff]  }
  0x92   : > { %6115 = vmatprep.subr.bf16.mxu0 %v7239_v2  ;;  %v7249_v20 = vld [vmem:[%s7808_s9 + $0x20] sm:$0xff]   ;;  %v7266_v21 = vld [vmem:[#allocation8 + $0x58] sm:$0xff]   ;;  %v7250_v23 = vld [vmem:[%s7808_s9 + $0x28] sm:$0xff]  }
  0x93   : > { %v7268_v22 = vld [vmem:[#allocation8 + $0x60] sm:$0xff]   ;;  %v7251_v24 = vld [vmem:[%s7808_s9 + $0x30] sm:$0xff]   ;;  %v7270_v25 = vld [vmem:[#allocation8 + $0x68] sm:$0xff]   ;;  %s9618_s26 = scalar_lea.hbm %s10126_s29, %s5600_s25 }
  0x94   : > { %6354 = vmatpush3.bf16.msra.mxu1 %v7265_v11  ;;  %v7252_v26 = vld [vmem:[%s7808_s9 + $0x38] sm:$0xff]   ;;  %v7253_v27 = vld [vmem:[%s7808_s9 + $0x40] sm:$0xff]   ;;  %v7254_v28 = vld [vmem:[%s7808_s9 + $0x48] sm:$0xff]  }
  0x95   : > { %6116 = vmatpush3.bf16.msra.mxu0 %v7239_v2  ;;  %6355 = vmatprep.subr.bf16.mxu1 %v7267_v13  ;;  %v7255_v29 = vld [vmem:[%s7808_s9 + $0x50] sm:$0xff]   ;;  %v7256_v30 = vld [vmem:[%s7808_s9 + $0x58] sm:$0xff]   ;;  %v7257_v31 = vld [vmem:[%s7808_s9 + $0x60] sm:$0xff]  }
  0x96   : > { %6117 = vmatprep.subr.bf16.mxu0 %v7240_v3  ;;  %v7258_v32 = vld [vmem:[%s7808_s9 + $0x68] sm:$0xff]   ;;  %v7259_v33 = vld [vmem:[%s7808_s9 + $0x70] sm:$0xff]   ;;  %v7260_v34 = vld [vmem:[%s7808_s9 + $0x78] sm:$0xff]  }
  0x97   : > { %v7272_v35 = vld [vmem:[#allocation8 + $0x70] sm:$0xff]   ;;  %v7273_v36 = vld [vmem:[#allocation8 + $0xe8] sm:$0xff]   ;;  %v7274_v37 = vld [vmem:[#allocation8 + $0x78] sm:$0xff]  }
  0x98   : > { %6356 = vmatpush3.bf16.msra.mxu1 %v7267_v13  ;;  %v7275_v38 = vld [vmem:[#allocation8 + $0xf0] sm:$0xff]   ;;  %v7276_v40 = vld [vmem:[#allocation8 + $0xf8] sm:$0xff]   ;;  %v7839_v41 = vld [vmem:[#allocation8 + $0x100] sm:$0xff]  }
  0x99   : > { %6118 = vmatpush3.bf16.msra.mxu0 %v7240_v3  ;;  %6357 = vmatprep.subr.bf16.mxu1 %v7269_v17  ;;  %v7282_v42 = vld [vmem:[#allocation8] sm:$0xff]  }
  0x9a   : > { %6119 = vmatprep.subr.bf16.mxu0 %v7241_v5  ;;  %v7845_v43 = vld [vmem:[%s9668_s2] ss:$0 sm:$0xff] }
  0x9b   : > { %v7850_v46 = vld [vmem:[%s9669_s3] ss:$0 sm:$0xff] }
  0x9c   : > { %6358 = vmatpush3.bf16.msra.mxu1 %v7269_v17 }
  0x9d   : > { %6120 = vmatpush3.bf16.msra.mxu0 %v7241_v5  ;;  %6359 = vmatprep.subr.bf16.mxu1 %v7271_v19 }
  0x9e   : > { %6121 = vmatprep.subr.bf16.mxu0 %v7242_v6 }
  0xa0   : > { %6360 = vmatpush3.bf16.msra.mxu1 %v7271_v19 }
  0xa1   : > { %6122 = vmatpush3.bf16.msra.mxu0 %v7242_v6  ;;  %6361 = vmatprep.subr.bf16.mxu1 %v7273_v36 }
  0xa2   : > { %6123 = vmatprep.subr.bf16.mxu0 %v7243_v7 }
  0xa4   : > { %6362 = vmatpush3.bf16.msra.mxu1 %v7273_v36 }
  0xa5   : > { %6124 = vmatpush3.bf16.msra.mxu0 %v7243_v7  ;;  %6363 = vmatprep.subr.bf16.mxu1 %v7275_v38 }
  0xa6   : > { %6125 = vmatprep.subr.bf16.mxu0 %v7244_v8 }
  0xa8   : > { %6364 = vmatpush3.bf16.msra.mxu1 %v7275_v38 }
  0xa9   : > { %6126 = vmatpush3.bf16.msra.mxu0 %v7244_v8  ;;  %6365 = vmatprep.subr.bf16.mxu1 %v7276_v40  ;;  %v7284_v8 = vld [vmem:[#allocation8 + $0x8] sm:$0xff]  }
  0xaa   : > { %6159 = vmatprep.subr.bf16.mxu0 %v7261_v10 }
  0xac   : > { %6128 = vmatmul.mubr.bf16.vlgmr.msra.gmra.mrb[0].mxu0 %v7246_v12  ;;  %6366 = vmatpush3.bf16.msra.mxu1 %v7276_v40 }
  0xad   : > { %6131 = vmatprep.mubr.bf16.mxu0 %v7247_v14  ;;  %6160 = vmatpush3.bf16.msra.mxu0 %v7261_v10 }
  0xae   : > { %6161 = vmatprep.subr.bf16.mxu0 %v7262_v15  ;;  %6415 = vmatprep.subr.bf16.mxu1 %v7839_v41 }
  0xb1   : > { %6162 = vmatpush3.bf16.msra.mxu0 %v7262_v15 }
  0xb2   : > { %6163 = vmatprep.subr.bf16.mxu0 %v7264_v16 }
  0xb4   : > { %6132 = vmatmul.mubr.bf16.gmra.mrb[4].mxu0 %v7248_v18 }
  0xb5   : > { %6135 = vmatprep.mubr.bf16.mxu0 %v7249_v20  ;;  %6164 = vmatpush3.bf16.msra.mxu0 %v7264_v16 }
  0xb6   : > { %6165 = vmatprep.subr.bf16.mxu0 %v7266_v21 }
  0xb9   : > { %6166 = vmatpush3.bf16.msra.mxu0 %v7266_v21 }
  0xba   : > { %6167 = vmatprep.subr.bf16.mxu0 %v7268_v22 }
  0xbc   : > { %6136 = vmatmul.mubr.bf16.gmra.mrb[8].mxu0 %v7250_v23  ;;  %v7285_v23 = vld [vmem:[#allocation8 + $0x10] sm:$0xff]  }
  0xbd   : > { %6139 = vmatprep.mubr.bf16.mxu0 %v7251_v24  ;;  %6168 = vmatpush3.bf16.msra.mxu0 %v7268_v22 }
  0xbe   : > { %6169 = vmatprep.subr.bf16.mxu0 %v7270_v25 }
  0xc1   : > { %6170 = vmatpush3.bf16.msra.mxu0 %v7270_v25 }
  0xc2   : > { %6171 = vmatprep.subr.bf16.mxu0 %v7272_v35 }
  0xc4   : > { %6140 = vmatmul.mubr.bf16.gmra.mrb[12].mxu0 %v7252_v26 }
  0xc5   : > { %6143 = vmatprep.mubr.bf16.mxu0 %v7253_v27  ;;  %6172 = vmatpush3.bf16.msra.mxu0 %v7272_v35 }
  0xc6   : > { %6173 = vmatprep.subr.bf16.mxu0 %v7274_v37 }
  0xc9   : > { %6174 = vmatpush3.bf16.msra.mxu0 %v7274_v37 }
  0xca   : > { %6223 = vmatprep.subr.bf16.mxu0 %v7282_v42 }
  0xcc   : > { %6144 = vmatmul.mubr.bf16.gmra.mrb[16].mxu0 %v7254_v28 }
  0xcd   : > { %6147 = vmatprep.mubr.bf16.mxu0 %v7255_v29 }
  0xd4   : > { %6148 = vmatmul.mubr.bf16.gmra.mrb[20].mxu0 %v7256_v30 }
  0xd5   : > { %6151 = vmatprep.mubr.bf16.mxu0 %v7257_v31 }
  0xdc   : > { %6152 = vmatmul.mubr.bf16.gmra.mrb[24].mxu0 %v7258_v32  ;;  %v7278_v32 = vld [vmem:[#allocation8 + $0x108] sm:$0xff]  }
  0xdd   : > { %6155 = vmatprep.mubr.bf16.mxu0 %v7259_v33 }
  0xe4   : > { %6156 = vmatmul.mubr.bf16.gmra.mrb[28].mxu0 %v7260_v34 }
  0xe5   : > { %6175 = vmatprep.mubr.bf16.mxu0 %v9683_v39 }
 0x17f   : > { %v6129_v45 = vpop.f32.mrb[0].mxu0 }
 0x180   : > { %v785_v47 = vmul.f32 %v6129_v45, %v7845_v43  ;;  %v649_v48 = vpop.f32.mrb[1].mxu0 }
 0x181   : > { %v783_v49 = vmul.f32 %v7845_v43, %v649_v48  ;;  %v6130_v50 = vpop.f32.mrb[2].mxu0 }
 0x182   : > { %v824_v51 = vadd.f32 %v7850_v46, %v785_v47  ;;  %v786_v52 = vmul.f32 %v6130_v50, %v7845_v43  ;;  %v652_v53 = vpop.f32.mrb[3].mxu0  ;;  %v7286_v50 = vld [vmem:[#allocation8 + $0x18] sm:$0xff]  }
 0x183   : > { %v822_v55 = vadd.f32 %v7850_v46, %v783_v49  ;;  %v784_v56 = vmul.f32 %v7845_v43, %v652_v53 }
 0x184   : > { %v7860_v57 = vmax.f32 %v824_v51, 0.0  ;;  %v825_v58 = vadd.f32 %v7850_v46, %v786_v52 }
 0x185   : > { %v7863_v59 = vmax.f32 %v822_v55, 0.0  ;;  %v823_v60 = vadd.f32 %v7850_v46, %v784_v56  ;;  %v7279_v56 = vld [vmem:[#allocation8 + $0x110] sm:$0xff]  }
 0x186   : > { %v7869_v63 = vmax.f32 %v825_v58, 0.0  ;;  %v996_v0 = vrot.slane %v7860_v57, 7 }
 0x187   : > { %v1130_v1 = vpack.c.bf16 %v7863_v59, %v9685_v61  ;;  %v7875_v2 = vmax.f32 %v823_v60, 0.0  ;;  %v6133_v3 = vpop.f32.mrb[4].mxu0  ;;  %v993_v4 = vrot.slane %v7863_v59, 7 }
 0x188   : > { %9826 = vst [vmem:[#allocation19_spill] sm:$0xff] %v7869_v63  ;;  %v789_v5 = vmul.f32 %v6133_v3, %v7845_v43  ;;  %v665_v6 = vpop.f32.mrb[5].mxu0  ;;  %v997_v7 = vrot.slane %v7869_v63, 7  ;;  %v7887_v13 = vsel %vm1040_vm0, %v7867_v62, %v996_v0  ;;  %v7931_v35 = vpack.c.bf16 %v7869_v63, %v7860_v57 }
 0x189   : > { %v787_v9 = vmul.f32 %v7845_v43, %v665_v6  ;;  %v6134_v10 = vpop.f32.mrb[6].mxu0  ;;  %6176 = vmatmul.mubr.bf16.vlgmr.msra.gmra.mrb[32].mxu0 %v1130_v1  ;;  %v1131_v11 = vpack.c.bf16 %v9685_v61, %v7875_v2  ;;  %v994_v12 = vrot.slane %v7875_v2, 7  ;;  %v7894_v17 = vsel %vm1040_vm0, %v7867_v62, %v993_v4 }
 0x18a   : > { %v828_v14 = vadd.f32 %v7850_v46, %v789_v5  ;;  %v790_v15 = vmul.f32 %v6134_v10, %v7845_v43  ;;  %v668_v16 = vpop.f32.mrb[7].mxu0  ;;  %9827 = vst [vmem:[#allocation20_spill] sm:$0xff] %v7894_v17  ;;  %v7899_v18 = vsel %vm1040_vm0, %v997_v7, %v7867_v62  ;;  %6224 = vmatpush3.bf16.msra.mxu0 %v7282_v42  ;;  %9831 = vst [vmem:[#allocation24_spill] sm:$0xff] %v7931_v35 }
 0x18b   : > { %v826_v19 = vadd.f32 %v7850_v46, %v787_v9  ;;  %v788_v20 = vmul.f32 %v7845_v43, %v668_v16  ;;  %6179 = vmatprep.mubr.bf16.mxu0 %v1131_v11  ;;  %v7906_v21 = vsel %vm1040_vm0, %v994_v12, %v7867_v62  ;;  %v7910_v22 = vsel %vm1040_vm0, %v993_v4, %v994_v12  ;;  %v7280_v16 = vld [vmem:[#allocation8 + $0x118] sm:$0xff]  }
 0x18c   : > { %9828 = vst [vmem:[#allocation21_spill] sm:$0xff] %v7906_v21  ;;  %9829 = vst [vmem:[#allocation22_spill] sm:$0xff] %v7910_v22  ;;  %v7912_v24 = vmax.f32 %v828_v14, 0.0  ;;  %v829_v25 = vadd.f32 %v7850_v46, %v790_v15  ;;  %v2255_v27 = vpack.c.bf16 %v7910_v22, %v7894_v17  ;;  %6225 = vmatprep.subr.bf16.mxu0 %v7284_v8 }
 0x18d   : > { %v7919_v28 = vmax.f32 %v826_v19, 0.0  ;;  %v827_v29 = vadd.f32 %v7850_v46, %v788_v20  ;;  %v2256_v30 = vpack.c.bf16 %v7887_v13, %v7906_v21  ;;  %v1081_v31 = vsel %vm1040_vm0, %v996_v0, %v997_v7 }
 0x18e   : > { %v7926_v33 = vmax.f32 %v829_v25, 0.0  ;;  %6367 = vmatprep.mubr.bf16.mxu1 %v2255_v27  ;;  %v2257_v34 = vpack.c.bf16 %v7899_v18, %v1081_v31  ;;  %v1002_v36 = vrot.slane %v7912_v24, 7  ;;  %6226 = vmatpush3.bf16.msra.mxu0 %v7284_v8 }
 0x18f   : > { %9830 = vst [vmem:[#allocation23_spill] sm:$0xff] %v7919_v28  ;;  %v7934_v37 = vmax.f32 %v827_v29, 0.0  ;;  %v6137_v38 = vpop.f32.mrb[8].mxu0  ;;  %6368 = vmatmul.mubr.bf16.vlgmr.msra.gmra.mrb[0].mxu1 %v2256_v30  ;;  %v7938_v40 = vpack.c.bf16 %v7919_v28, %v9685_v61  ;;  %v999_v42 = vrot.slane %v7919_v28, 7  ;;  %6227 = vmatprep.subr.bf16.mxu0 %v7285_v23 }
 0x190   : > { %v793_v45 = vmul.f32 %v6137_v38, %v7845_v43  ;;  %6416 = vmatpush3.bf16.msra.mxu1 %v7839_v41  ;;  %v681_v47 = vpop.f32.mrb[9].mxu0  ;;  %6371 = vmatprep.mubr.bf16.mxu1 %v2257_v34  ;;  %v7947_v48 = vpack.c.bf16 %v7926_v33, %v7912_v24  ;;  %v1003_v49 = vrot.slane %v7926_v33, 7  ;;  %v7959_v55 = vsel %vm1040_vm0, %v7867_v62, %v1002_v36  ;;  %v7288_v34 = vld [vmem:[#allocation8 + $0x20] sm:$0xff]  }
 0x191   : > { %9832 = vst [vmem:[#allocation25_spill] sm:$0xff] %v7934_v37  ;;  %9833 = vst [vmem:[#allocation26_spill] sm:$0xff] %v7938_v40  ;;  %v791_v51 = vmul.f32 %v7845_v43, %v681_v47  ;;  %6180 = vmatmul.mubr.bf16.gmra.mrb[36].mxu0 %v7931_v35  ;;  %v6138_v52 = vpop.f32.mrb[10].mxu0  ;;  %v1000_v53 = vrot.slane %v7934_v37, 7  ;;  %v1079_v41 = vsel %vm1040_vm0, %v7867_v62, %v999_v42  ;;  %6417 = vmatprep.subr.bf16.mxu1 %v7278_v32 }
 0x192   : > { %9834 = vst [vmem:[#allocation27_spill] sm:$0xff] %v7947_v48  ;;  %v832_v58 = vadd.f32 %v7850_v46, %v793_v45  ;;  %6183 = vmatprep.mubr.bf16.mxu0 %v7938_v40  ;;  %v794_v60 = vmul.f32 %v6138_v52, %v7845_v43  ;;  %v684_v0 = vpop.f32.mrb[11].mxu0  ;;  %v7967_v1 = vsel %vm1040_vm0, %v1003_v49, %v7867_v62  ;;  %v7289_v52 = vld [vmem:[#allocation8 + $0x28] sm:$0xff]  }
 0x193   : > { %v7971_v3 = vsel %vm1040_vm0, %v1002_v36, %v1003_v49  ;;  %v830_v4 = vadd.f32 %v7850_v46, %v791_v51  ;;  %v792_v5 = vmul.f32 %v7845_v43, %v684_v0  ;;  %v7977_v6 = vsel %vm1040_vm0, %v999_v42, %v1000_v53  ;;  %6228 = vmatpush3.bf16.msra.mxu0 %v7285_v23  ;;  %v7281_v51 = vld [vmem:[#allocation8 + $0x120] sm:$0xff]  }
 0x194   : > { %v7982_v7 = vsel %vm1040_vm0, %v1000_v53, %v7867_v62  ;;  %v7984_v8 = vmax.f32 %v832_v58, 0.0  ;;  %v833_v9 = vadd.f32 %v7850_v46, %v794_v60  ;;  %v2258_v10 = vpack.c.bf16 %v7977_v6, %v1079_v41  ;;  %6418 = vmatpush3.bf16.msra.mxu1 %v7278_v32  ;;  %6229 = vmatprep.subr.bf16.mxu0 %v7286_v50 }
 0x195   : > { %v2259_v11 = vpack.c.bf16 %v7959_v55, %v7982_v7  ;;  %v7990_v12 = vmax.f32 %v830_v4, 0.0  ;;  %v831_v14 = vadd.f32 %v7850_v46, %v792_v5  ;;  %v2260_v15 = vpack.c.bf16 %v7967_v1, %v7971_v3  ;;  %6419 = vmatprep.subr.bf16.mxu1 %v7279_v56 }
 0x196   : > { %v7995_v19 = vmax.f32 %v833_v9, 0.0  ;;  %v1008_v20 = vrot.slane %v7984_v8, 7  ;;  %v7999_v23 = vpack.c.bf16 %v1081_v31, %v7887_v13  ;;  %v8002_v25 = vpack.c.bf16 %v1079_v41, %v7899_v18 }
 0x197   : > { %v8004_v27 = vmax.f32 %v831_v14, 0.0  ;;  %v6141_v29 = vpop.f32.mrb[12].mxu0  ;;  %6372 = vmatmul.mubr.bf16.gmra.mrb[4].mxu1 %v2258_v10  ;;  %v8008_v30 = vpack.c.bf16 %v9685_v61, %v7934_v37  ;;  %v1005_v32 = vrot.slane %v7990_v12, 7  ;;  %6230 = vmatpush3.bf16.msra.mxu0 %v7286_v50 }
 0x198   : > { %9835 = vst [vmem:[#allocation28_spill] sm:$0xff] %v7999_v23  ;;  %9836 = vst [vmem:[#allocation29_spill] sm:$0xff] %v8002_v25  ;;  %v797_v13 = vmul.f32 %v6141_v29, %v7845_v43  ;;  %v697_v31 = vpop.f32.mrb[13].mxu0  ;;  %6375 = vmatprep.mubr.bf16.mxu1 %v2259_v11  ;;  %6420 = vmatpush3.bf16.msra.mxu1 %v7279_v56  ;;  %v1009_v18 = vrot.slane %v7995_v19, 7  ;;  %v8017_v38 = vpack.c.bf16 %v7995_v19, %v7984_v8 }
 0x199   : > { %9837 = vst [vmem:[#allocation30_spill] sm:$0xff] %v8008_v30  ;;  %v795_v42 = vmul.f32 %v7845_v43, %v697_v31  ;;  %6184 = vmatmul.mubr.bf16.gmra.mrb[40].mxu0 %v8008_v30  ;;  %v6142_v45 = vpop.f32.mrb[14].mxu0  ;;  %v1006_v47 = vrot.slane %v8004_v27, 7  ;;  %v8025_v49 = vsel %vm1040_vm0, %v7867_v62, %v1005_v32  ;;  %v8030_v50 = vsel %vm1040_vm0, %v7867_v62, %v1008_v20 }
 0x19a   : > { %9838 = vst [vmem:[#allocation31_spill] sm:$0xff] %v8017_v38  ;;  %6421 = vmatprep.subr.bf16.mxu1 %v7280_v16  ;;  %v836_v53 = vadd.f32 %v7850_v46, %v797_v13  ;;  %6187 = vmatprep.mubr.bf16.mxu0 %v7947_v48  ;;  %v798_v41 = vmul.f32 %v6142_v45, %v7845_v43  ;;  %v700_v56 = vpop.f32.mrb[15].mxu0 }
 0x19b   : > { %v8038_v58 = vsel %vm1040_vm0, %v1009_v18, %v7867_v62  ;;  %v8042_v60 = vsel %vm1040_vm0, %v1008_v20, %v1009_v18  ;;  %v834_v0 = vadd.f32 %v7850_v46, %v795_v42  ;;  %v796_v4 = vmul.f32 %v7845_v43, %v700_v56  ;;  %6231 = vmatprep.subr.bf16.mxu0 %v7288_v34  ;;  %v7283_v18 = vld [vmem:[#allocation8 + $0x128] sm:$0xff]  }
 0x19c   : > { %v8048_v5 = vsel %vm1040_vm0, %v1005_v32, %v1006_v47  ;;  %v8053_v9 = vsel %vm1040_vm0, %v1006_v47, %v7867_v62  ;;  %v8055_v10 = vmax.f32 %v836_v53, 0.0  ;;  %v837_v11 = vadd.f32 %v7850_v46, %v798_v41  ;;  %6422 = vmatpush3.bf16.msra.mxu1 %v7280_v16  ;;  %6232 = vmatpush3.bf16.msra.mxu0 %v7288_v34 }
 0x19d   : > { %v2261_v14 = vpack.c.bf16 %v8048_v5, %v8025_v49  ;;  %v2262_v20 = vpack.c.bf16 %v8030_v50, %v8053_v9  ;;  %v8062_v29 = vmax.f32 %v834_v0, 0.0  ;;  %v835_v32 = vadd.f32 %v7850_v46, %v796_v4  ;;  %6423 = vmatprep.subr.bf16.mxu1 %v7281_v51  ;;  %6233 = vmatprep.subr.bf16.mxu0 %v7289_v52 }
 0x19e   : > { %v8067_v13 = vpack.c.bf16 %v7990_v12, %v9685_v61  ;;  %v2263_v31 = vpack.c.bf16 %v8038_v58, %v8042_v60  ;;  %v8071_v42 = vmax.f32 %v837_v11, 0.0  ;;  %v1014_v45 = vrot.slane %v8055_v10, 7 }
 0x19f   : > { %v8076_v16 = vpack.c.bf16 %v7982_v7, %v7977_v6  ;;  %v8080_v34 = vpack.c.bf16 %v7971_v3, %v7959_v55  ;;  %v8082_v47 = vmax.f32 %v835_v32, 0.0  ;;  %v6145_v53 = vpop.f32.mrb[16].mxu0  ;;  %6376 = vmatmul.mubr.bf16.gmra.mrb[8].mxu1 %v2260_v15  ;;  %v8086_v41 = vpack.c.bf16 %v9685_v61, %v8004_v27  ;;  %v7290_v7 = vld [vmem:[#allocation8 + $0x30] sm:$0xff]  }
 0x1a0   : > { %9839 = vst [vmem:[#allocation32_spill] sm:$0xff] %v8067_v13  ;;  %v1011_v56 = vrot.slane %v8062_v29, 7  ;;  %v801_v0 = vmul.f32 %v6145_v53, %v7845_v43  ;;  %v713_v4 = vpop.f32.mrb[17].mxu0  ;;  %6379 = vmatprep.mubr.bf16.mxu1 %v2261_v14  ;;  %v8092_v6 = vpack.c.bf16 %v8062_v29, %v9685_v61  ;;  %v8096_v55 = vpack.c.bf16 %v8071_v42, %v8055_v10 }
 0x1a1   : > { %9840 = vst [vmem:[#allocation33_spill] sm:$0xff] %v8076_v16  ;;  %9841 = vst [vmem:[#allocation34_spill] sm:$0xff] %v8080_v34  ;;  %v1015_v3 = vrot.slane %v8071_v42, 7  ;;  %6424 = vmatpush3.bf16.msra.mxu1 %v7281_v51  ;;  %v799_v15 = vmul.f32 %v7845_v43, %v713_v4  ;;  %6188 = vmatmul.mubr.bf16.gmra.mrb[44].mxu0 %v8067_v13  ;;  %v6146_v11 = vpop.f32.mrb[18].mxu0  ;;  %v1012_v32 = vrot.slane %v8082_v47, 7  ;;  %v7287_v51 = vld [vmem:[#allocation8 + $0x130] sm:$0xff]  }
 0x1a2   : > { %9842 = vst [vmem:[#allocation35_spill] sm:$0xff] %v8086_v41  ;;  %9843 = vst [vmem:[#allocation36_spill] sm:$0xff] %v8092_v6  ;;  %v8105_v14 = vsel %vm1040_vm0, %v7867_v62, %v1011_v56  ;;  %v8110_v53 = vsel %vm1040_vm0, %v7867_v62, %v1014_v45  ;;  %6425 = vmatprep.subr.bf16.mxu1 %v7283_v18  ;;  %v840_v39 = vadd.f32 %v7850_v46, %v801_v0  ;;  %v716_v36 = vpop.f32.mrb[19].mxu0 }
 0x1a3   : > { %9844 = vst [vmem:[#allocation37_spill] sm:$0xff] %v8096_v55  ;;  %6191 = vmatprep.mubr.bf16.mxu0 %v8086_v41  ;;  %v802_v4 = vmul.f32 %v6146_v11, %v7845_v43  ;;  %v8118_v26 = vsel %vm1040_vm0, %v1015_v3, %v7867_v62  ;;  %v8122_v44 = vsel %vm1040_vm0, %v1014_v45, %v1015_v3 }
 0x1a4   : > { %v838_v61 = vadd.f32 %v7850_v46, %v799_v15  ;;  %v800_v13 = vmul.f32 %v7845_v43, %v716_v36  ;;  %v8128_v0 = vsel %vm1040_vm0, %v1011_v56, %v1012_v32  ;;  %v8133_v11 = vsel %vm1040_vm0, %v1012_v32, %v7867_v62  ;;  %6234 = vmatpush3.bf16.msra.mxu0 %v7289_v52  ;;  %v7292_v52 = vld [vmem:[#allocation8 + $0x38] sm:$0xff]  }
 0x1a5   : > { %v8135_v41 = vmax.f32 %v840_v39, 0.0  ;;  %v841_v48 = vadd.f32 %v7850_v46, %v802_v4  ;;  %v2264_v45 = vpack.c.bf16 %v8128_v0, %v8105_v14  ;;  %6426 = vmatpush3.bf16.msra.mxu1 %v7283_v18  ;;  %6235 = vmatprep.subr.bf16.mxu0 %v7290_v7  ;;  %v7291_v39 = vld [vmem:[#allocation8 + $0x138] sm:$0xff]   ;;  %v8154_v18 = vpack.c.bf16 %v8025_v49, %v7967_v1 }
 0x1a6   : > { %v8142_v56 = vmax.f32 %v838_v61, 0.0  ;;  %v839_v3 = vadd.f32 %v7850_v46, %v800_v13  ;;  %6427 = vmatprep.subr.bf16.mxu1 %v7287_v51  ;;  %v8158_v61 = vpack.c.bf16 %v8053_v9, %v8048_v5  ;;  %v9863_v22 = vpack.c.bf16 %v8118_v26, %v8122_v44 }
 0x1a7   : > { %v8149_v32 = vmax.f32 %v841_v48, 0.0  ;;  %v1020_v4 = vrot.slane %v8135_v41, 7  ;;  %9845 = vst [vmem:[#allocation38_spill] sm:$0xff] %v8154_v18  ;;  %6380 = vmatmul.mubr.bf16.gmra.mrb[12].mxu1 %v2262_v20  ;;  %v6149_v15 = vpop.f32.mrb[20].mxu0 }
 0x1a8   : > { %9846 = vst [vmem:[#allocation39_spill] sm:$0xff] %v8158_v61  ;;  %v8160_v13 = vmax.f32 %v839_v3, 0.0  ;;  %v1017_v36 = vrot.slane %v8142_v56, 7  ;;  %6236 = vmatpush3.bf16.msra.mxu0 %v7290_v7  ;;  %6383 = vmatprep.mubr.bf16.mxu1 %v2263_v31  ;;  %v805_v48 = vmul.f32 %v6149_v15, %v7845_v43  ;;  %v729_v30 = vpop.f32.mrb[21].mxu0  ;;  %v8182_v7 = vld [vmem:[#allocation8 + $0x140] sm:$0xff]  }
 0x1a9   : > { %v1021_v40 = vrot.slane %v8149_v32, 7  ;;  %v8167_v1 = vpack.c.bf16 %v8149_v32, %v8135_v41  ;;  %6428 = vmatpush3.bf16.msra.mxu1 %v7287_v51  ;;  %6192 = vmatmul.mubr.bf16.gmra.mrb[48].mxu0 %v8017_v38  ;;  %v803_v49 = vmul.f32 %v7845_v43, %v729_v30  ;;  %v6150_v5 = vpop.f32.mrb[22].mxu0  ;;  %v8180_v31 = vsel %vm1040_vm0, %v7867_v62, %v1020_v4  ;;  %v8184_v51 = vld [vmem:[#allocation8 + $0x80] sm:$0xff]  }
 0x1aa   : > { %v1018_v9 = vrot.slane %v8160_v13, 7  ;;  %v8175_v20 = vsel %vm1040_vm0, %v7867_v62, %v1017_v36  ;;  %6429 = vmatprep.subr.bf16.mxu1 %v7291_v39  ;;  %9848 = vst [vmem:[#allocation41_spill] sm:$0xff] %v8182_v7  ;;  %9849 = vst [vmem:[#allocation42_spill] sm:$0xff] %v8184_v51  ;;  %6195 = vmatprep.mubr.bf16.mxu0 %v8092_v6  ;;  %v844_v30 = vadd.f32 %v7850_v46, %v805_v48  ;;  %v732_v15 = vpop.f32.mrb[23].mxu0 }
 0x1ab   : > { %9847 = vst [vmem:[#allocation40_spill] sm:$0xff] %v8167_v1  ;;  %v806_v3 = vmul.f32 %v6150_v5, %v7845_v43  ;;  %v8192_v38 = vsel %vm1040_vm0, %v1021_v40, %v7867_v62  ;;  %v8196_v35 = vsel %vm1040_vm0, %v1020_v4, %v1021_v40  ;;  %v842_v61 = vadd.f32 %v7850_v46, %v803_v49 }
 0x1ac   : > { %v804_v18 = vmul.f32 %v7845_v43, %v732_v15  ;;  %v8202_v6 = vsel %vm1040_vm0, %v1017_v36, %v1018_v9  ;;  %v8207_v48 = vsel %vm1040_vm0, %v1018_v9, %v7867_v62  ;;  %6237 = vmatprep.subr.bf16.mxu0 %v7292_v52  ;;  %v8209_v5 = vmax.f32 %v844_v30, 0.0 }
 0x1ad   : > { %v845_v34 = vadd.f32 %v7850_v46, %v806_v3  ;;  %v2267_v40 = vpack.c.bf16 %v8202_v6, %v8175_v20  ;;  %6430 = vmatpush3.bf16.msra.mxu1 %v7291_v39  ;;  %6238 = vmatpush3.bf16.msra.mxu0 %v7292_v52  ;;  %v8216_v36 = vmax.f32 %v842_v61, 0.0  ;;  %v8228_v15 = vpack.c.bf16 %v8042_v60, %v8030_v50 }
 0x1ae   : > { %9850 = vst [vmem:[#allocation43_spill] sm:$0xff] %v8209_v5  ;;  %v843_v49 = vadd.f32 %v7850_v46, %v804_v18  ;;  %6479 = vmatprep.subr.bf16.mxu1 %v8182_v7  ;;  %6287 = vmatprep.subr.bf16.mxu0 %v8184_v51  ;;  %v1026_v3 = vrot.slane %v8209_v5, 7  ;;  %v8232_v39 = vpack.c.bf16 %v8105_v14, %v8038_v58  ;;  %v9854_v52 = vmov 0.0  }
 0x1af   : > { %v8223_v30 = vmax.f32 %v845_v34, 0.0  ;;  %9852 = vst [vmem:[#allocation45_spill] sm:$0xff] %v8228_v15  ;;  %6384 = vmatmul.mubr.bf16.gmra.mrb[16].mxu1 %v2264_v45  ;;  %v8236_v18 = vpack.c.bf16 %v9854_v52, %v8082_v47  ;;  %v6153_v9 = vpop.f32.mrb[24].mxu0  ;;  %v1023_v34 = vrot.slane %v8216_v36, 7  ;;  %v9856_v50 = vpack.c.bf16 %v8110_v53, %v8133_v11 }
 0x1b0   : > { %9853 = vst [vmem:[#allocation46_spill] sm:$0xff] %v8232_v39  ;;  %v8238_v61 = vmax.f32 %v843_v49, 0.0  ;;  %v809_v58 = vmul.f32 %v6153_v9, %v7845_v43  ;;  %v745_v60 = vpop.f32.mrb[25].mxu0  ;;  %v8263_v9 = vsel %vm1040_vm0, %v7867_v62, %v1026_v3  ;;  %v2586_v54 = vpack.c.bf16 %v7860_v57, %v9854_v52 }
 0x1b1   : > { %9851 = vst [vmem:[#allocation44_spill] sm:$0xff] %v8223_v30  ;;  %9855 = vst [vmem:[#allocation47_spill] sm:$0xff] %v8236_v18  ;;  %6387 = vmatprep.mubr.bf16.mxu1 %v9856_v50  ;;  %v8249_v14 = vpack.c.bf16 %v8223_v30, %v8209_v5  ;;  %v1027_v45 = vrot.slane %v8223_v30, 7  ;;  %6196 = vmatmul.mubr.bf16.gmra.mrb[52].mxu0 %v8236_v18  ;;  %v807_v49 = vmul.f32 %v7845_v43, %v745_v60  ;;  %v6154_v39 = vpop.f32.mrb[26].mxu0 }
 0x1b2   : > { %v1024_v4 = vrot.slane %v8238_v61, 7  ;;  %v8258_v50 = vsel %vm1040_vm0, %v7867_v62, %v1023_v34  ;;  %6199 = vmatprep.mubr.bf16.mxu0 %v8096_v55  ;;  %v848_v15 = vadd.f32 %v7850_v46, %v809_v58  ;;  %v810_v18 = vmul.f32 %v6154_v39, %v7845_v43  ;;  %v748_v60 = vpop.f32.mrb[27].mxu0 }
 0x1b3   : > { %9857 = vst [vmem:[#allocation48_spill] sm:$0xff] %v8249_v14  ;;  %v8271_v16 = vsel %vm1040_vm0, %v1027_v45, %v7867_v62  ;;  %v8275_v25 = vsel %vm1040_vm0, %v1026_v3, %v1027_v45  ;;  %v846_v23 = vadd.f32 %v7850_v46, %v807_v49  ;;  %v808_v7 = vmul.f32 %v7845_v43, %v748_v60 }
 0x1b4   : > { %v8281_v55 = vsel %vm1040_vm0, %v1023_v34, %v1024_v4  ;;  %v8286_v39 = vsel %vm1040_vm0, %v1024_v4, %v7867_v62  ;;  %v8288_v58 = vmax.f32 %v848_v15, 0.0  ;;  %v849_v51 = vadd.f32 %v7850_v46, %v810_v18 }
 0x1b5   : > { %v8295_v49 = vmax.f32 %v846_v23, 0.0  ;;  %v847_v34 = vadd.f32 %v7850_v46, %v808_v7  ;;  %v8300_v60 = vpack.c.bf16 %v8142_v56, %v9854_v52  ;;  %v8309_v3 = vpack.c.bf16 %v8133_v11, %v8128_v0 }
 0x1b6   : > { %9858 = vst [vmem:[#allocation49_spill] sm:$0xff] %v8288_v58  ;;  %v8304_v15 = vmax.f32 %v849_v51, 0.0  ;;  %v1032_v18 = vrot.slane %v8288_v58, 7  ;;  %v8313_v23 = vpack.c.bf16 %v8122_v44, %v8110_v53  ;;  %v8322_v51 = vpack.c.bf16 %v9854_v52, %v8160_v13 }
 0x1b7   : > { %9859 = vst [vmem:[#allocation50_spill] sm:$0xff] %v8300_v60  ;;  %9861 = vst [vmem:[#allocation52_spill] sm:$0xff] %v8309_v3  ;;  %v8315_v7 = vmax.f32 %v847_v34, 0.0  ;;  %v6157_v45 = vpop.f32.mrb[28].mxu0  ;;  %6388 = vmatmul.mubr.bf16.gmra.mrb[20].mxu1 %v9863_v22  ;;  %v1029_v4 = vrot.slane %v8295_v49, 7 }
 0x1b8   : > { %9860 = vst [vmem:[#allocation51_spill] sm:$0xff] %v8304_v15  ;;  %9862 = vst [vmem:[#allocation53_spill] sm:$0xff] %v8313_v23  ;;  %v813_v0 = vmul.f32 %v6157_v45, %v7845_v43  ;;  %v761_v11 = vpop.f32.mrb[29].mxu0  ;;  %6391 = vmatprep.mubr.bf16.mxu1 %v2267_v40  ;;  %v8329_v53 = vsel %vm1040_vm0, %v7867_v62, %v1032_v18  ;;  %v1033_v34 = vrot.slane %v8304_v15, 7 }
 0x1b9   : > { %9864 = vst [vmem:[#allocation54_spill] sm:$0xff] %v8322_v51  ;;  %v8334_v22 = vpack.c.bf16 %v8304_v15, %v8288_v58  ;;  %v811_v44 = vmul.f32 %v7845_v43, %v761_v11  ;;  %v6158_v23 = vpop.f32.mrb[30].mxu0  ;;  %6200 = vmatmul.mubr.bf16.gmra.mrb[56].mxu0 %v8300_v60  ;;  %v8340_v45 = vpack.c.bf16 %v8216_v36, %v9854_v52  ;;  %v1030_v40 = vrot.slane %v8315_v7, 7 }
 0x1ba   : > { %v8346_v3 = vsel %vm1040_vm0, %v7867_v62, %v1029_v4  ;;  %v852_v21 = vadd.f32 %v7850_v46, %v813_v0  ;;  %v814_v17 = vmul.f32 %v6158_v23, %v7845_v43  ;;  %6203 = vmatprep.mubr.bf16.mxu0 %v8322_v51  ;;  %v764_v11 = vpop.f32.mrb[31].mxu0  ;;  %v8354_v60 = vsel %vm1040_vm0, %v1033_v34, %v7867_v62 }
 0x1bb   : > { %9865 = vst [vmem:[#allocation55_spill] sm:$0xff] %v8334_v22  ;;  %9866 = vst [vmem:[#allocation56_spill] sm:$0xff] %v8340_v45  ;;  %v8358_v15 = vsel %vm1040_vm0, %v1032_v18, %v1033_v34  ;;  %v850_v58 = vadd.f32 %v7850_v46, %v811_v44  ;;  %v812_v30 = vmul.f32 %v7845_v43, %v764_v11  ;;  %v1690_v34 = vrot.slane %v7860_v57, 1  ;;  %v7304_v57 = vld [vmem:[#allocation8 + $0xa0] sm:$0xff]  }
 0x1bc   : > { %v8364_v0 = vsel %vm1040_vm0, %v1029_v4, %v1030_v40  ;;  %v8369_v23 = vsel %vm1040_vm0, %v1030_v40, %v7867_v62  ;;  %v8371_v51 = vmax.f32 %v852_v21, 0.0  ;;  %v853_v5 = vadd.f32 %v7850_v46, %v814_v17 }
 0x1bd   : > { %v8378_v43 = vmax.f32 %v850_v58, 0.0  ;;  %v851_v4 = vadd.f32 %v7850_v46, %v812_v30  ;;  %v8390_v11 = vpack.c.bf16 %v8175_v20, %v8118_v26  ;;  %v8394_v58 = vpack.c.bf16 %v8207_v48, %v8202_v6 }
 0x1be   : > { %9867 = vst [vmem:[#allocation57_spill] sm:$0xff] %v8371_v51  ;;  %v8385_v21 = vmax.f32 %v853_v5, 0.0  ;;  %v2204_v17 = vrot.slane %v8371_v51, 7  ;;  %v9871_v46 = vpack.c.bf16 %v8180_v31, %v8207_v48  ;;  %v8403_v5 = vrot.slane %v9854_v52, 1 }
 0x1bf   : > { %9869 = vst [vmem:[#allocation59_spill] sm:$0xff] %v8390_v11  ;;  %9870 = vst [vmem:[#allocation60_spill] sm:$0xff] %v8394_v58  ;;  %v8399_v30 = vmax.f32 %v851_v4, 0.0  ;;  %v1035_v40 = vrot.slane %v8378_v43, 7  ;;  %v9872_v26 = vpack.c.bf16 %v8192_v38, %v8196_v35  ;;  %v8417_v48 = vpack.c.bf16 %v7867_v62, %v7867_v62 }
 0x1c0   : > { %9868 = vst [vmem:[#allocation58_spill] sm:$0xff] %v8385_v21  ;;  %6392 = vmatmul.mubr.bf16.gmra.mrb[24].mxu1 %v9871_v46  ;;  %v8412_v6 = vsel %vm1040_vm0, %v7867_v62, %v2204_v17  ;;  %v2205_v20 = vrot.slane %v8385_v21, 7  ;;  %v8421_v4 = vpack.c.bf16 %v8196_v35, %v8180_v31  ;;  %v8432_v44 = vpack.c.bf16 %v8258_v50, %v8192_v38 }
 0x1c1   : > { %6395 = vmatprep.mubr.bf16.mxu1 %v9872_v26  ;;  %9873 = vst [vmem:[#allocation61_spill] sm:$0xff] %v8412_v6  ;;  %9874 = vst [vmem:[#allocation62_spill] sm:$0xff] %v8417_v48  ;;  %6204 = vmatmul.mubr.bf16.gmra.mrb[60].mxu0 %v8167_v1  ;;  %v1036_v46 = vrot.slane %v8399_v30, 7  ;;  %v8428_v26 = vsel %vm1040_vm0, %v7867_v62, %v1035_v40  ;;  %v1687_v1 = vrot.slane %v7863_v59, 1 }
 0x1c2   : > { %9875 = vst [vmem:[#allocation63_spill] sm:$0xff] %v8421_v4  ;;  %9876 = vst [vmem:[#allocation64_spill] sm:$0xff] %v8432_v44  ;;  %6207 = vmatprep.mubr.bf16.mxu0 %v8340_v45  ;;  %v8439_v35 = vsel %vm1040_vm0, %v2205_v20, %v7867_v62  ;;  %v8443_v31 = vsel %vm1040_vm0, %v2204_v17, %v2205_v20  ;;  %v8461_v17 = vpack.c.bf16 %v8286_v39, %v8281_v55 }
 0x1c3   : > { %9877 = vst [vmem:[#allocation65_spill] sm:$0xff] %v8439_v35  ;;  %9878 = vst [vmem:[#allocation66_spill] sm:$0xff] %v8443_v31  ;;  %v8450_v38 = vsel %vm1040_vm0, %v1035_v40, %v1036_v46  ;;  %v8455_v45 = vsel %vm1040_vm0, %v1036_v46, %v7867_v62  ;;  %v1691_v20 = vrot.slane %v7869_v63, 1  ;;  %v8470_v4 = vpack.c.bf16 %v8275_v25, %v8263_v9 }
 0x1c4   : > { %9879 = vst [vmem:[#allocation67_spill] sm:$0xff] %v8461_v17  ;;  %v8474_v46 = vpack.c.bf16 %v9854_v52, %v8238_v61  ;;  %v8480_v17 = vpack.c.bf16 %v8346_v3, %v8271_v16  ;;  %v8484_v18 = vpack.c.bf16 %v8369_v23, %v8364_v0  ;;  %v8488_v40 = vpack.c.bf16 %v8295_v49, %v9854_v52 }
 0x1c5   : > { %9880 = vst [vmem:[#allocation68_spill] sm:$0xff] %v8470_v4  ;;  %v8492_v4 = vpack.c.bf16 %v8358_v15, %v8329_v53  ;;  %v8496_v58 = vpack.c.bf16 %v8428_v26, %v8354_v60  ;;  %v8509_v11 = vpack.c.bf16 %v8378_v43, %v9854_v52  ;;  %v8530_v44 = vsel %vm1732_vm1, %v1690_v34, %v1691_v20 }
 0x1c6   : > { %9881 = vst [vmem:[#allocation69_spill] sm:$0xff] %v8474_v46  ;;  %9882 = vst [vmem:[#allocation70_spill] sm:$0xff] %v8480_v17  ;;  %v9887_v17 = vpack.c.bf16 %v8281_v55, %v8258_v50  ;;  %v9892_v55 = vpack.c.bf16 %v8263_v9, %v8286_v39  ;;  %v1688_v50 = vrot.slane %v7875_v2, 1  ;;  %v8535_v63 = vsel %vm1732_vm1, %v8403_v5, %v1690_v34 }
 0x1c7   : > { %9883 = vst [vmem:[#allocation71_spill] sm:$0xff] %v8484_v18  ;;  %9884 = vst [vmem:[#allocation72_spill] sm:$0xff] %v8488_v40  ;;  %v8505_v18 = vpack.c.bf16 %v9854_v52, %v8315_v7  ;;  %v1693_v39 = vrot.slane %v7919_v28, 1 }
 0x1c8   : > { %9885 = vst [vmem:[#allocation73_spill] sm:$0xff] %v8492_v4  ;;  %9886 = vst [vmem:[#allocation74_spill] sm:$0xff] %v8496_v58  ;;  %6396 = vmatmul.mubr.bf16.gmra.mrb[28].mxu1 %v9887_v17  ;;  %v8513_v4 = vpack.c.bf16 %v9854_v52, %v8399_v30  ;;  %v8517_v58 = vpack.c.bf16 %v8455_v45, %v8450_v38  ;;  %v8526_v17 = vsel %vm1732_vm1, %v8403_v5, %v1687_v1 }
 0x1c9   : > { %9888 = vst [vmem:[#allocation75_spill] sm:$0xff] %v8505_v18  ;;  %9889 = vst [vmem:[#allocation76_spill] sm:$0xff] %v8509_v11  ;;  %6399 = vmatprep.mubr.bf16.mxu1 %v9892_v55  ;;  %6208 = vmatmul.mubr.bf16.gmra.mrb[64].mxu0 %v8474_v46  ;;  %v8544_v55 = vsel %vm1732_vm1, %v1691_v20, %v8403_v5  ;;  %v8551_v34 = vsel %vm1732_vm1, %v1688_v50, %v8403_v5  ;;  %v1696_v20 = vrot.slane %v7912_v24, 1 }
 0x1ca   : > { %9890 = vst [vmem:[#allocation77_spill] sm:$0xff] %v8513_v4  ;;  %9891 = vst [vmem:[#allocation78_spill] sm:$0xff] %v8517_v58  ;;  %v1694_v58 = vrot.slane %v7934_v37, 1  ;;  %6211 = vmatprep.mubr.bf16.mxu0 %v8249_v14  ;;  %v8555_v46 = vsel %vm1732_vm1, %v1687_v1, %v1688_v50  ;;  %v8559_v9 = vpack.c.bf16 %v8544_v55, %v8530_v44  ;;  %v1697_v14 = vrot.slane %v7926_v33, 1 }
 0x1cb   : > { %9893 = vst [vmem:[#allocation79_spill] sm:$0xff] %v8530_v44  ;;  %9894 = vst [vmem:[#allocation80_spill] sm:$0xff] %v8535_v63  ;;  %v8571_v1 = vsel %vm1732_vm1, %v8403_v5, %v1693_v39  ;;  %v8594_v50 = vsel %vm1732_vm1, %v8403_v5, %v1696_v20  ;;  %v1700_v44 = vrot.slane %v8004_v27, 1 }
 0x1cc   : > { %9895 = vst [vmem:[#allocation81_spill] sm:$0xff] %v8544_v55  ;;  %9896 = vst [vmem:[#allocation82_spill] sm:$0xff] %v8559_v9  ;;  %v8577_v9 = vsel %vm1732_vm1, %v1693_v39, %v1694_v58  ;;  %v8582_v28 = vsel %vm1732_vm1, %v1694_v58, %v8403_v5  ;;  %v1699_v39 = vrot.slane %v7990_v12, 1  ;;  %v8599_v58 = vsel %vm1732_vm1, %v1696_v20, %v1697_v14 }
 0x1cd   : > { %9897 = vst [vmem:[#allocation83_spill] sm:$0xff] %v8571_v1  ;;  %9898 = vst [vmem:[#allocation84_spill] sm:$0xff] %v8577_v9  ;;  %v8587_v37 = vpack.c.bf16 %v8577_v9, %v8571_v1  ;;  %v8603_v55 = vpack.c.bf16 %v8594_v50, %v8582_v28  ;;  %v9902_v9 = vpack.c.bf16 %v8271_v16, %v8275_v25  ;;  %v1703_v1 = vrot.slane %v7995_v19, 1 }
 0x1ce   : > { %9899 = vst [vmem:[#allocation85_spill] sm:$0xff] %v8582_v28  ;;  %v9903_v28 = vpack.c.bf16 %v8364_v0, %v8346_v3  ;;  %v8634_v16 = vsel %vm1732_vm1, %v1700_v44, %v8403_v5  ;;  %v1705_v25 = vrot.slane %v8062_v29, 1 }
 0x1cf   : > { %9900 = vst [vmem:[#allocation86_spill] sm:$0xff] %v8587_v37  ;;  %9901 = vst [vmem:[#allocation87_spill] sm:$0xff] %v8603_v55  ;;  %v8608_v37 = vsel %vm1732_vm1, %v1697_v14, %v8403_v5  ;;  %v8623_v55 = vsel %vm1732_vm1, %v8403_v5, %v1699_v39  ;;  %v1702_v14 = vrot.slane %v7984_v8, 1  ;;  %v8666_v3 = vsel %vm1732_vm1, %v1703_v1, %v8403_v5 }
 0x1d0   : > { %6400 = vmatmul.mubr.bf16.gmra.mrb[32].mxu1 %v9902_v9  ;;  %v8618_v20 = vpack.c.bf16 %v8608_v37, %v8599_v58  ;;  %v8638_v9 = vsel %vm1732_vm1, %v1699_v39, %v1700_v44  ;;  %9909 = vst [vmem:[#allocation93_spill] sm:$0xff] %v8666_v3 }
 0x1d1   : > { %6403 = vmatprep.mubr.bf16.mxu1 %v9903_v28  ;;  %9904 = vst [vmem:[#allocation88_spill] sm:$0xff] %v8638_v9  ;;  %6212 = vmatmul.mubr.bf16.gmra.mrb[68].mxu0 %v8488_v40  ;;  %v8646_v28 = vpack.c.bf16 %v8638_v9, %v8623_v55  ;;  %v8651_v0 = vsel %vm1732_vm1, %v8403_v5, %v1702_v14  ;;  %v1706_v40 = vrot.slane %v8082_v47, 1 }
 0x1d2   : > { %9906 = vst [vmem:[#allocation90_spill] sm:$0xff] %v8651_v0  ;;  %6215 = vmatprep.mubr.bf16.mxu0 %v8505_v18  ;;  %v8657_v44 = vpack.c.bf16 %v8651_v0, %v8634_v16  ;;  %v8661_v39 = vsel %vm1732_vm1, %v1702_v14, %v1703_v1  ;;  %v8674_v18 = vsel %vm1732_vm1, %v8403_v5, %v1705_v25  ;;  %v1708_v14 = vrot.slane %v8055_v10, 1 }
 0x1d3   : > { %9905 = vst [vmem:[#allocation89_spill] sm:$0xff] %v8646_v28  ;;  %9908 = vst [vmem:[#allocation92_spill] sm:$0xff] %v8661_v39  ;;  %v8685_v9 = vsel %vm1732_vm1, %v1705_v25, %v1706_v40  ;;  %v8690_v28 = vsel %vm1732_vm1, %v1706_v40, %v8403_v5  ;;  %v1709_v0 = vrot.slane %v8071_v42, 1  ;;  %v1711_v25 = vrot.slane %v8142_v56, 1 }
 0x1d4   : > { %9907 = vst [vmem:[#allocation91_spill] sm:$0xff] %v8657_v44  ;;  %9910 = vst [vmem:[#allocation94_spill] sm:$0xff] %v8674_v18  ;;  %v8678_v44 = vpack.c.bf16 %v8666_v3, %v8661_v39  ;;  %v8695_v39 = vpack.c.bf16 %v8685_v9, %v8674_v18  ;;  %v8702_v1 = vsel %vm1732_vm1, %v8403_v5, %v1708_v14  ;;  %v1715_v18 = vrot.slane %v8149_v32, 1 }
 0x1d5   : > { %9912 = vst [vmem:[#allocation96_spill] sm:$0xff] %v8685_v9  ;;  %9913 = vst [vmem:[#allocation97_spill] sm:$0xff] %v8690_v28  ;;  %v8707_v40 = vsel %vm1732_vm1, %v1708_v14, %v1709_v0  ;;  %v8711_v3 = vpack.c.bf16 %v8702_v1, %v8690_v28  ;;  %v9917_v9 = vpack.c.bf16 %v8329_v53, %v8369_v23  ;;  %v1717_v53 = vrot.slane %v8216_v36, 1 }
 0x1d6   : > { %9911 = vst [vmem:[#allocation95_spill] sm:$0xff] %v8678_v44  ;;  %9914 = vst [vmem:[#allocation98_spill] sm:$0xff] %v8695_v39  ;;  %v8716_v39 = vsel %vm1732_vm1, %v1709_v0, %v8403_v5  ;;  %v1712_v44 = vrot.slane %v8160_v13, 1  ;;  %v1714_v0 = vrot.slane %v8135_v41, 1  ;;  %v9919_v28 = vpack.c.bf16 %v8354_v60, %v8358_v15 }
 0x1d7   : > { %9915 = vst [vmem:[#allocation99_spill] sm:$0xff] %v8711_v3  ;;  %9916 = vst [vmem:[#allocation100_spill] sm:$0xff] %v8716_v39  ;;  %v8726_v14 = vpack.c.bf16 %v8716_v39, %v8707_v40  ;;  %v8731_v3 = vsel %vm1732_vm1, %v8403_v5, %v1711_v25  ;;  %v8774_v60 = vsel %vm1732_vm1, %v1715_v18, %v8403_v5 }
 0x1d8   : > { %6404 = vmatmul.mubr.bf16.gmra.mrb[36].mxu1 %v9917_v9  ;;  %9918 = vst [vmem:[#allocation101_spill] sm:$0xff] %v8731_v3  ;;  %v8742_v23 = vsel %vm1732_vm1, %v1712_v44, %v8403_v5  ;;  %v8746_v9 = vsel %vm1732_vm1, %v1711_v25, %v1712_v44  ;;  %v8769_v25 = vsel %vm1732_vm1, %v1714_v0, %v1715_v18  ;;  %9926 = vst [vmem:[#allocation108_spill] sm:$0xff] %v8774_v60 }
 0x1d9   : > { %6407 = vmatprep.mubr.bf16.mxu1 %v9919_v28  ;;  %9920 = vst [vmem:[#allocation102_spill] sm:$0xff] %v8742_v23  ;;  %9921 = vst [vmem:[#allocation103_spill] sm:$0xff] %v8746_v9  ;;  %6216 = vmatmul.mubr.bf16.gmra.mrb[72].mxu0 %v8334_v22  ;;  %v8754_v15 = vpack.c.bf16 %v8746_v9, %v8731_v3  ;;  %v8759_v28 = vsel %vm1732_vm1, %v8403_v5, %v1714_v0  ;;  %v1718_v22 = vrot.slane %v8238_v61, 1  ;;  %v9929_v0 = vld [vmem:[#allocation43_spill] sm:$0xff] }
 0x1da   : > { %9923 = vst [vmem:[#allocation105_spill] sm:$0xff] %v8759_v28  ;;  %6219 = vmatprep.mubr.bf16.mxu0 %v8509_v11  ;;  %v8765_v44 = vpack.c.bf16 %v8759_v28, %v8742_v23  ;;  %9925 = vst [vmem:[#allocation107_spill] sm:$0xff] %v8769_v25  ;;  %v8782_v11 = vsel %vm1732_vm1, %v8403_v5, %v1717_v53  ;;  %v1720_v9 = vrot.slane %v9929_v0, 1  ;;  %v9932_v28 = vld [vmem:[#allocation44_spill] sm:$0xff] }
 0x1db   : > { %9922 = vst [vmem:[#allocation104_spill] sm:$0xff] %v8754_v15  ;;  %9927 = vst [vmem:[#allocation109_spill] sm:$0xff] %v8782_v11  ;;  %v8793_v23 = vsel %vm1732_vm1, %v1717_v53, %v1718_v22  ;;  %v8798_v15 = vsel %vm1732_vm1, %v1718_v22, %v8403_v5  ;;  %v1721_v39 = vrot.slane %v9932_v28, 1  ;;  %v1723_v53 = vrot.slane %v8295_v49, 1 }
 0x1dc   : > { %9924 = vst [vmem:[#allocation106_spill] sm:$0xff] %v8765_v44  ;;  %v8786_v44 = vpack.c.bf16 %v8774_v60, %v8769_v25  ;;  %9930 = vst [vmem:[#allocation43_spill] sm:$0xff] %v8793_v23  ;;  %v8803_v25 = vpack.c.bf16 %v8793_v23, %v8782_v11  ;;  %v8810_v18 = vsel %vm1732_vm1, %v8403_v5, %v1720_v9  ;;  %v9942_v11 = vld [vmem:[#allocation51_spill] sm:$0xff] }
 0x1dd   : > { %9931 = vst [vmem:[#allocation111_spill] sm:$0xff] %v8798_v15  ;;  %v8815_v22 = vsel %vm1732_vm1, %v1720_v9, %v1721_v39  ;;  %v8819_v60 = vpack.c.bf16 %v8810_v18, %v8798_v15  ;;  %v9936_v23 = vpack.c.bf16 %v8450_v38, %v8428_v26  ;;  %v9939_v3 = vpack.c.bf16 %v8412_v6, %v8455_v45  ;;  %v9955_v6 = vld [vmem:[#allocation22_spill] sm:$0xff] }
 0x1de   : > { %9928 = vst [vmem:[#allocation110_spill] sm:$0xff] %v8786_v44  ;;  %9933 = vst [vmem:[#allocation44_spill] sm:$0xff] %v8803_v25  ;;  %v8824_v25 = vsel %vm1732_vm1, %v1721_v39, %v8403_v5  ;;  %v1724_v44 = vrot.slane %v8315_v7, 1  ;;  %v9938_v39 = vld [vmem:[#allocation49_spill] sm:$0xff] }
 0x1df   : > { %9934 = vst [vmem:[#allocation112_spill] sm:$0xff] %v8819_v60  ;;  %9935 = vst [vmem:[#allocation113_spill] sm:$0xff] %v8824_v25  ;;  %v8834_v9 = vpack.c.bf16 %v8824_v25, %v8815_v22  ;;  %v8839_v60 = vsel %vm1732_vm1, %v8403_v5, %v1723_v53  ;;  %v1726_v15 = vrot.slane %v9938_v39, 1  ;;  %v1729_v25 = vrot.slane %v8378_v43, 1 }
 0x1e0   : > { %6408 = vmatmul.mubr.bf16.gmra.mrb[40].mxu1 %v9936_v23  ;;  %v8850_v38 = vsel %vm1732_vm1, %v1724_v44, %v8403_v5  ;;  %v8854_v23 = vsel %vm1732_vm1, %v1723_v53, %v1724_v44 }
 0x1e1   : > { %9937 = vst [vmem:[#allocation114_spill] sm:$0xff] %v8834_v9  ;;  %6411 = vmatprep.mubr.bf16.mxu1 %v9939_v3  ;;  %9940 = vst [vmem:[#allocation49_spill] sm:$0xff] %v8850_v38  ;;  %v1727_v9 = vrot.slane %v9942_v11, 1  ;;  %6220 = vmatmul.mubr.bf16.gmra.mrb[76].mxu0 %v8513_v4  ;;  %v8862_v3 = vpack.c.bf16 %v8854_v23, %v8839_v60  ;;  %v8867_v26 = vsel %vm1732_vm1, %v8403_v5, %v1726_v15 }
 0x1e2   : > { %9941 = vst [vmem:[#allocation115_spill] sm:$0xff] %v8854_v23  ;;  %9944 = vst [vmem:[#allocation116_spill] sm:$0xff] %v8867_v26  ;;  %6239 = vmatprep.mubr.bf16.mxu0 %v8417_v48  ;;  %v8873_v44 = vpack.c.bf16 %v8867_v26, %v8850_v38  ;;  %v1730_v4 = vrot.slane %v8399_v30, 1  ;;  %v8890_v48 = vsel %vm1732_vm1, %v8403_v5, %v1729_v25  ;;  %v2961_v26 = vrot.slane %v8385_v21, 1 }
 0x1e3   : > { %9943 = vst [vmem:[#allocation51_spill] sm:$0xff] %v8862_v3  ;;  %v8877_v53 = vsel %vm1732_vm1, %v1726_v15, %v1727_v9  ;;  %v8882_v45 = vsel %vm1732_vm1, %v1727_v9, %v8403_v5  ;;  %v2960_v15 = vrot.slane %v8371_v51, 1 }
 0x1e4   : > { %9945 = vst [vmem:[#allocation117_spill] sm:$0xff] %v8873_v44  ;;  %9946 = vst [vmem:[#allocation118_spill] sm:$0xff] %v8877_v53  ;;  %v8894_v44 = vpack.c.bf16 %v8882_v45, %v8877_v53  ;;  %v8901_v23 = vsel %vm1732_vm1, %v1729_v25, %v1730_v4  ;;  %v8906_v3 = vsel %vm1732_vm1, %v1730_v4, %v8403_v5  ;;  %v9951_v4 = vld [vmem:[#allocation20_spill] sm:$0xff]  ;;  %v7300_v25 = vld [vmem:[#allocation8 + $0x88] sm:$0xff]  }
 0x1e5   : > { %9947 = vst [vmem:[#allocation119_spill] sm:$0xff] %v8882_v45  ;;  %9949 = vst [vmem:[#allocation121_spill] sm:$0xff] %v8901_v23  ;;  %v8911_v53 = vpack.c.bf16 %v8901_v23, %v8890_v48  ;;  %v8918_v9 = vsel %vm1732_vm1, %v8403_v5, %v2960_v15  ;;  %v1090_v45 = vpack.c.bf16 %v9951_v4, %v7867_v62  ;;  %v9954_v4 = vld [vmem:[#allocation21_spill] sm:$0xff]  ;;  %v7301_v62 = vld [vmem:[#allocation8 + $0x90] sm:$0xff]  }
 0x1e6   : > { %9948 = vst [vmem:[#allocation120_spill] sm:$0xff] %v8894_v44  ;;  %v8926_v38 = vsel %vm1732_vm1, %v2960_v15, %v2961_v26  ;;  %v9952_v23 = vpack.c.bf16 %v8439_v35, %v8443_v31  ;;  %v9956_v15 = vpack.c.bf16 %v9954_v4, %v9955_v6  ;;  %v9957_v31 = vld [vmem:[#allocation42_spill] sm:$0xff]  ;;  %v7302_v44 = vld [vmem:[#allocation8 + $0x98] sm:$0xff]   ;;  %v9960_v6 = vld [vmem:[#allocation28_spill] sm:$0xff] }
 0x1e7   : > { %9950 = vst [vmem:[#allocation122_spill] sm:$0xff] %v8911_v53  ;;  %v8931_v53 = vsel %vm1732_vm1, %v2961_v26, %v8403_v5  ;;  %v9953_v26 = vpack.c.bf16 %v7875_v2, %v7863_v59  ;;  %v7294_v59 = vld [vmem:[#allocation8 + $0x148] sm:$0xff]   ;;  %v9961_v4 = vld [vmem:[#allocation29_spill] sm:$0xff]  ;;  %v9966_v35 = vld [vmem:[#allocation34_spill] sm:$0xff] }
 0x1e8   : > { %6412 = vmatmul.mubr.bf16.gmra.mrb[44].mxu1 %v9952_v23  ;;  %v9958_v2 = vld [vmem:[#allocation19_spill] sm:$0xff]  ;;  %v9965_v23 = vld [vmem:[#allocation33_spill] sm:$0xff] }
 0x1e9   : > { %6431 = vmatprep.mubr.bf16.mxu1 %v9953_v26  ;;  %6240 = vmatmul.mubr.bf16.vlgmr.msra.gmra.mrb[32].mxu0 %v1090_v45  ;;  %v2587_v26 = vpack.c.bf16 %v9854_v52, %v9958_v2  ;;  %v9959_v45 = vld [vmem:[#allocation41_spill] sm:$0xff]  ;;  %v9963_v2 = vld [vmem:[#allocation23_spill] sm:$0xff] }
 0x1ea   : > { %6243 = vmatprep.mubr.bf16.mxu0 %v9956_v15  ;;  %6288 = vmatpush3.bf16.msra.mxu0 %v9957_v31  ;;  %v7295_v31 = vld [vmem:[#allocation8 + $0x150] sm:$0xff]   ;;  %v7296_v15 = vld [vmem:[#allocation8 + $0x158] sm:$0xff]  }
 0x1eb   : > { %6289 = vmatprep.subr.bf16.mxu0 %v7300_v25 }
 0x1ee   : > { %6290 = vmatpush3.bf16.msra.mxu0 %v7300_v25  ;;  %v2589_v25 = vpack.c.bf16 %v7912_v24, %v9854_v52  ;;  %v2590_v24 = vpack.c.bf16 %v9854_v52, %v7926_v33  ;;  %v2592_v33 = vpack.c.bf16 %v7984_v8, %v9854_v52  ;;  %v2595_v8 = vpack.c.bf16 %v8055_v10, %v9854_v52  ;;  %v9977_v10 = vld [vmem:[#allocation60_spill] sm:$0xff] }
 0x1ef   : > { %6291 = vmatprep.subr.bf16.mxu0 %v7301_v62 }
 0x1f0   : > { %6432 = vmatmul.mubr.bf16.vlgmr.msra.gmra.mrb[0].mxu1 %v2586_v54  ;;  %v9962_v54 = vld [vmem:[#allocation25_spill] sm:$0xff] }
 0x1f1   : > { %6480 = vmatpush3.bf16.msra.mxu1 %v9959_v45  ;;  %6435 = vmatprep.mubr.bf16.mxu1 %v2587_v26  ;;  %v9964_v45 = vpack.c.bf16 %v9962_v54, %v9963_v2  ;;  %v7305_v26 = vld [vmem:[#allocation8 + $0xa8] sm:$0xff]   ;;  %v9968_v54 = vld [vmem:[#allocation38_spill] sm:$0xff] }
 0x1f2   : > { %6244 = vmatmul.mubr.bf16.gmra.mrb[36].mxu0 %v9960_v6  ;;  %6481 = vmatprep.subr.bf16.mxu1 %v7294_v59  ;;  %v9969_v2 = vld [vmem:[#allocation39_spill] sm:$0xff] }
 0x1f3   : > { %6247 = vmatprep.mubr.bf16.mxu0 %v9961_v4  ;;  %6292 = vmatpush3.bf16.msra.mxu0 %v7301_v62  ;;  %v7297_v62 = vld [vmem:[#allocation8 + $0x160] sm:$0xff]  }
 0x1f4   : > { %6293 = vmatprep.subr.bf16.mxu0 %v7302_v44 }
 0x1f5   : > { %6482 = vmatpush3.bf16.msra.mxu1 %v7294_v59  ;;  %v7306_v59 = vld [vmem:[#allocation8 + $0xb0] sm:$0xff]  }
 0x1f6   : > { %6483 = vmatprep.subr.bf16.mxu1 %v7295_v31 }
 0x1f7   : > { %6294 = vmatpush3.bf16.msra.mxu0 %v7302_v44  ;;  %v7299_v44 = vld [vmem:[#allocation8 + $0x168] sm:$0xff]  }
 0x1f8   : > { %6436 = vmatmul.mubr.bf16.gmra.mrb[4].mxu1 %v9964_v45  ;;  %6295 = vmatprep.subr.bf16.mxu0 %v7304_v57  ;;  %v2593_v45 = vpack.c.bf16 %v9854_v52, %v7995_v19  ;;  %v9972_v19 = vpack.c.bf16 %v8082_v47, %v8062_v29  ;;  %v2598_v29 = vpack.c.bf16 %v8135_v41, %v9854_v52  ;;  %v9982_v41 = vld [vmem:[#allocation68_spill] sm:$0xff] }
 0x1f9   : > { %6439 = vmatprep.mubr.bf16.mxu1 %v2589_v25  ;;  %6484 = vmatpush3.bf16.msra.mxu1 %v7295_v31  ;;  %v7308_v25 = vld [vmem:[#allocation8 + $0xb8] sm:$0xff]   ;;  %v9967_v31 = vpack.c.bf16 %v8004_v27, %v7990_v12  ;;  %v7309_v27 = vld [vmem:[#allocation8 + $0x180] sm:$0xff]   ;;  %v2599_v47 = vpack.c.bf16 %v9854_v52, %v8149_v32  ;;  %v2602_v32 = vpack.c.bf16 %v9854_v52, %v9932_v28 }
 0x1fa   : > { %6248 = vmatmul.mubr.bf16.gmra.mrb[40].mxu0 %v9965_v23  ;;  %6485 = vmatprep.subr.bf16.mxu1 %v7296_v15  ;;  %v9970_v12 = vld [vmem:[#allocation45_spill] sm:$0xff]  ;;  %v9987_v28 = vld [vmem:[#allocation74_spill] sm:$0xff] }
 0x1fb   : > { %6251 = vmatprep.mubr.bf16.mxu0 %v9966_v35  ;;  %6296 = vmatpush3.bf16.msra.mxu0 %v7304_v57  ;;  %v7303_v57 = vld [vmem:[#allocation8 + $0x170] sm:$0xff]  }
 0x1fc   : > { %6297 = vmatprep.subr.bf16.mxu0 %v7305_v26 }
 0x1fd   : > { %6486 = vmatpush3.bf16.msra.mxu1 %v7296_v15  ;;  %v7307_v15 = vld [vmem:[#allocation8 + $0x178] sm:$0xff]  }
 0x1fe   : > { %6487 = vmatprep.subr.bf16.mxu1 %v7297_v62 }
 0x1ff   : > { %6298 = vmatpush3.bf16.msra.mxu0 %v7305_v26  ;;  %v8983_v26 = vld [vmem:[#allocation8 + $0x200] sm:$0xff]  }
 0x200   : > { %6440 = vmatmul.mubr.bf16.gmra.mrb[8].mxu1 %v2590_v24  ;;  %6299 = vmatprep.subr.bf16.mxu0 %v7306_v59  ;;  %v9974_v24 = vld [vmem:[#allocation53_spill] sm:$0xff] }
 0x201   : > { %6443 = vmatprep.mubr.bf16.mxu1 %v9967_v31  ;;  %6488 = vmatpush3.bf16.msra.mxu1 %v7297_v62  ;;  %v9971_v62 = vld [vmem:[#allocation46_spill] sm:$0xff]  ;;  %v9976_v31 = vld [vmem:[#allocation59_spill] sm:$0xff] }
 0x202   : > { %6252 = vmatmul.mubr.bf16.gmra.mrb[44].mxu0 %v9968_v54  ;;  %6489 = vmatprep.subr.bf16.mxu1 %v7299_v44 }
 0x203   : > { %6255 = vmatprep.mubr.bf16.mxu0 %v9969_v2  ;;  %6300 = vmatpush3.bf16.msra.mxu0 %v7306_v59  ;;  %v9973_v59 = vld [vmem:[#allocation52_spill] sm:$0xff] }
 0x204   : > { %6301 = vmatprep.subr.bf16.mxu0 %v7308_v25 }
 0x205   : > { %6490 = vmatpush3.bf16.msra.mxu1 %v7299_v44  ;;  %v2596_v44 = vpack.c.bf16 %v9854_v52, %v8071_v42  ;;  %v9979_v42 = vld [vmem:[#allocation64_spill] sm:$0xff] }
 0x206   : > { %6491 = vmatprep.subr.bf16.mxu1 %v7303_v57 }
 0x207   : > { %6302 = vmatpush3.bf16.msra.mxu0 %v7308_v25  ;;  %v9975_v25 = vpack.c.bf16 %v8160_v13, %v8142_v56  ;;  %v2601_v56 = vpack.c.bf16 %v9929_v0, %v9854_v52  ;;  %v9980_v13 = vpack.c.bf16 %v8238_v61, %v8216_v36  ;;  %v9985_v0 = vld [vmem:[#allocation71_spill] sm:$0xff]  ;;  %v2604_v36 = vpack.c.bf16 %v9938_v39, %v9854_v52  ;;  %v9990_v39 = vld [vmem:[#allocation78_spill] sm:$0xff] }
 0x208   : > { %6444 = vmatmul.mubr.bf16.gmra.mrb[12].mxu1 %v2592_v33  ;;  %6671 = vmatprep.subr.bf16.mxu0 %v8983_v26  ;;  %v9981_v33 = vld [vmem:[#allocation67_spill] sm:$0xff]  ;;  %v2605_v61 = vpack.c.bf16 %v9854_v52, %v9942_v11  ;;  %v2608_v11 = vpack.c.bf16 %v9854_v52, %v8385_v21 }
 0x209   : > { %6447 = vmatprep.mubr.bf16.mxu1 %v2593_v45  ;;  %6492 = vmatpush3.bf16.msra.mxu1 %v7303_v57  ;;  %v9978_v57 = vld [vmem:[#allocation63_spill] sm:$0xff]  ;;  %v9984_v45 = vld [vmem:[#allocation70_spill] sm:$0xff] }
 0x20a   : > { %6256 = vmatmul.mubr.bf16.gmra.mrb[48].mxu0 %v9970_v12  ;;  %6493 = vmatprep.subr.bf16.mxu1 %v7307_v15 }
 0x20b   : > { %6259 = vmatprep.mubr.bf16.mxu0 %v9971_v62 }
 0x20d   : > { %6494 = vmatpush3.bf16.msra.mxu1 %v7307_v15  ;;  %v9983_v15 = vpack.c.bf16 %v8315_v7, %v8295_v49  ;;  %v2607_v49 = vpack.c.bf16 %v8371_v51, %v9854_v52  ;;  %v9031_v7 = vpack.c.bf16 %v8403_v5, %v8403_v5  ;;  %v9053_v52 = vld [vmem:[#allocation8 + $0x210] sm:$0xff]  }
 0x20e   : > { %6543 = vmatprep.subr.bf16.mxu1 %v7309_v27  ;;  %v10033_v51 = vld [vmem:[#allocation104_spill] sm:$0xff] }
 0x20f   : > { %9988 = vst [vmem:[#allocation20_spill] sm:$0xff] %v9031_v7 }
 0x210   : > { %6448 = vmatmul.mubr.bf16.gmra.mrb[16].mxu1 %v9972_v19  ;;  %v9989_v19 = vpack.c.bf16 %v8399_v30, %v8378_v43  ;;  %v9993_v43 = vpack.c.bf16 %v8535_v63, %v8551_v34  ;;  %v7310_v30 = vld [vmem:[#allocation8 + $0x188] sm:$0xff]  }
 0x211   : > { %6451 = vmatprep.mubr.bf16.mxu1 %v2595_v8  ;;  %v9986_v8 = vld [vmem:[#allocation73_spill] sm:$0xff] }
 0x212   : > { %6260 = vmatmul.mubr.bf16.gmra.mrb[52].mxu0 %v9973_v59 }
 0x213   : > { %6263 = vmatprep.mubr.bf16.mxu0 %v9974_v24 }
 0x218   : > { %6452 = vmatmul.mubr.bf16.gmra.mrb[20].mxu1 %v2596_v44  ;;  %v9040_v44 = vld [vmem:[#allocation8 + $0x208] sm:$0xff]  }
 0x219   : > { %6455 = vmatprep.mubr.bf16.mxu1 %v9975_v25  ;;  %v9991_v25 = vpack.c.bf16 %v8551_v34, %v8555_v46  ;;  %v9996_v34 = vld [vmem:[#allocation83_spill] sm:$0xff] }
 0x21a   : > { %6264 = vmatmul.mubr.bf16.gmra.mrb[56].mxu0 %v9976_v31 }
 0x21b   : > { %6267 = vmatprep.mubr.bf16.mxu0 %v9977_v10 }
 0x220   : > { %6456 = vmatmul.mubr.bf16.gmra.mrb[24].mxu1 %v2598_v29  ;;  %v9992_v29 = vpack.c.bf16 %v8555_v46, %v8526_v17  ;;  %v9060_v46 = vld [vmem:[#allocation8 + $0x218] sm:$0xff]  }
 0x221   : > { %6459 = vmatprep.mubr.bf16.mxu1 %v2599_v47  ;;  %v9994_v47 = vld [vmem:[#allocation79_spill] sm:$0xff] }
 0x222   : > { %6268 = vmatmul.mubr.bf16.gmra.mrb[60].mxu0 %v9978_v57 }
 0x223   : > { %6271 = vmatprep.mubr.bf16.mxu0 %v9979_v42 }
 0x228   : > { %6460 = vmatmul.mubr.bf16.gmra.mrb[28].mxu1 %v9980_v13  ;;  %v9997_v13 = vld [vmem:[#allocation81_spill] sm:$0xff] }
 0x229   : > { %6463 = vmatprep.mubr.bf16.mxu1 %v2601_v56  ;;  %v9995_v56 = vpack.c.bf16 %v9994_v47, %v8535_v63  ;;  %v10006_v47 = vld [vmem:[#allocation87_spill] sm:$0xff]  ;;  %v10023_v63 = vld [vmem:[#allocation96_spill] sm:$0xff] }
 0x22a   : > { %6272 = vmatmul.mubr.bf16.gmra.mrb[64].mxu0 %v9981_v33 }
 0x22b   : > { %6275 = vmatprep.mubr.bf16.mxu0 %v9982_v41 }
 0x230   : > { %6464 = vmatmul.mubr.bf16.gmra.mrb[32].mxu1 %v2602_v32  ;;  %v9998_v32 = vpack.c.bf16 %v9996_v34, %v9997_v13  ;;  %v7315_v34 = vld [vmem:[#allocation8 + $0x1a8] sm:$0xff]   ;;  %v10010_v13 = vld [vmem:[#allocation88_spill] sm:$0xff] }
 0x231   : > { %6467 = vmatprep.mubr.bf16.mxu1 %v9983_v15  ;;  %v9999_v15 = vld [vmem:[#allocation82_spill] sm:$0xff] }
 0x232   : > { %6276 = vmatmul.mubr.bf16.gmra.mrb[68].mxu0 %v9984_v45 }
 0x233   : > { %6279 = vmatprep.mubr.bf16.mxu0 %v9985_v0 }
 0x238   : > { %6468 = vmatmul.mubr.bf16.gmra.mrb[36].mxu1 %v2604_v36  ;;  %v7311_v36 = vld [vmem:[#allocation8 + $0x190] sm:$0xff]  }
 0x239   : > { %6471 = vmatprep.mubr.bf16.mxu1 %v2605_v61  ;;  %v10000_v61 = vld [vmem:[#allocation86_spill] sm:$0xff] }
 0x23a   : > { %6280 = vmatmul.mubr.bf16.gmra.mrb[72].mxu0 %v9986_v8 }
 0x23b   : > { %6283 = vmatprep.mubr.bf16.mxu0 %v9987_v28 }
 0x240   : > { %6472 = vmatmul.mubr.bf16.gmra.mrb[40].mxu1 %v9989_v19  ;;  %v7312_v19 = vld [vmem:[#allocation8 + $0x198] sm:$0xff]  }
 0x241   : > { %6475 = vmatprep.mubr.bf16.mxu1 %v2607_v49  ;;  %v9069_v49 = vld [vmem:[#allocation8 + $0x220] sm:$0xff]  }
 0x242   : > { %6284 = vmatmul.mubr.bf16.gmra.mrb[76].mxu0 %v9990_v39 }
 0x243   : > { %6303 = vmatprep.mubr.bf16.mxu0 %v9031_v7 }
 0x248   : > { %6476 = vmatmul.mubr.bf16.gmra.mrb[44].mxu1 %v2608_v11  ;;  %v10002_v11 = vld [vmem:[#allocation84_spill] sm:$0xff] }
 0x249   : > { %6495 = vmatprep.mubr.bf16.mxu1 %v9991_v25 }
 0x24a   : > { %6304 = vmatmul.mubr.bf16.vlgmr.msra.gmra.mrb[32].mxu0 %v9992_v29  ;;  %v9076_v29 = vld [vmem:[#allocation8 + $0x228] sm:$0xff]  }
 0x24b   : > { %6307 = vmatprep.mubr.bf16.mxu0 %v9993_v43  ;;  %6672 = vmatpush3.bf16.msra.mxu0 %v8983_v26  ;;  %10004 = vst [vmem:[#allocation21_spill] sm:$0xff] %v9076_v29  ;;  %v10005_v43 = vpack.c.bf16 %v8599_v58, %v8594_v50  ;;  %v10008_v50 = vpack.c.bf16 %v8623_v55, %v8608_v37  ;;  %v9092_v58 = vld [vmem:[#allocation8 + $0x238] sm:$0xff]   ;;  %v10014_v55 = vld [vmem:[#allocation92_spill] sm:$0xff] }
 0x24c   : > { %6673 = vmatprep.subr.bf16.mxu0 %v9040_v44  ;;  %10009 = vst [vmem:[#allocation42_spill] sm:$0xff] %v9092_v58  ;;  %v7323_v37 = vld [vmem:[#allocation8 + $0x1b8] sm:$0xff]  }
 0x24f   : > { %6674 = vmatpush3.bf16.msra.mxu0 %v9040_v44 }
 0x250   : > { %6496 = vmatmul.mubr.bf16.vlgmr.msra.gmra.mrb[0].mxu1 %v9995_v56  ;;  %6675 = vmatprep.subr.bf16.mxu0 %v9053_v52  ;;  %v9085_v56 = vld [vmem:[#allocation8 + $0x230] sm:$0xff]  }
 0x251   : > { %6544 = vmatpush3.bf16.msra.mxu1 %v7309_v27  ;;  %6499 = vmatprep.mubr.bf16.mxu1 %v9998_v32  ;;  %v10001_v27 = vld [vmem:[#allocation85_spill] sm:$0xff]  ;;  %10007 = vst [vmem:[#allocation22_spill] sm:$0xff] %v9085_v56  ;;  %v10011_v32 = vpack.c.bf16 %v8634_v16, %v10010_v13  ;;  %v7325_v13 = vld [vmem:[#allocation8 + $0x1c0] sm:$0xff]  }
 0x252   : > { %6308 = vmatmul.mubr.bf16.gmra.mrb[36].mxu0 %v9999_v15  ;;  %6545 = vmatprep.subr.bf16.mxu1 %v7310_v30  ;;  %v10003_v25 = vpack.c.bf16 %v10001_v27, %v10002_v11  ;;  %v10013_v27 = vld [vmem:[#allocation91_spill] sm:$0xff]  ;;  %v10015_v11 = vld [vmem:[#allocation90_spill] sm:$0xff] }
 0x253   : > { %6311 = vmatprep.mubr.bf16.mxu0 %v10000_v61  ;;  %6676 = vmatpush3.bf16.msra.mxu0 %v9053_v52  ;;  %v10016_v16 = vpack.c.bf16 %v10014_v55, %v10015_v11  ;;  %v10025_v55 = vpack.c.bf16 %v8707_v40, %v8702_v1  ;;  %v10026_v11 = vld [vmem:[#allocation99_spill] sm:$0xff]  ;;  %v10038_v40 = vld [vmem:[#allocation109_spill] sm:$0xff] }
 0x254   : > { %6677 = vmatprep.subr.bf16.mxu0 %v9060_v46 }
 0x255   : > { %6546 = vmatpush3.bf16.msra.mxu1 %v7310_v30  ;;  %v7313_v30 = vld [vmem:[#allocation8 + $0x1a0] sm:$0xff]  }
 0x256   : > { %6547 = vmatprep.subr.bf16.mxu1 %v7311_v36 }
 0x257   : > { %6678 = vmatpush3.bf16.msra.mxu0 %v9060_v46 }
 0x258   : > { %6500 = vmatmul.mubr.bf16.gmra.mrb[4].mxu1 %v10003_v25  ;;  %6679 = vmatprep.subr.bf16.mxu0 %v9069_v49  ;;  %v10017_v25 = vld [vmem:[#allocation94_spill] sm:$0xff] }
 0x259   : > { %6503 = vmatprep.mubr.bf16.mxu1 %v10005_v43  ;;  %6548 = vmatpush3.bf16.msra.mxu1 %v7311_v36  ;;  %v10012_v36 = vld [vmem:[#allocation89_spill] sm:$0xff] }
 0x25a   : > { %6312 = vmatmul.mubr.bf16.gmra.mrb[40].mxu0 %v10006_v47  ;;  %6549 = vmatprep.subr.bf16.mxu1 %v7312_v19  ;;  %v10018_v43 = vld [vmem:[#allocation93_spill] sm:$0xff] }
 0x25b   : > { %6315 = vmatprep.mubr.bf16.mxu0 %v8618_v20  ;;  %6680 = vmatpush3.bf16.msra.mxu0 %v9069_v49 }
 0x25c   : > { %6681 = vmatprep.subr.bf16.mxu0 %v9076_v29 }
 0x25d   : > { %6550 = vmatpush3.bf16.msra.mxu1 %v7312_v19  ;;  %v7319_v19 = vld [vmem:[#allocation8 + $0x1b0] sm:$0xff]  }
 0x25e   : > { %6551 = vmatprep.subr.bf16.mxu1 %v7313_v30 }
 0x25f   : > { %6682 = vmatpush3.bf16.msra.mxu0 %v9076_v29  ;;  %v10061_v29 = vld [vmem:[#allocation120_spill] sm:$0xff] }
 0x260   : > { %6504 = vmatmul.mubr.bf16.gmra.mrb[8].mxu1 %v10008_v50  ;;  %6683 = vmatprep.subr.bf16.mxu0 %v9085_v56  ;;  %v10020_v50 = vld [vmem:[#allocation95_spill] sm:$0xff] }
 0x261   : > { %6507 = vmatprep.mubr.bf16.mxu1 %v10011_v32  ;;  %6552 = vmatpush3.bf16.msra.mxu1 %v7313_v30  ;;  %v10019_v30 = vpack.c.bf16 %v10017_v25, %v10018_v43  ;;  %v10021_v32 = vld [vmem:[#allocation98_spill] sm:$0xff] }
 0x262   : > { %6316 = vmatmul.mubr.bf16.gmra.mrb[44].mxu0 %v10012_v36  ;;  %6553 = vmatprep.subr.bf16.mxu1 %v7315_v34  ;;  %v10030_v43 = vld [vmem:[#allocation102_spill] sm:$0xff] }
 0x263   : > { %6319 = vmatprep.mubr.bf16.mxu0 %v10013_v27  ;;  %6684 = vmatpush3.bf16.msra.mxu0 %v9085_v56  ;;  %v10054_v56 = vld [vmem:[#allocation51_spill] sm:$0xff] }
 0x264   : > { %6685 = vmatprep.subr.bf16.mxu0 %v9092_v58 }
 0x265   : > { %6554 = vmatpush3.bf16.msra.mxu1 %v7315_v34  ;;  %v10022_v34 = vld [vmem:[#allocation97_spill] sm:$0xff] }
 0x266   : > { %6555 = vmatprep.subr.bf16.mxu1 %v7319_v19  ;;  %v10024_v7 = vpack.c.bf16 %v10022_v34, %v10023_v63  ;;  %v10034_v63 = vld [vmem:[#allocation106_spill] sm:$0xff]  ;;  %v10036_v34 = vld [vmem:[#allocation105_spill] sm:$0xff] }
 0x267   : > { %6686 = vmatpush3.bf16.msra.mxu0 %v9092_v58  ;;  %v10041_v58 = vld [vmem:[#allocation110_spill] sm:$0xff] }
 0x268   : > { %6508 = vmatmul.mubr.bf16.gmra.mrb[12].mxu1 %v10016_v16  ;;  %v10028_v16 = vld [vmem:[#allocation100_spill] sm:$0xff] }
 0x269   : > { %6511 = vmatprep.mubr.bf16.mxu1 %v10019_v30  ;;  %6556 = vmatpush3.bf16.msra.mxu1 %v7319_v19  ;;  %v10027_v19 = vld [vmem:[#allocation101_spill] sm:$0xff]  ;;  %v10031_v30 = vld [vmem:[#allocation103_spill] sm:$0xff] }
 0x26a   : > { %6320 = vmatmul.mubr.bf16.gmra.mrb[48].mxu0 %v10020_v50  ;;  %6557 = vmatprep.subr.bf16.mxu1 %v7323_v37  ;;  %v10029_v25 = vpack.c.bf16 %v10027_v19, %v10028_v16  ;;  %v10042_v19 = vld [vmem:[#allocation44_spill] sm:$0xff]  ;;  %v10043_v16 = vld [vmem:[#allocation111_spill] sm:$0xff] }
 0x26b   : > { %6323 = vmatprep.mubr.bf16.mxu0 %v10021_v32 }
 0x26d   : > { %6558 = vmatpush3.bf16.msra.mxu1 %v7323_v37  ;;  %v10032_v37 = vpack.c.bf16 %v10030_v43, %v10031_v30  ;;  %v10046_v30 = vpack.c.bf16 %v8815_v22, %v8810_v18  ;;  %v10059_v22 = vld [vmem:[#allocation119_spill] sm:$0xff] }
 0x26e   : > { %6607 = vmatprep.subr.bf16.mxu1 %v7325_v13 }
 0x270   : > { %6512 = vmatmul.mubr.bf16.gmra.mrb[16].mxu1 %v10024_v7  ;;  %v10035_v7 = vld [vmem:[#allocation107_spill] sm:$0xff] }
 0x271   : > { %6515 = vmatprep.mubr.bf16.mxu1 %v10025_v55  ;;  %v10037_v1 = vpack.c.bf16 %v10035_v7, %v10036_v34  ;;  %v10039_v55 = vld [vmem:[#allocation108_spill] sm:$0xff]  ;;  %v10048_v7 = vld [vmem:[#allocation114_spill] sm:$0xff]  ;;  %v10049_v34 = vld [vmem:[#allocation113_spill] sm:$0xff] }
 0x272   : > { %6324 = vmatmul.mubr.bf16.gmra.mrb[52].mxu0 %v10026_v11  ;;  %v10040_v21 = vpack.c.bf16 %v10038_v40, %v10039_v55  ;;  %v10052_v40 = vld [vmem:[#allocation115_spill] sm:$0xff] }
 0x273   : > { %6327 = vmatprep.mubr.bf16.mxu0 %v8726_v14 }
 0x278   : > { %6516 = vmatmul.mubr.bf16.gmra.mrb[20].mxu1 %v10029_v25  ;;  %v10044_v25 = vld [vmem:[#allocation43_spill] sm:$0xff] }
 0x279   : > { %6519 = vmatprep.mubr.bf16.mxu1 %v10032_v37  ;;  %v10045_v43 = vpack.c.bf16 %v10043_v16, %v10044_v25  ;;  %v10047_v37 = vld [vmem:[#allocation112_spill] sm:$0xff]  ;;  %v10055_v16 = vld [vmem:[#allocation117_spill] sm:$0xff]  ;;  %v10056_v25 = vld [vmem:[#allocation118_spill] sm:$0xff] }
 0x27a   : > { %6328 = vmatmul.mubr.bf16.gmra.mrb[56].mxu0 %v10033_v51 }
 0x27b   : > { %6331 = vmatprep.mubr.bf16.mxu0 %v10034_v63 }
 0x280   : > { %6520 = vmatmul.mubr.bf16.gmra.mrb[24].mxu1 %v10037_v1  ;;  %v10050_v1 = vpack.c.bf16 %v8839_v60, %v10049_v34  ;;  %v10062_v60 = vld [vmem:[#allocation122_spill] sm:$0xff]  ;;  %v10063_v34 = vld [vmem:[#allocation121_spill] sm:$0xff] }
 0x281   : > { %6523 = vmatprep.mubr.bf16.mxu1 %v10040_v21  ;;  %v10051_v21 = vld [vmem:[#allocation49_spill] sm:$0xff] }
 0x282   : > { %6332 = vmatmul.mubr.bf16.gmra.mrb[60].mxu0 %v10041_v58  ;;  %v10053_v55 = vpack.c.bf16 %v10051_v21, %v10052_v40  ;;  %v10065_v21 = vpack.c.bf16 %v8926_v38, %v8918_v9  ;;  %v10066_v40 = vpack.c.bf16 %v8403_v5, %v8906_v3 }
 0x283   : > { %6335 = vmatprep.mubr.bf16.mxu0 %v10042_v19 }
 0x288   : > { %6524 = vmatmul.mubr.bf16.gmra.mrb[28].mxu1 %v10045_v43  ;;  %v10057_v43 = vld [vmem:[#allocation116_spill] sm:$0xff] }
 0x289   : > { %6527 = vmatprep.mubr.bf16.mxu1 %v10046_v30  ;;  %v10058_v18 = vpack.c.bf16 %v10056_v25, %v10057_v43  ;;  %v10060_v30 = vpack.c.bf16 %v8890_v48, %v10059_v22  ;;  %v10067_v48 = vpack.c.bf16 %v8526_v17, %v8931_v53  ;;  %v7328_v17 = vld [vmem:[#allocation8 + $0x1d8] sm:$0xff]  }
 0x28a   : > { %6336 = vmatmul.mubr.bf16.gmra.mrb[64].mxu0 %v10047_v37  ;;  %v10091_v22 = vld [vmem:[#allocation69_spill] sm:$0xff] }
 0x28b   : > { %6339 = vmatprep.mubr.bf16.mxu0 %v10048_v7 }
 0x290   : > { %6528 = vmatmul.mubr.bf16.gmra.mrb[32].mxu1 %v10050_v1  ;;  %v10064_v1 = vpack.c.bf16 %v8906_v3, %v10063_v34 }
 0x291   : > { %6531 = vmatprep.mubr.bf16.mxu1 %v10053_v55  ;;  %v7326_v55 = vld [vmem:[#allocation8 + $0x1c8] sm:$0xff]  }
 0x292   : > { %6340 = vmatmul.mubr.bf16.gmra.mrb[68].mxu0 %v10054_v56 }
 0x293   : > { %6343 = vmatprep.mubr.bf16.mxu0 %v10055_v16 }
 0x298   : > { %6532 = vmatmul.mubr.bf16.gmra.mrb[36].mxu1 %v10058_v18  ;;  %v10090_v18 = vld [vmem:[#allocation56_spill] sm:$0xff] }
 0x299   : > { %6535 = vmatprep.mubr.bf16.mxu1 %v10060_v30 }
 0x29a   : > { %6344 = vmatmul.mubr.bf16.gmra.mrb[72].mxu0 %v10061_v29 }
 0x29b   : > { %6347 = vmatprep.mubr.bf16.mxu0 %v10062_v60 }
 0x2a0   : > { %6536 = vmatmul.mubr.bf16.gmra.mrb[40].mxu1 %v10064_v1 }
 0x2a1   : > { %6539 = vmatprep.mubr.bf16.mxu1 %v10065_v21  ;;  %v10092_v21 = vld [vmem:[#allocation48_spill] sm:$0xff] }
 0x2a2   : > { %6348 = vmatmul.mubr.bf16.gmra.mrb[76].mxu0 %v10066_v40  ;;  %v7333_v40 = vld [vmem:[#allocation9] sm:$0xff]  }
 0x2a3   : > { %6687 = vmatprep.mubr.bf16.mxu0 %v9999_v15  ;;  %v7327_v15 = vld [vmem:[#allocation8 + $0x1d0] sm:$0xff]   ;;  %6735 = vmatprep.subr.bf16.mxu0 %v7333_v40 }
 0x2a8   : > { %6540 = vmatmul.mubr.bf16.gmra.mrb[44].mxu1 %v10067_v48  ;;  %v7334_v48 = vld [vmem:[#allocation9 + $0x8] sm:$0xff]  }
 0x2a9   : > { %6559 = vmatprep.mubr.bf16.mxu1 %v9960_v6  ;;  %v7329_v6 = vld [vmem:[#allocation8 + $0x1e0] sm:$0xff]  }
 0x2aa   : > { %6688 = vmatmul.mubr.bf16.vlgmr.msra.gmra.mrb[80].mxu0 %v10000_v61  ;;  %v10083_v61 = vld [vmem:[#allocation36_spill] sm:$0xff] }
 0x2ab   : > { %6691 = vmatprep.mubr.bf16.mxu0 %v10006_v47  ;;  %6736 = vmatpush3.bf16.msra.mxu0 %v7333_v40 }
 0x2ac   : > { %6737 = vmatprep.subr.bf16.mxu0 %v7334_v48 }
 0x2af   : > { %6738 = vmatpush3.bf16.msra.mxu0 %v7334_v48 }
 0x2b0   : > { %6560 = vmatmul.mubr.bf16.vlgmr.msra.gmra.mrb[0].mxu1 %v9961_v4 }
 0x2b1   : > { %6608 = vmatpush3.bf16.msra.mxu1 %v7325_v13  ;;  %6563 = vmatprep.mubr.bf16.mxu1 %v9965_v23  ;;  %v7332_v23 = vld [vmem:[#allocation8 + $0x1f8] sm:$0xff]  }
 0x2b2   : > { %6692 = vmatmul.mubr.bf16.gmra.mrb[84].mxu0 %v8618_v20  ;;  %6609 = vmatprep.subr.bf16.mxu1 %v7326_v55  ;;  %v7330_v20 = vld [vmem:[#allocation8 + $0x1e8] sm:$0xff]  }
 0x2b3   : > { %6695 = vmatprep.mubr.bf16.mxu0 %v10012_v36 }
 0x2b5   : > { %6610 = vmatpush3.bf16.msra.mxu1 %v7326_v55  ;;  %v10093_v55 = vld [vmem:[#allocation72_spill] sm:$0xff] }
 0x2b6   : > { %6611 = vmatprep.subr.bf16.mxu1 %v7327_v15 }
 0x2b8   : > { %6564 = vmatmul.mubr.bf16.gmra.mrb[4].mxu1 %v9966_v35  ;;  %v7331_v35 = vld [vmem:[#allocation8 + $0x1f0] sm:$0xff]  }
 0x2b9   : > { %6567 = vmatprep.mubr.bf16.mxu1 %v9968_v54  ;;  %6612 = vmatpush3.bf16.msra.mxu1 %v7327_v15  ;;  %v10070_v54 = vld [vmem:[#allocation66_spill] sm:$0xff]  ;;  %v7335_v15 = vld [vmem:[#allocation9 + $0x10] sm:$0xff]  }
 0x2ba   : > { %6696 = vmatmul.mubr.bf16.gmra.mrb[88].mxu0 %v10013_v27  ;;  %6613 = vmatprep.subr.bf16.mxu1 %v7328_v17  ;;  %v10086_v27 = vld [vmem:[#allocation37_spill] sm:$0xff] }
 0x2bb   : > { %6699 = vmatprep.mubr.bf16.mxu0 %v10020_v50  ;;  %v10087_v50 = vld [vmem:[#allocation50_spill] sm:$0xff]  ;;  %6739 = vmatprep.subr.bf16.mxu0 %v7335_v15 }
 0x2bc   : > { %6740 = vmatpush3.bf16.msra.mxu0 %v7335_v15 }
 0x2bd   : > { %6614 = vmatpush3.bf16.msra.mxu1 %v7328_v17 }
 0x2be   : > { %6615 = vmatprep.subr.bf16.mxu1 %v7329_v6 }
 0x2c0   : > { %6568 = vmatmul.mubr.bf16.gmra.mrb[8].mxu1 %v9969_v2  ;;  %v10071_v2 = vld [vmem:[#allocation61_spill] sm:$0xff] }
 0x2c1   : > { %6571 = vmatprep.mubr.bf16.mxu1 %v9970_v12  ;;  %6616 = vmatpush3.bf16.msra.mxu1 %v7329_v6  ;;  %v10072_v12 = vpack.c.bf16 %v10070_v54, %v10071_v2 }
 0x2c2   : > { %6700 = vmatmul.mubr.bf16.gmra.mrb[92].mxu0 %v10021_v32  ;;  %6617 = vmatprep.subr.bf16.mxu1 %v7330_v20 }
 0x2c3   : > { %6703 = vmatprep.mubr.bf16.mxu0 %v10026_v11 }
 0x2c5   : > { %6618 = vmatpush3.bf16.msra.mxu1 %v7330_v20 }
 0x2c6   : > { %6619 = vmatprep.subr.bf16.mxu1 %v7331_v35 }
 0x2c8   : > { %6572 = vmatmul.mubr.bf16.gmra.mrb[12].mxu1 %v9971_v62  ;;  %v10073_v62 = vld [vmem:[#allocation62_spill] sm:$0xff] }
 0x2c9   : > { %6575 = vmatprep.mubr.bf16.mxu1 %v9973_v59  ;;  %6620 = vmatpush3.bf16.msra.mxu1 %v7331_v35  ;;  %v10074_v59 = vld [vmem:[#allocation24_spill] sm:$0xff] }
 0x2ca   : > { %6704 = vmatmul.mubr.bf16.gmra.mrb[96].mxu0 %v8726_v14  ;;  %6621 = vmatprep.subr.bf16.mxu1 %v7332_v23  ;;  %v10069_v14 = vld [vmem:[#allocation18_spill] sm:$0xff] }
 0x2cb   : > { %6707 = vmatprep.mubr.bf16.mxu0 %v10033_v51  ;;  %v10068_v51 = vld [vmem:[#allocation65_spill] sm:$0xff] }
 0x2cc   : > { %v3508_v4 = vpack.c.bf16 %v10069_v14, %v10068_v51  ;;  %v10095_v51 = vld [vmem:[#allocation55_spill] sm:$0xff] }
 0x2cd   : > { %6622 = vmatpush3.bf16.msra.mxu1 %v7332_v23  ;;  %v10094_v23 = vld [vmem:[#allocation75_spill] sm:$0xff] }
 0x2ce   : > { %6783 = vmatprep.subr.bf16.mxu1 %v8983_v26 }
 0x2d0   : > { %6576 = vmatmul.mubr.bf16.gmra.mrb[16].mxu1 %v9974_v24  ;;  %v10075_v24 = vld [vmem:[#allocation26_spill] sm:$0xff] }
 0x2d1   : > { %6579 = vmatprep.mubr.bf16.mxu1 %v9976_v31  ;;  %v10076_v31 = vld [vmem:[#allocation30_spill] sm:$0xff] }
 0x2d2   : > { %6708 = vmatmul.mubr.bf16.gmra.mrb[100].mxu0 %v10034_v63 }
 0x2d3   : > { %6711 = vmatprep.mubr.bf16.mxu0 %v10041_v58 }
 0x2d8   : > { %6580 = vmatmul.mubr.bf16.gmra.mrb[20].mxu1 %v9977_v10  ;;  %v10077_v10 = vld [vmem:[#allocation27_spill] sm:$0xff] }
 0x2d9   : > { %6583 = vmatprep.mubr.bf16.mxu1 %v9978_v57  ;;  %v10078_v57 = vld [vmem:[#allocation32_spill] sm:$0xff] }
 0x2da   : > { %6712 = vmatmul.mubr.bf16.gmra.mrb[104].mxu0 %v10042_v19  ;;  %v10088_v19 = vld [vmem:[#allocation54_spill] sm:$0xff] }
 0x2db   : > { %6715 = vmatprep.mubr.bf16.mxu0 %v10047_v37  ;;  %v10089_v37 = vld [vmem:[#allocation40_spill] sm:$0xff] }
 0x2e0   : > { %6584 = vmatmul.mubr.bf16.gmra.mrb[24].mxu1 %v9979_v42 }
 0x2e1   : > { %6587 = vmatprep.mubr.bf16.mxu1 %v9981_v33 }
 0x2e2   : > { %6716 = vmatmul.mubr.bf16.gmra.mrb[108].mxu0 %v10048_v7 }
 0x2e3   : > { %6719 = vmatprep.mubr.bf16.mxu0 %v10054_v56 }
 0x2e8   : > { %6588 = vmatmul.mubr.bf16.gmra.mrb[28].mxu1 %v9982_v41 }
 0x2e9   : > { %6591 = vmatprep.mubr.bf16.mxu1 %v9984_v45  ;;  %v10079_v45 = vld [vmem:[#allocation35_spill] sm:$0xff] }
 0x2ea   : > { %6720 = vmatmul.mubr.bf16.gmra.mrb[112].mxu0 %v10055_v16 }
 0x2eb   : > { %6723 = vmatprep.mubr.bf16.mxu0 %v10061_v29  ;;  %v10084_v29 = vld [vmem:[#allocation47_spill] sm:$0xff] }
 0x2f0   : > { %6592 = vmatmul.mubr.bf16.gmra.mrb[32].mxu1 %v9985_v0  ;;  %v10080_v0 = vld [vmem:[#allocation31_spill] sm:$0xff] }
 0x2f1   : > { %6595 = vmatprep.mubr.bf16.mxu1 %v9986_v8  ;;  %v10081_v8 = vld [vmem:[#allocation21_spill] sm:$0xff] }
 0x2f2   : > { %6724 = vmatmul.mubr.bf16.gmra.mrb[116].mxu0 %v10062_v60 }
 0x2f8   : > { %6596 = vmatmul.mubr.bf16.gmra.mrb[36].mxu1 %v9987_v28 }
 0x2f9   : > { %6599 = vmatprep.mubr.bf16.mxu1 %v9990_v39 }
 0x300   : > { %6600 = vmatmul.mubr.bf16.gmra.mrb[40].mxu1 %v10072_v12  ;;  %v10096_v12 = vld [vmem:[#allocation76_spill] sm:$0xff] }
 0x301   : > { %6603 = vmatprep.mubr.bf16.mxu1 %v3508_v4 }
 0x308   : > { %6604 = vmatmul.mubr.bf16.gmra.mrb[44].mxu1 %v10073_v62  ;;  %v10097_v62 = vld [vmem:[#allocation77_spill] sm:$0xff] }
 0x309   : > { %6623 = vmatprep.mubr.bf16.mxu1 %v10074_v59 }
 0x310   : > { %6624 = vmatmul.mubr.bf16.vlgmr.msra.gmra.mrb[0].mxu1 %v10075_v24 }
 0x311   : > { %6791 = vmatpush3.bf16.msra.mxu1 %v8983_v26  ;;  %6627 = vmatprep.mubr.bf16.mxu1 %v10076_v31 }
 0x312   : > { %6784 = vmatprep.subr.bf16.mxu1 %v9040_v44 }
 0x315   : > { %6792 = vmatpush3.bf16.msra.mxu1 %v9040_v44  ;;  %v10082_v44 = vld [vmem:[#allocation22_spill] sm:$0xff] }
 0x316   : > { %6785 = vmatprep.subr.bf16.mxu1 %v9053_v52 }
 0x318   : > { %6628 = vmatmul.mubr.bf16.gmra.mrb[4].mxu1 %v10077_v10 }
 0x319   : > { %6631 = vmatprep.mubr.bf16.mxu1 %v10078_v57  ;;  %6793 = vmatpush3.bf16.msra.mxu1 %v9053_v52  ;;  %v10098_v57 = vld [vmem:[#allocation58_spill] sm:$0xff] }
 0x31a   : > { %6786 = vmatprep.subr.bf16.mxu1 %v9060_v46 }
 0x31d   : > { %v6305_v42 = vpop.f32.mrb[32].mxu0  ;;  %6794 = vmatpush3.bf16.msra.mxu1 %v9060_v46 }
 0x31e   : > { %v9230_v26 = vpop.f32.mrb[33].mxu0  ;;  %6787 = vmatprep.subr.bf16.mxu1 %v9069_v49  ;;  %v10099_v42 = vld [vmem:[#allocation57_spill] sm:$0xff] }
 0x31f   : > { %v9233_v33 = vpop.f32.mrb[34].mxu0 }
 0x320   : > { %v9235_v41 = vpop.f32.mrb[35].mxu0  ;;  %6632 = vmatmul.mubr.bf16.gmra.mrb[8].mxu1 %v10079_v45  ;;  %v10100_v45 = vpack.c.bf16 %v10098_v57, %v10099_v42 }
 0x321   : > { %6635 = vmatprep.mubr.bf16.mxu1 %v10080_v0  ;;  %6795 = vmatpush3.bf16.msra.mxu1 %v9069_v49  ;;  %v10085_v49 = vld [vmem:[#allocation42_spill] sm:$0xff]  ;;  %v10101_v0 = vmov 0.0|0.0  }
 0x322   : > { %6788 = vmatprep.subr.bf16.mxu1 %v10081_v8 }
 0x325   : > { %v9241_v28 = vpop.f32.mrb[36].mxu0  ;;  %6796 = vmatpush3.bf16.msra.mxu1 %v10081_v8 }
 0x326   : > { %v9244_v39 = vpop.f32.mrb[37].mxu0  ;;  %6789 = vmatprep.subr.bf16.mxu1 %v10082_v44 }
 0x327   : > { %v9247_v52 = vpop.f32.mrb[38].mxu0 }
 0x328   : > { %v1922_v46 = vpop.f32.mrb[39].mxu0  ;;  %6636 = vmatmul.mubr.bf16.gmra.mrb[12].mxu1 %v10083_v61 }
 0x329   : > { %6639 = vmatprep.mubr.bf16.mxu1 %v10084_v29  ;;  %6797 = vmatpush3.bf16.msra.mxu1 %v10082_v44  ;;  %v10103_v29 = vpack.c.bf16 %v8918_v9, %v8906_v3 }
 0x32a   : > { %6790 = vmatprep.subr.bf16.mxu1 %v10085_v49 }
 0x32d   : > { %v9253_v47 = vpop.f32.mrb[40].mxu0  ;;  %6798 = vmatpush3.bf16.msra.mxu1 %v10085_v49 }
 0x32e   : > { %v1934_v56 = vpop.f32.mrb[41].mxu0 }
 0x32f   : > { %v6314_v58 = vpop.f32.mrb[42].mxu0 }
 0x330   : > { %v9256_v36 = vpop.f32.mrb[43].mxu0  ;;  %6640 = vmatmul.mubr.bf16.gmra.mrb[16].mxu1 %v10086_v27  ;;  %v7336_v58 = vld [vmem:[#allocation9 + $0x18] sm:$0xff]   ;;  %v7337_v27 = vld [vmem:[#allocation9 + $0x20] sm:$0xff]  }
 0x331   : > { %6643 = vmatprep.mubr.bf16.mxu1 %v10087_v50  ;;  %6741 = vmatprep.subr.bf16.mxu0 %v7336_v58 }
 0x332   : > { %6742 = vmatpush3.bf16.msra.mxu0 %v7336_v58 }
 0x333   : > { %6743 = vmatprep.subr.bf16.mxu0 %v7337_v27 }
 0x335   : > { %v6317_v13 = vpop.f32.mrb[44].mxu0 }
 0x336   : > { %v9260_v32 = vpop.f32.mrb[45].mxu0  ;;  %6744 = vmatpush3.bf16.msra.mxu0 %v7337_v27 }
 0x337   : > { %v9262_v11 = vpop.f32.mrb[46].mxu0 }
 0x338   : > { %v9264_v63 = vpop.f32.mrb[47].mxu0  ;;  %6644 = vmatmul.mubr.bf16.gmra.mrb[20].mxu1 %v10088_v19  ;;  %v10107_v19 = vpack.c.bf16 %v8931_v53, %v8926_v38  ;;  %v7340_v38 = vld [vmem:[#allocation9 + $0x38] sm:$0xff]  }
 0x339   : > { %6647 = vmatprep.mubr.bf16.mxu1 %v10089_v37  ;;  %v10108_v37 = vld [vmem:[#allocation20_spill] sm:$0xff] }
 0x33d   : > { %v9268_v7 = vpop.f32.mrb[48].mxu0 }
 0x33e   : > { %v9270_v16 = vpop.f32.mrb[49].mxu0 }
 0x33f   : > { %v9272_v25 = vpop.f32.mrb[50].mxu0 }
 0x340   : > { %v1966_v43 = vpop.f32.mrb[51].mxu0  ;;  %6648 = vmatmul.mubr.bf16.gmra.mrb[24].mxu1 %v10090_v18  ;;  %v7338_v18 = vld [vmem:[#allocation9 + $0x28] sm:$0xff]  }
 0x341   : > { %6651 = vmatprep.mubr.bf16.mxu1 %v10091_v22  ;;  %v7339_v22 = vld [vmem:[#allocation9 + $0x30] sm:$0xff]   ;;  %6745 = vmatprep.subr.bf16.mxu0 %v7338_v18 }
 0x342   : > { %6746 = vmatpush3.bf16.msra.mxu0 %v7338_v18 }
 0x343   : > { %6747 = vmatprep.subr.bf16.mxu0 %v7339_v22 }
 0x345   : > { %v9276_v30 = vpop.f32.mrb[52].mxu0 }
 0x346   : > { %v1978_v60 = vpop.f32.mrb[53].mxu0  ;;  %6748 = vmatpush3.bf16.msra.mxu0 %v7339_v22 }
 0x347   : > { %v6326_v34 = vpop.f32.mrb[54].mxu0  ;;  %6749 = vmatprep.subr.bf16.mxu0 %v7340_v38 }
 0x348   : > { %v9278_v1 = vpop.f32.mrb[55].mxu0  ;;  %6652 = vmatmul.mubr.bf16.gmra.mrb[28].mxu1 %v10092_v21  ;;  %v10111_v34 = vld [vmem:[#allocation80_spill] sm:$0xff] }
 0x349   : > { %6655 = vmatprep.mubr.bf16.mxu1 %v10093_v55  ;;  %v10112_v21 = vpack.c.bf16 %v10111_v34, %v8403_v5 }
 0x34a   : > { %6750 = vmatpush3.bf16.msra.mxu0 %v7340_v38 }
 0x34d   : > { %v6329_v17 = vpop.f32.mrb[56].mxu0 }
 0x34e   : > { %v9282_v6 = vpop.f32.mrb[57].mxu0 }
 0x34f   : > { %v9284_v20 = vpop.f32.mrb[58].mxu0 }
 0x350   : > { %v9286_v35 = vpop.f32.mrb[59].mxu0  ;;  %6656 = vmatmul.mubr.bf16.gmra.mrb[32].mxu1 %v10094_v23 }
 0x351   : > { %6659 = vmatprep.mubr.bf16.mxu1 %v10095_v51 }
 0x355   : > { %v9290_v14 = vpop.f32.mrb[60].mxu0 }
 0x356   : > { %v9292_v4 = vpop.f32.mrb[61].mxu0 }
 0x357   : > { %v9294_v54 = vpop.f32.mrb[62].mxu0 }
 0x358   : > { %v2010_v2 = vpop.f32.mrb[63].mxu0  ;;  %6660 = vmatmul.mubr.bf16.gmra.mrb[36].mxu1 %v10096_v12 }
 0x359   : > { %6663 = vmatprep.mubr.bf16.mxu1 %v10097_v62 }
 0x35d   : > { %v9298_v59 = vpop.f32.mrb[64].mxu0 }
 0x35e   : > { %v2022_v24 = vpop.f32.mrb[65].mxu0 }
 0x35f   : > { %v6338_v31 = vpop.f32.mrb[66].mxu0 }
 0x360   : > { %v9300_v10 = vpop.f32.mrb[67].mxu0  ;;  %6664 = vmatmul.mubr.bf16.gmra.mrb[40].mxu1 %v10100_v45 }
 0x361   : > { %6667 = vmatprep.mubr.bf16.mxu1 %v10101_v0 }
 0x365   : > { %v6341_v8 = vpop.f32.mrb[68].mxu0 }
 0x366   : > { %v9306_v44 = vpop.f32.mrb[69].mxu0 }
 0x367   : > { %v9308_v46 = vpop.f32.mrb[70].mxu0 }
 0x368   : > { %v9310_v61 = vpop.f32.mrb[71].mxu0  ;;  %6668 = vmatmul.mubr.bf16.gmra.mrb[44].mxu1 %v10101_v0 }
 0x369   : > { %10102 = vst [vmem:[#allocation19_spill] sm:$0xff] %v9310_v61  ;;  %6727 = vmatprep.mubr.bf16.mxu1 %v10103_v29 }
 0x36d   : > { %v9316_v49 = vpop.f32.mrb[72].mxu0 }
 0x36e   : > { %10104 = vst [vmem:[#allocation41_spill] sm:$0xff] %v9316_v49  ;;  %v9318_v56 = vpop.f32.mrb[73].mxu0 }
 0x36f   : > { %10105 = vst [vmem:[#allocation28_spill] sm:$0xff] %v9318_v56  ;;  %v9320_v50 = vpop.f32.mrb[74].mxu0 }
 0x370   : > { %10106 = vst [vmem:[#allocation29_spill] sm:$0xff] %v9320_v50  ;;  %v2054_v13 = vpop.f32.mrb[75].mxu0  ;;  %6728 = vmatmul.mubr.bf16.vlgmr.msra.gmra.mrb[40].mxu1 %v10107_v19 }
 0x371   : > { %6731 = vmatprep.mubr.bf16.mxu1 %v10108_v37 }
 0x375   : > { %v9326_v3 = vpop.f32.mrb[76].mxu0 }
 0x376   : > { %10109 = vst [vmem:[#allocation25_spill] sm:$0xff] %v9326_v3  ;;  %v2066_v9 = vpop.f32.mrb[77].mxu0 }
 0x377   : > { %v6350_v43 = vpop.f32.mrb[78].mxu0 }
 0x378   : > { %v9328_v60 = vpop.f32.mrb[79].mxu0  ;;  %6732 = vmatmul.mubr.bf16.gmra.mrb[44].mxu1 %v10112_v21 }
 0x379   : > { %10110 = vst [vmem:[#allocation23_spill] sm:$0xff] %v9328_v60 }
 0x37d   : > { %v6689_v53 = vpop.f32.mrb[80].mxu0 }
 0x37e   : > { %v4365_v40 = vpop.f32.mrb[81].mxu0 }
 0x37f   : > { %v6690_v48 = vpop.f32.mrb[82].mxu0 }
 0x380   : > { %v4368_v55 = vpop.f32.mrb[83].mxu0 }
 0x385   : > { %v6693_v15 = vpop.f32.mrb[84].mxu0 }
 0x386   : > { %v4380_v17 = vpop.f32.mrb[85].mxu0 }
 0x387   : > { %v9333_v23 = vpop.f32.mrb[86].mxu0 }
 0x388   : > { %v4383_v51 = vpop.f32.mrb[87].mxu0 }
 0x38d   : > { %v9335_v2 = vpop.f32.mrb[88].mxu0 }
 0x38e   : > { %v4395_v5 = vpop.f32.mrb[89].mxu0 }
 0x38f   : > { %v6698_v12 = vpop.f32.mrb[90].mxu0 }
 0x390   : > { %v9337_v62 = vpop.f32.mrb[91].mxu0 }
 0x395   : > { %v6701_v24 = vpop.f32.mrb[92].mxu0 }
 0x396   : > { %v9339_v31 = vpop.f32.mrb[93].mxu0 }
 0x397   : > { %v9341_v57 = vpop.f32.mrb[94].mxu0 }
 0x398   : > { %v9343_v42 = vpop.f32.mrb[95].mxu0 }
 0x39d   : > { %v9345_v45 = vpop.f32.mrb[96].mxu0 }
 0x39e   : > { %v9347_v0 = vpop.f32.mrb[97].mxu0 }
 0x39f   : > { %v9349_v8 = vpop.f32.mrb[98].mxu0 }
 0x3a0   : > { %v4427_v29 = vpop.f32.mrb[99].mxu0 }
 0x3a5   : > { %v9351_v58 = vpop.f32.mrb[100].mxu0 }
 0x3a6   : > { %v4439_v27 = vpop.f32.mrb[101].mxu0 }
 0x3a7   : > { %v6710_v13 = vpop.f32.mrb[102].mxu0 }
 0x3a8   : > { %v9353_v19 = vpop.f32.mrb[103].mxu0 }
 0x3ad   : > { %v6713_v37 = vpop.f32.mrb[104].mxu0 }
 0x3ae   : > { %v9355_v9 = vpop.f32.mrb[105].mxu0 }
 0x3af   : > { %v9357_v43 = vpop.f32.mrb[106].mxu0 }
 0x3b0   : > { %v9359_v18 = vpop.f32.mrb[107].mxu0 }
 0x3b5   : > { %v9361_v22 = vpop.f32.mrb[108].mxu0 }
 0x3b6   : > { %v9363_v34 = vpop.f32.mrb[109].mxu0 }
 0x3b7   : > { %v9365_v21 = vpop.f32.mrb[110].mxu0 }
 0x3b8   : > { %v4471_v38 = vpop.f32.mrb[111].mxu0 }
 0x3b9   : > { %v9381_v38 = vld [vmem:[%s9671_s5] ss:$0 sm:$0xff] }
 0x3bd   : > { %v9367_v53 = vpop.f32.mrb[112].mxu0 }
 0x3be   : > { %v4483_v51 = vpop.f32.mrb[113].mxu0 }
 0x3bf   : > { %v6722_v5 = vpop.f32.mrb[114].mxu0 }
 0x3c0   : > { %v9369_v12 = vpop.f32.mrb[115].mxu0 }
 0x3c5   : > { %v6725_v24 = vpop.f32.mrb[116].mxu0 }
 0x3c6   : > { %v9371_v29 = vpop.f32.mrb[117].mxu0 }
 0x3c7   : > { %10113 = vst [vmem:[#allocation33_spill] sm:$0xff] %v9371_v29  ;;  %v9373_v27 = vpop.f32.mrb[118].mxu0 }
 0x3c8   : > { %10114 = vst [vmem:[#allocation34_spill] sm:$0xff] %v9373_v27  ;;  %v9375_v13 = vpop.f32.mrb[119].mxu0 }
 0x3c9   : > { %10115 = vst [vmem:[#allocation38_spill] sm:$0xff] %v9375_v13 }
 0x3e3   : > { %v6625_v37 = vpop.f32.mrb[0].mxu1 }
 0x3e4   : > { %v3939_v60 = vpop.f32.mrb[1].mxu1  ;;  %v9388_v37 = vld [vmem:[%s9672_s6] ss:$0 sm:$0xff] }
 0x3e5   : > { %v6799_v3 = vadd.f32 %v3939_v60, %v9230_v26  ;;  %v6626_v50 = vpop.f32.mrb[2].mxu1 }
 0x3e6   : > { %v6801_v51 = vadd.f32 %v6626_v50, %v9233_v33  ;;  %v3942_v5 = vpop.f32.mrb[3].mxu1 }
 0x3e7   : > { %v6800_v24 = vadd.f32 %v6799_v3, %v4365_v40  ;;  %v6803_v56 = vadd.f32 %v3942_v5, %v9235_v41 }
 0x3e8   : > { %v6802_v49 = vadd.f32 %v6801_v51, %v6690_v48 }
 0x3e9   : > { %v4579_v26 = vmul.f32 %v6800_v24, %v9381_v38  ;;  %v6804_v60 = vadd.f32 %v6803_v56, %v4368_v55 }
 0x3ea   : > { %v4581_v3 = vmul.f32 %v6802_v49, %v9381_v38 }
 0x3eb   : > { %v4580_v13 = vmul.f32 %v6804_v60, %v9381_v38  ;;  %v6629_v27 = vpop.f32.mrb[4].mxu1  ;;  %v4618_v61 = vadd.f32 %v9388_v37, %v4579_v26 }
 0x3ec   : > { %v6805_v33 = vadd.f32 %v6629_v27, %v9241_v28  ;;  %v3954_v50 = vpop.f32.mrb[5].mxu1  ;;  %v4620_v28 = vadd.f32 %v9388_v37, %v4581_v3 }
 0x3ed   : > { %v6807_v41 = vadd.f32 %v3954_v50, %v9244_v39  ;;  %v6630_v40 = vpop.f32.mrb[6].mxu1  ;;  %v4619_v48 = vadd.f32 %v9388_v37, %v4580_v13  ;;  %v4650_v55 = vmax.f32 %v4618_v61, 0.0 }
 0x3ee   : > { %v6806_v51 = vadd.f32 %v6805_v33, %v6693_v15  ;;  %v6809_v5 = vadd.f32 %v6630_v40, %v9247_v52  ;;  %v3957_v24 = vpop.f32.mrb[7].mxu1  ;;  %v4652_v50 = vmax.f32 %v4620_v28, 0.0 }
 0x3ef   : > { %v6808_v56 = vadd.f32 %v6807_v41, %v4380_v17  ;;  %v4651_v60 = vmax.f32 %v4619_v48, 0.0 }
 0x3f0   : > { %v4583_v29 = vmul.f32 %v6806_v51, %v9381_v38  ;;  %v6810_v26 = vadd.f32 %v6809_v5, %v9333_v23 }
 0x3f1   : > { %v4582_v49 = vmul.f32 %v6808_v56, %v9381_v38  ;;  %v4682_v27 = vpack.c.bf16 %v4651_v60, %v4650_v55 }
 0x3f2   : > { %v4584_v39 = vmul.f32 %v6810_v26, %v9381_v38  ;;  %v4622_v13 = vadd.f32 %v9388_v37, %v4583_v29 }
 0x3f3   : > { %v4621_v15 = vadd.f32 %v9388_v37, %v4582_v49  ;;  %v6633_v52 = vpop.f32.mrb[8].mxu1  ;;  %6751 = vmatprep.mubr.bf16.mxu0 %v4682_v27 }
 0x3f4   : > { %v6811_v61 = vadd.f32 %v6633_v52, %v9253_v47  ;;  %v3969_v17 = vpop.f32.mrb[9].mxu1  ;;  %v4623_v33 = vadd.f32 %v9388_v37, %v4584_v39  ;;  %v4654_v48 = vmax.f32 %v4622_v13, 0.0 }
 0x3f5   : > { %v4653_v23 = vmax.f32 %v4621_v15, 0.0  ;;  %v6634_v41 = vpop.f32.mrb[10].mxu1 }
 0x3f6   : > { %v6812_v3 = vadd.f32 %v6811_v61, %v9335_v2  ;;  %v3971_v40 = vpop.f32.mrb[11].mxu1  ;;  %v4655_v51 = vmax.f32 %v4623_v33, 0.0 }
 0x3f7   : > { %v4683_v5 = vpack.c.bf16 %v4653_v23, %v4652_v50  ;;  %v6813_v29 = vadd.f32 %v3971_v40, %v9256_v36 }
 0x3f8   : > { %v4586_v24 = vmul.f32 %v6812_v3, %v9381_v38  ;;  %v4684_v56 = vpack.c.bf16 %v4655_v51, %v4654_v48 }
 0x3f9   : > { %v6814_v55 = vadd.f32 %v6813_v29, %v9337_v62  ;;  %6752 = vmatmul.mubr.bf16.vlgmr.msra.gmra.mrb[120].mxu0 %v4683_v5 }
 0x3fa   : > { %6755 = vmatprep.mubr.bf16.mxu0 %v4684_v56  ;;  %v4625_v26 = vadd.f32 %v9388_v37, %v4586_v24 }
 0x3fb   : > { %v4585_v47 = vmul.f32 %v6814_v55, %v9381_v38  ;;  %v6637_v60 = vpop.f32.mrb[12].mxu1 }
 0x3fc   : > { %v3983_v28 = vpop.f32.mrb[13].mxu1  ;;  %v4657_v52 = vmax.f32 %v4625_v26, 0.0 }
 0x3fd   : > { %v6815_v2 = vadd.f32 %v3983_v28, %v9260_v32  ;;  %v6638_v49 = vpop.f32.mrb[14].mxu1  ;;  %v4624_v27 = vadd.f32 %v9388_v37, %v4585_v47 }
 0x3fe   : > { %v6817_v36 = vadd.f32 %v6638_v49, %v9262_v11  ;;  %v3986_v39 = vpop.f32.mrb[15].mxu1 }
 0x3ff   : > { %v6816_v13 = vadd.f32 %v6815_v2, %v9339_v31  ;;  %v6819_v62 = vadd.f32 %v3986_v39, %v9264_v63  ;;  %v4656_v15 = vmax.f32 %v4624_v27, 0.0 }
 0x400   : > { %v6818_v61 = vadd.f32 %v6817_v36, %v9341_v57 }
 0x401   : > { %v4587_v17 = vmul.f32 %v6816_v13, %v9381_v38  ;;  %v6820_v33 = vadd.f32 %v6819_v62, %v9343_v42  ;;  %v4685_v50 = vpack.c.bf16 %v4657_v52, %v4656_v15 }
 0x402   : > { %v4589_v63 = vmul.f32 %v6818_v61, %v9381_v38 }
 0x403   : > { %v4588_v32 = vmul.f32 %v6820_v33, %v9381_v38  ;;  %v6641_v23 = vpop.f32.mrb[16].mxu1  ;;  %6756 = vmatmul.mubr.bf16.gmra.mrb[124].mxu0 %v4685_v50  ;;  %v4626_v11 = vadd.f32 %v9388_v37, %v4587_v17 }
 0x404   : > { %v6821_v41 = vadd.f32 %v6641_v23, %v9268_v7  ;;  %v3998_v31 = vpop.f32.mrb[17].mxu1 }
 0x405   : > { %v6823_v3 = vadd.f32 %v3998_v31, %v9270_v16  ;;  %v6642_v40 = vpop.f32.mrb[18].mxu1  ;;  %v4627_v57 = vadd.f32 %v9388_v37, %v4588_v32  ;;  %v4658_v29 = vmax.f32 %v4626_v11, 0.0  ;;  %v4628_v16 = vadd.f32 %v9388_v37, %v4589_v63 }
 0x406   : > { %v6822_v48 = vadd.f32 %v6821_v41, %v9345_v45  ;;  %v6825_v42 = vadd.f32 %v6642_v40, %v9272_v25  ;;  %v4001_v51 = vpop.f32.mrb[19].mxu1 }
 0x407   : > { %v6824_v5 = vadd.f32 %v6823_v3, %v9347_v0  ;;  %v4659_v24 = vmax.f32 %v4627_v57, 0.0 }
 0x408   : > { %v4591_v56 = vmul.f32 %v6822_v48, %v9381_v38  ;;  %v6826_v7 = vadd.f32 %v6825_v42, %v9349_v8  ;;  %v4660_v8 = vmax.f32 %v4628_v16, 0.0 }
 0x409   : > { %v4590_v55 = vmul.f32 %v6824_v5, %v9381_v38  ;;  %v4686_v47 = vpack.c.bf16 %v4659_v24, %v4658_v29 }
 0x40a   : > { %v4592_v60 = vmul.f32 %v6826_v7, %v9381_v38  ;;  %v4630_v45 = vadd.f32 %v9388_v37, %v4591_v56 }
 0x40b   : > { %v6645_v26 = vpop.f32.mrb[20].mxu1  ;;  %6759 = vmatprep.mubr.bf16.mxu0 %v4686_v47  ;;  %v4629_v25 = vadd.f32 %v9388_v37, %v4590_v55 }
 0x40c   : > { %v6827_v0 = vadd.f32 %v6645_v26, %v9276_v30  ;;  %v4013_v28 = vpop.f32.mrb[21].mxu1  ;;  %v4631_v2 = vadd.f32 %v9388_v37, %v4592_v60  ;;  %v4662_v13 = vmax.f32 %v4630_v45, 0.0 }
 0x40d   : > { %v6646_v49 = vpop.f32.mrb[22].mxu1  ;;  %v4661_v27 = vmax.f32 %v4629_v25, 0.0 }
 0x40e   : > { %v6828_v36 = vadd.f32 %v6827_v0, %v9351_v58  ;;  %v4015_v39 = vpop.f32.mrb[23].mxu1  ;;  %v4663_v62 = vmax.f32 %v4631_v2, 0.0 }
 0x40f   : > { %v6829_v15 = vadd.f32 %v4015_v39, %v9278_v1  ;;  %v4687_v52 = vpack.c.bf16 %v4661_v27, %v4660_v8 }
 0x410   : > { %v4594_v61 = vmul.f32 %v6828_v36, %v9381_v38  ;;  %v4688_v17 = vpack.c.bf16 %v4663_v62, %v4662_v13 }
 0x411   : > { %v6830_v33 = vadd.f32 %v6829_v15, %v9353_v19  ;;  %6760 = vmatmul.mubr.bf16.gmra.mrb[128].mxu0 %v4687_v52 }
 0x412   : > { %6763 = vmatprep.mubr.bf16.mxu0 %v4688_v17  ;;  %v4633_v32 = vadd.f32 %v9388_v37, %v4594_v61 }
 0x413   : > { %v4593_v30 = vmul.f32 %v6830_v33, %v9381_v38  ;;  %v6649_v50 = vpop.f32.mrb[24].mxu1 }
 0x414   : > { %v4027_v23 = vpop.f32.mrb[25].mxu1  ;;  %v4665_v40 = vmax.f32 %v4633_v32, 0.0 }
 0x415   : > { %v6831_v58 = vadd.f32 %v4027_v23, %v9282_v6  ;;  %v6650_v11 = vpop.f32.mrb[26].mxu1  ;;  %v4632_v41 = vadd.f32 %v9388_v37, %v4593_v30 }
 0x416   : > { %v6833_v1 = vadd.f32 %v6650_v11, %v9284_v20  ;;  %v4030_v31 = vpop.f32.mrb[27].mxu1 }
 0x417   : > { %v6832_v63 = vadd.f32 %v6831_v58, %v9355_v9  ;;  %v6835_v19 = vadd.f32 %v4030_v31, %v9286_v35  ;;  %v4664_v3 = vmax.f32 %v4632_v41, 0.0  ;;  %v10116_v41 = vld [vmem:[#allocation33_spill] sm:$0xff]  ;;  %v10117_v31 = vld [vmem:[#allocation19_spill] sm:$0xff] }
 0x418   : > { %v6834_v57 = vadd.f32 %v6833_v1, %v9357_v43 }
 0x419   : > { %v4595_v48 = vmul.f32 %v6832_v63, %v9381_v38  ;;  %v6836_v42 = vadd.f32 %v6835_v19, %v9359_v18  ;;  %v4689_v51 = vpack.c.bf16 %v4665_v40, %v4664_v3  ;;  %v10118_v3 = vld [vmem:[#allocation34_spill] sm:$0xff] }
 0x41a   : > { %v4597_v35 = vmul.f32 %v6834_v57, %v9381_v38 }
 0x41b   : > { %v4596_v6 = vmul.f32 %v6836_v42, %v9381_v38  ;;  %v6653_v5 = vpop.f32.mrb[28].mxu1  ;;  %6764 = vmatmul.mubr.bf16.gmra.mrb[132].mxu0 %v4689_v51  ;;  %v4634_v20 = vadd.f32 %v9388_v37, %v4595_v48  ;;  %v10119_v48 = vld [vmem:[#allocation38_spill] sm:$0xff] }
 0x41c   : > { %v6837_v29 = vadd.f32 %v6653_v5, %v9290_v14  ;;  %v4042_v9 = vpop.f32.mrb[29].mxu1 }
 0x41d   : > { %v6839_v24 = vadd.f32 %v4042_v9, %v9292_v4  ;;  %v6654_v56 = vpop.f32.mrb[30].mxu1  ;;  %v4635_v43 = vadd.f32 %v9388_v37, %v4596_v6  ;;  %v4666_v16 = vmax.f32 %v4634_v20, 0.0  ;;  %v4636_v4 = vadd.f32 %v9388_v37, %v4597_v35 }
 0x41e   : > { %v6838_v7 = vadd.f32 %v6837_v29, %v9361_v22  ;;  %v6841_v18 = vadd.f32 %v6654_v56, %v9294_v54  ;;  %v4045_v55 = vpop.f32.mrb[31].mxu1 }
 0x41f   : > { %v6840_v47 = vadd.f32 %v6839_v24, %v9363_v34  ;;  %v4667_v60 = vmax.f32 %v4635_v43, 0.0  ;;  %v10120_v24 = vld [vmem:[#allocation41_spill] sm:$0xff] }
 0x420   : > { %v4599_v45 = vmul.f32 %v6838_v7, %v9381_v38  ;;  %v6842_v14 = vadd.f32 %v6841_v18, %v9365_v21  ;;  %v4668_v21 = vmax.f32 %v4636_v4, 0.0  ;;  %v10121_v7 = vld [vmem:[#allocation28_spill] sm:$0xff] }
 0x421   : > { %v4598_v26 = vmul.f32 %v6840_v47, %v9381_v38  ;;  %v4690_v25 = vpack.c.bf16 %v4667_v60, %v4666_v16  ;;  %v10122_v16 = vld [vmem:[#allocation29_spill] sm:$0xff] }
 0x422   : > { %v4600_v0 = vmul.f32 %v6842_v14, %v9381_v38  ;;  %v4638_v22 = vadd.f32 %v9388_v37, %v4599_v45 }
 0x423   : > { %v6657_v28 = vpop.f32.mrb[32].mxu1  ;;  %6767 = vmatprep.mubr.bf16.mxu0 %v4690_v25  ;;  %v4637_v54 = vadd.f32 %v9388_v37, %v4598_v26 }
 0x424   : > { %v6843_v34 = vadd.f32 %v6657_v28, %v9298_v59  ;;  %v4057_v2 = vpop.f32.mrb[33].mxu1  ;;  %v4639_v49 = vadd.f32 %v9388_v37, %v4600_v0  ;;  %v4670_v13 = vmax.f32 %v4638_v22, 0.0 }
 0x425   : > { %v6658_v8 = vpop.f32.mrb[34].mxu1  ;;  %v4669_v27 = vmax.f32 %v4637_v54, 0.0 }
 0x426   : > { %v6844_v36 = vadd.f32 %v6843_v34, %v9367_v53  ;;  %v4059_v39 = vpop.f32.mrb[35].mxu1  ;;  %v4671_v62 = vmax.f32 %v4639_v49, 0.0  ;;  %v10123_v8 = vld [vmem:[#allocation25_spill] sm:$0xff] }
 0x427   : > { %v6845_v15 = vadd.f32 %v4059_v39, %v9300_v10  ;;  %v4691_v52 = vpack.c.bf16 %v4669_v27, %v4668_v21 }
 0x428   : > { %v4602_v61 = vmul.f32 %v6844_v36, %v9381_v38  ;;  %v4692_v17 = vpack.c.bf16 %v4671_v62, %v4670_v13 }
 0x429   : > { %v6846_v33 = vadd.f32 %v6845_v15, %v9369_v12  ;;  %6768 = vmatmul.mubr.bf16.gmra.mrb[136].mxu0 %v4691_v52  ;;  %v10124_v52 = vld [vmem:[#allocation23_spill] sm:$0xff] }
 0x42a   : > { %6771 = vmatprep.mubr.bf16.mxu0 %v4692_v17  ;;  %v4641_v50 = vadd.f32 %v9388_v37, %v4602_v61 }
 0x42b   : > { %v4601_v59 = vmul.f32 %v6846_v33, %v9381_v38  ;;  %v6661_v30 = vpop.f32.mrb[36].mxu1 }
 0x42c   : > { %v4071_v32 = vpop.f32.mrb[37].mxu1  ;;  %v4673_v19 = vmax.f32 %v4641_v50, 0.0 }
 0x42d   : > { %v6847_v53 = vadd.f32 %v4071_v32, %v9306_v44  ;;  %v6662_v23 = vpop.f32.mrb[38].mxu1  ;;  %v4640_v58 = vadd.f32 %v9388_v37, %v4601_v59 }
 0x42e   : > { %v6849_v10 = vadd.f32 %v6662_v23, %v9308_v46  ;;  %v4074_v11 = vpop.f32.mrb[39].mxu1  ;;  %v5745_v23 = vld [vmem:[%s7808_s9 + $0x8] sm:$0xff]  }
 0x42f   : > { %v6848_v1 = vadd.f32 %v6847_v53, %v10116_v41  ;;  %v6851_v12 = vadd.f32 %v4074_v11, %v10117_v31  ;;  %v4672_v63 = vmax.f32 %v4640_v58, 0.0  ;;  %v9508_v53 = vld [vmem:[%s9674_s8] ss:$0 sm:$0xff] }
 0x430   : > { %v6850_v40 = vadd.f32 %v6849_v10, %v10118_v3  ;;  %v5602_v58 = vld [vmem:[%s7808_s9] sm:$0xff]   ;;  %v5608_v3 = vunpack.c.h.bf16 %v5745_v23 }
 0x431   : > { %v4603_v57 = vmul.f32 %v6848_v1, %v9381_v38  ;;  %v6852_v42 = vadd.f32 %v6851_v12, %v10119_v48  ;;  %v4693_v51 = vpack.c.bf16 %v4673_v19, %v4672_v63  ;;  %v9515_v11 = vld [vmem:[%s10125_s19] ss:$0 sm:$0xff]  ;;  %v5603_v31 = vunpack.c.l.bf16 %v5602_v58 }
 0x432   : > { %v4605_v9 = vmul.f32 %v6850_v40, %v9381_v38 }
 0x433   : > { %v4604_v44 = vmul.f32 %v6852_v42, %v9381_v38  ;;  %6772 = vmatmul.mubr.bf16.gmra.mrb[140].mxu0 %v4693_v51  ;;  %v4642_v6 = vadd.f32 %v9388_v37, %v4603_v57  ;;  %v5604_v42 = vunpack.c.h.bf16 %v5602_v58 }
 0x434   : > { %v4644_v26 = vadd.f32 %v9388_v37, %v4605_v9 }
 0x435   : > { %v4643_v46 = vadd.f32 %v9388_v37, %v4604_v44  ;;  %v4674_v5 = vmax.f32 %v4642_v6, 0.0 }
 0x436   : > { %v4676_v34 = vmax.f32 %v4644_v26, 0.0 }
 0x437   : > { %v4675_v20 = vmax.f32 %v4643_v46, 0.0 }
 0x439   : > { %v4694_v29 = vpack.c.bf16 %v4675_v20, %v4674_v5 }
 0x43b   : > { %6775 = vmatprep.mubr.bf16.mxu0 %v4694_v29  ;;  %v5747_v29 = vld [vmem:[%s7808_s9 + $0x18] sm:$0xff]  }
 0x443   : > { %v6729_v35 = vpop.f32.mrb[40].mxu1 }
 0x444   : > { %v6853_v56 = vadd.f32 %v6729_v35, %v10120_v24  ;;  %v4512_v43 = vpop.f32.mrb[41].mxu1  ;;  %v5746_v24 = vld [vmem:[%s7808_s9 + $0x10] sm:$0xff]  }
 0x445   : > { %v6854_v18 = vadd.f32 %v4512_v43, %v10121_v7  ;;  %v6730_v55 = vpop.f32.mrb[42].mxu1 }
 0x446   : > { %v4607_v47 = vmul.f32 %v6853_v56, %v9381_v38  ;;  %v6855_v60 = vadd.f32 %v6730_v55, %v10122_v16  ;;  %v4515_v45 = vpop.f32.mrb[43].mxu1 }
 0x447   : > { %v4606_v14 = vmul.f32 %v6854_v18, %v9381_v38 }
 0x448   : > { %v4646_v25 = vadd.f32 %v9388_v37, %v4607_v47  ;;  %v4608_v4 = vmul.f32 %v6855_v60, %v9381_v38  ;;  %v5615_v47 = vunpack.c.l.bf16 %v5747_v29 }
 0x449   : > { %v4645_v0 = vadd.f32 %v9388_v37, %v4606_v14  ;;  %v5611_v14 = vunpack.c.l.bf16 %v5746_v24 }
 0x44a   : > { %v4647_v22 = vadd.f32 %v9388_v37, %v4608_v4  ;;  %v4678_v2 = vmax.f32 %v4646_v25, 0.0 }
 0x44b   : > { %v4677_v28 = vmax.f32 %v4645_v0, 0.0  ;;  %v6733_v54 = vpop.f32.mrb[44].mxu1  ;;  %v5616_v0 = vunpack.c.h.bf16 %v5747_v29 }
 0x44c   : > { %v4679_v49 = vmax.f32 %v4647_v22, 0.0  ;;  %v6856_v21 = vadd.f32 %v6733_v54, %v10123_v8  ;;  %v4527_v27 = vpop.f32.mrb[45].mxu1 }
 0x44d   : > { %v6734_v36 = vpop.f32.mrb[46].mxu1  ;;  %v4695_v39 = vpack.c.bf16 %v4677_v28, %v4676_v34  ;;  %v5612_v34 = vunpack.c.h.bf16 %v5746_v24 }
 0x44e   : > { %v4610_v13 = vmul.f32 %v6856_v21, %v9381_v38  ;;  %v4529_v62 = vpop.f32.mrb[47].mxu1  ;;  %v4696_v15 = vpack.c.bf16 %v4679_v49, %v4678_v2 }
 0x44f   : > { %v6857_v61 = vadd.f32 %v4529_v62, %v10124_v52  ;;  %6776 = vmatmul.mubr.bf16.gmra.mrb[144].mxu0 %v4695_v39 }
 0x450   : > { %6779 = vmatprep.mubr.bf16.mxu0 %v4696_v15  ;;  %v4649_v17 = vadd.f32 %v9388_v37, %v4610_v13 }
 0x451   : > { %v4609_v33 = vmul.f32 %v6857_v61, %v9381_v38 }
 0x452   : > { %v4681_v30 = vmax.f32 %v4649_v17, 0.0  ;;  %v5749_v17 = vld [vmem:[%s7808_s9 + $0x28] sm:$0xff]  }
 0x453   : > { %v4648_v59 = vadd.f32 %v9388_v37, %v4609_v33  ;;  %v5607_v37 = vunpack.c.l.bf16 %v5745_v23  ;;  %v5748_v33 = vld [vmem:[%s7808_s9 + $0x20] sm:$0xff]  }
 0x454   : > { %v5619_v58 = vunpack.c.l.bf16 %v5748_v33 }
 0x455   : > { %v4680_v50 = vmax.f32 %v4648_v59, 0.0 }
 0x457   : > { %v4697_v32 = vpack.c.bf16 %v4681_v30, %v4680_v50  ;;  %v5623_v50 = vunpack.c.l.bf16 %v5749_v17 }
 0x459   : > { %6780 = vmatmul.mubr.bf16.gmra.mrb[148].mxu0 %v4697_v32 }
 0x4cc   : > { %v6753_v10 = vpop.f32.mrb[120].mxu0 }
 0x4cd   : > { %v4932_v38 = vmul.f32 %v6753_v10, %v9508_v53  ;;  %v4796_v41 = vpop.f32.mrb[121].mxu0 }
 0x4ce   : > { %v4930_v1 = vmul.f32 %v9508_v53, %v4796_v41  ;;  %v6754_v12 = vpop.f32.mrb[122].mxu0  ;;  %v5624_v41 = vunpack.c.h.bf16 %v5749_v17 }
 0x4cf   : > { %v4971_v63 = vadd.f32 %v9515_v11, %v4932_v38  ;;  %v4933_v19 = vmul.f32 %v6754_v12, %v9508_v53  ;;  %v4799_v40 = vpop.f32.mrb[123].mxu0 }
 0x4d0   : > { %v4969_v57 = vadd.f32 %v9515_v11, %v4930_v1  ;;  %v4931_v48 = vmul.f32 %v9508_v53, %v4799_v40 }
 0x4d1   : > { %v5067_v51 = vadd.f32 %v5607_v37, %v4971_v63  ;;  %v4972_v44 = vadd.f32 %v9515_v11, %v4933_v19  ;;  %v5620_v63 = vunpack.c.h.bf16 %v5748_v33 }
 0x4d2   : > { %v5065_v6 = vadd.f32 %v5603_v31, %v4969_v57  ;;  %v4970_v46 = vadd.f32 %v9515_v11, %v4931_v48 }
 0x4d3   : > { %v5068_v5 = vadd.f32 %v5608_v3, %v4972_v44  ;;  %v5099_v9 = vmax.f32 %v5067_v51, 0.0  ;;  %v5751_v51 = vld [vmem:[%s7808_s9 + $0x38] sm:$0xff]  }
 0x4d4   : > { %v5066_v20 = vadd.f32 %v5604_v42, %v4970_v46  ;;  %v5097_v56 = vmax.f32 %v5065_v6, 0.0  ;;  %v5750_v46 = vld [vmem:[%s7808_s9 + $0x30] sm:$0xff]   ;;  %v5631_v24 = vunpack.c.l.bf16 %v5751_v51 }
 0x4d5   : > { %v5100_v35 = vmax.f32 %v5068_v5, 0.0 }
 0x4d6   : > { %v5098_v43 = vmax.f32 %v5066_v20, 0.0  ;;  %v6757_v7 = vpop.f32.mrb[124].mxu0 }
 0x4d7   : > { %v5673_v18 = vpack.c.bf16 %v5100_v35, %v5099_v9  ;;  %v4936_v55 = vmul.f32 %v6757_v7, %v9508_v53  ;;  %v4812_v16 = vpop.f32.mrb[125].mxu0 }
 0x4d8   : > { %v5668_v60 = vpack.c.bf16 %v5098_v43, %v5097_v56  ;;  %v4934_v45 = vmul.f32 %v9508_v53, %v4812_v16  ;;  %v6758_v26 = vpop.f32.mrb[126].mxu0 }
 0x4d9   : > { %5760 = vst [vmem:[%s9531_s21 + $0x8] sm:$0xff] %v5673_v18   ;;  %v4975_v25 = vadd.f32 %v9515_v11, %v4936_v55  ;;  %v4937_v4 = vmul.f32 %v6758_v26, %v9508_v53  ;;  %v4815_v22 = vpop.f32.mrb[127].mxu0  ;;  %v5627_v18 = vunpack.c.l.bf16 %v5750_v46 }
 0x4da   : > { %5669 = vst [vmem:[%s9531_s21] sm:$0xff] %v5668_v60   ;;  %v4973_v28 = vadd.f32 %v9515_v11, %v4934_v45  ;;  %v4935_v54 = vmul.f32 %v9508_v53, %v4815_v22  ;;  %v5632_v60 = vunpack.c.h.bf16 %v5751_v51 }
 0x4db   : > { %v5071_v2 = vadd.f32 %v5615_v47, %v4975_v25  ;;  %v4976_v49 = vadd.f32 %v9515_v11, %v4937_v4  ;;  %v5628_v25 = vunpack.c.h.bf16 %v5750_v46 }
 0x4dc   : > { %v5069_v8 = vadd.f32 %v5611_v14, %v4973_v28  ;;  %v4974_v21 = vadd.f32 %v9515_v11, %v4935_v54 }
 0x4dd   : > { %v5072_v27 = vadd.f32 %v5616_v0, %v4976_v49  ;;  %v5103_v39 = vmax.f32 %v5071_v2, 0.0 }
 0x4de   : > { %v5070_v36 = vadd.f32 %v5612_v34, %v4974_v21  ;;  %v5101_v62 = vmax.f32 %v5069_v8, 0.0 }
 0x4df   : > { %v5104_v13 = vmax.f32 %v5072_v27, 0.0 }
 0x4e0   : > { %v5102_v15 = vmax.f32 %v5070_v36, 0.0 }
 0x4e1   : > { %v5683_v52 = vpack.c.bf16 %v5104_v13, %v5103_v39  ;;  %v5753_v39 = vld [vmem:[%s7808_s9 + $0x48] sm:$0xff]   ;;  %v5752_v13 = vld [vmem:[%s7808_s9 + $0x40] sm:$0xff]  }
 0x4e2   : > { %v5678_v61 = vpack.c.bf16 %v5102_v15, %v5101_v62  ;;  %v5635_v33 = vunpack.c.l.bf16 %v5752_v13 }
 0x4e3   : > { %5762 = vst [vmem:[%s9531_s21 + $0x18] sm:$0xff] %v5683_v52   ;;  %v5639_v52 = vunpack.c.l.bf16 %v5753_v39 }
 0x4e4   : > { %5761 = vst [vmem:[%s9531_s21 + $0x10] sm:$0xff] %v5678_v61   ;;  %v6761_v59 = vpop.f32.mrb[128].mxu0 }
 0x4e5   : > { %v4940_v30 = vmul.f32 %v6761_v59, %v9508_v53  ;;  %v4828_v32 = vpop.f32.mrb[129].mxu0 }
 0x4e6   : > { %v4938_v23 = vmul.f32 %v9508_v53, %v4828_v32  ;;  %v6762_v10 = vpop.f32.mrb[130].mxu0  ;;  %v5640_v32 = vunpack.c.h.bf16 %v5753_v39 }
 0x4e7   : > { %v4979_v38 = vadd.f32 %v9515_v11, %v4940_v30  ;;  %v4941_v37 = vmul.f32 %v6762_v10, %v9508_v53  ;;  %v4831_v1 = vpop.f32.mrb[131].mxu0 }
 0x4e8   : > { %v4977_v31 = vadd.f32 %v9515_v11, %v4938_v23  ;;  %v4939_v12 = vmul.f32 %v9508_v53, %v4831_v1 }
 0x4e9   : > { %v5075_v19 = vadd.f32 %v5623_v50, %v4979_v38  ;;  %v4980_v3 = vadd.f32 %v9515_v11, %v4941_v37  ;;  %v5636_v38 = vunpack.c.h.bf16 %v5752_v13 }
 0x4ea   : > { %v5073_v40 = vadd.f32 %v5619_v58, %v4977_v31  ;;  %v4978_v57 = vadd.f32 %v9515_v11, %v4939_v12 }
 0x4eb   : > { %v5076_v48 = vadd.f32 %v5624_v41, %v4980_v3  ;;  %v5107_v44 = vmax.f32 %v5075_v19, 0.0  ;;  %v5755_v19 = vld [vmem:[%s7808_s9 + $0x58] sm:$0xff]  }
 0x4ec   : > { %v5074_v42 = vadd.f32 %v5620_v63, %v4978_v57  ;;  %v5105_v5 = vmax.f32 %v5073_v40, 0.0  ;;  %v5754_v57 = vld [vmem:[%s7808_s9 + $0x50] sm:$0xff]   ;;  %v5647_v46 = vunpack.c.l.bf16 %v5755_v19 }
 0x4ed   : > { %v5108_v6 = vmax.f32 %v5076_v48, 0.0 }
 0x4ee   : > { %v5106_v20 = vmax.f32 %v5074_v42, 0.0  ;;  %v6765_v29 = vpop.f32.mrb[132].mxu0 }
 0x4ef   : > { %v5693_v9 = vpack.c.bf16 %v5108_v6, %v5107_v44  ;;  %v4944_v35 = vmul.f32 %v6765_v29, %v9508_v53  ;;  %v4844_v56 = vpop.f32.mrb[133].mxu0 }
 0x4f0   : > { %v5688_v43 = vpack.c.bf16 %v5106_v20, %v5105_v5  ;;  %v4942_v7 = vmul.f32 %v9508_v53, %v4844_v56  ;;  %v6766_v55 = vpop.f32.mrb[134].mxu0 }
 0x4f1   : > { %5764 = vst [vmem:[%s9531_s21 + $0x28] sm:$0xff] %v5693_v9   ;;  %v4983_v47 = vadd.f32 %v9515_v11, %v4944_v35  ;;  %v4945_v16 = vmul.f32 %v6766_v55, %v9508_v53  ;;  %v4847_v45 = vpop.f32.mrb[135].mxu0  ;;  %v5643_v9 = vunpack.c.l.bf16 %v5754_v57 }
 0x4f2   : > { %5763 = vst [vmem:[%s9531_s21 + $0x20] sm:$0xff] %v5688_v43   ;;  %v4981_v14 = vadd.f32 %v9515_v11, %v4942_v7  ;;  %v4943_v26 = vmul.f32 %v9508_v53, %v4847_v45  ;;  %v5648_v43 = vunpack.c.h.bf16 %v5755_v19 }
 0x4f3   : > { %v5079_v4 = vadd.f32 %v5631_v24, %v4983_v47  ;;  %v4984_v0 = vadd.f32 %v9515_v11, %v4945_v16  ;;  %v5644_v47 = vunpack.c.h.bf16 %v5754_v57 }
 0x4f4   : > { %v5077_v22 = vadd.f32 %v5627_v18, %v4981_v14  ;;  %v4982_v28 = vadd.f32 %v9515_v11, %v4943_v26 }
 0x4f5   : > { %v5080_v54 = vadd.f32 %v5632_v60, %v4984_v0  ;;  %v5111_v2 = vmax.f32 %v5079_v4, 0.0 }
 0x4f6   : > { %v5078_v34 = vadd.f32 %v5628_v25, %v4982_v28  ;;  %v5109_v8 = vmax.f32 %v5077_v22, 0.0 }
 0x4f7   : > { %v5112_v49 = vmax.f32 %v5080_v54, 0.0 }
 0x4f8   : > { %v5110_v21 = vmax.f32 %v5078_v34, 0.0 }
 0x4f9   : > { %v5703_v27 = vpack.c.bf16 %v5112_v49, %v5111_v2  ;;  %v5757_v2 = vld [vmem:[%s7808_s9 + $0x68] sm:$0xff]   ;;  %v5756_v49 = vld [vmem:[%s7808_s9 + $0x60] sm:$0xff]  }
 0x4fa   : > { %v5698_v36 = vpack.c.bf16 %v5110_v21, %v5109_v8  ;;  %v5651_v13 = vunpack.c.l.bf16 %v5756_v49 }
 0x4fb   : > { %5766 = vst [vmem:[%s9531_s21 + $0x38] sm:$0xff] %v5703_v27   ;;  %v5655_v27 = vunpack.c.l.bf16 %v5757_v2 }
 0x4fc   : > { %5765 = vst [vmem:[%s9531_s21 + $0x30] sm:$0xff] %v5698_v36   ;;  %v6769_v62 = vpop.f32.mrb[136].mxu0 }
 0x4fd   : > { %v4948_v15 = vmul.f32 %v6769_v62, %v9508_v53  ;;  %v4860_v61 = vpop.f32.mrb[137].mxu0 }
 0x4fe   : > { %v4946_v17 = vmul.f32 %v9508_v53, %v4860_v61  ;;  %v6770_v59 = vpop.f32.mrb[138].mxu0  ;;  %v5656_v61 = vunpack.c.h.bf16 %v5757_v2 }
 0x4ff   : > { %v4987_v30 = vadd.f32 %v9515_v11, %v4948_v15  ;;  %v4949_v50 = vmul.f32 %v6770_v59, %v9508_v53  ;;  %v4863_v23 = vpop.f32.mrb[139].mxu0 }
 0x500   : > { %v4985_v58 = vadd.f32 %v9515_v11, %v4946_v17  ;;  %v4947_v10 = vmul.f32 %v9508_v53, %v4863_v23 }
 0x501   : > { %v5083_v37 = vadd.f32 %v5639_v52, %v4987_v30  ;;  %v4988_v41 = vadd.f32 %v9515_v11, %v4949_v50  ;;  %v5652_v30 = vunpack.c.h.bf16 %v5756_v49 }
 0x502   : > { %v5081_v1 = vadd.f32 %v5635_v33, %v4985_v58  ;;  %v4986_v31 = vadd.f32 %v9515_v11, %v4947_v10 }
 0x503   : > { %v5084_v12 = vadd.f32 %v5640_v32, %v4988_v41  ;;  %v5115_v3 = vmax.f32 %v5083_v37, 0.0  ;;  %v5759_v37 = vld [vmem:[%s7808_s9 + $0x78] sm:$0xff]  }
 0x504   : > { %v5082_v63 = vadd.f32 %v5636_v38, %v4986_v31  ;;  %v5113_v48 = vmax.f32 %v5081_v1, 0.0  ;;  %v5758_v31 = vld [vmem:[%s7808_s9 + $0x70] sm:$0xff]   ;;  %v5663_v57 = vunpack.c.l.bf16 %v5759_v37  ;;  %s5303_s9 = sshll.u32 %s9531_s21, 4  ;;  %s9620_s9 = int_to_ptr.vmem [resolvable:$true] %s5303_s9 }
 0x505   : > { %v5116_v40 = vmax.f32 %v5084_v12, 0.0  ;;  %s7455_s24 = scalar_lea.vmem %s9620_s9, 2048  ;;  %p7462_p12 = scmp.lt.s32.totalorder %s9620_s9, %s7460_s18 }
 0x506   : > { %v5114_v42 = vmax.f32 %v5082_v63, 0.0  ;;  %v6773_v51 = vpop.f32.mrb[140].mxu0  ;;  %p7456_p10 = scmp.ne.s32.totalorder %s9620_s9, %s7455_s24  ;;  %p7463_p1 = scmp.lt.s32.totalorder %s7461_s28, %s7455_s24 }
 0x507   : > { %v5713_v44 = vpack.c.bf16 %v5116_v40, %v5115_v3  ;;  %v4952_v6 = vmul.f32 %v6773_v51, %v9508_v53  ;;  %v4876_v5 = vpop.f32.mrb[141].mxu0 }
 0x508   : > { %v5708_v20 = vpack.c.bf16 %v5114_v42, %v5113_v48  ;;  %v4950_v29 = vmul.f32 %v9508_v53, %v4876_v5  ;;  %v6774_v35 = vpop.f32.mrb[142].mxu0  ;;  %p7457_p3 = pnand %p7456_p10, %p7751_p5  ;;  %p7464_p2 = por %p7463_p1, %p7462_p12 }
 0x509   : > { %5768 = vst [vmem:[%s9531_s21 + $0x48] sm:$0xff] %v5713_v44   ;;  %v4991_v24 = vadd.f32 %v9515_v11, %v4952_v6  ;;  %v4953_v56 = vmul.f32 %v6774_v35, %v9508_v53  ;;  %v4879_v7 = vpop.f32.mrb[143].mxu0  ;;  %v5659_v44 = vunpack.c.l.bf16 %v5758_v31 }
 0x50a   : > { %5767 = vst [vmem:[%s9531_s21 + $0x40] sm:$0xff] %v5708_v20   ;;  %v4989_v18 = vadd.f32 %v9515_v11, %v4950_v29  ;;  %v4951_v55 = vmul.f32 %v9508_v53, %v4879_v7  ;;  %v5664_v20 = vunpack.c.h.bf16 %v5759_v37  ;;  %p7458_p7 = pneg %p7457_p3 }
 0x50b   : > { %v5087_v16 = vadd.f32 %v5647_v46, %v4991_v24  ;;  %v4992_v60 = vadd.f32 %v9515_v11, %v4953_v56  ;;  %v5660_v24 = vunpack.c.h.bf16 %v5758_v31 }
 0x50c   : > { %v5085_v45 = vadd.f32 %v5643_v9, %v4989_v18  ;;  %v4990_v14 = vadd.f32 %v9515_v11, %v4951_v55  ;;  %p7465_p4 = pnand %p7464_p2, %p7458_p7 }
 0x50d   : > { %v5088_v26 = vadd.f32 %v5648_v43, %v4992_v60  ;;  %v5119_v4 = vmax.f32 %v5087_v16, 0.0 }
 0x50e   : > { %v5086_v25 = vadd.f32 %v5644_v47, %v4990_v14  ;;  %v5117_v22 = vmax.f32 %v5085_v45, 0.0 }
 0x50f   : > { %v5120_v0 = vmax.f32 %v5088_v26, 0.0 }
 0x510   : > { %v5118_v28 = vmax.f32 %v5086_v25, 0.0 }
 0x511   : > { %v5723_v54 = vpack.c.bf16 %v5120_v0, %v5119_v4 }
 0x512   : > { %v5718_v34 = vpack.c.bf16 %v5118_v28, %v5117_v22 }
 0x513   : > { %5770 = vst [vmem:[%s9531_s21 + $0x58] sm:$0xff] %v5723_v54  }
 0x514   : > { %5769 = vst [vmem:[%s9531_s21 + $0x50] sm:$0xff] %v5718_v34  }
 0x522   : > { %v6777_v8 = vpop.f32.mrb[144].mxu0 }
 0x523   : > { %v4956_v21 = vmul.f32 %v6777_v8, %v9508_v53  ;;  %v4892_v36 = vpop.f32.mrb[145].mxu0 }
 0x524   : > { %v4954_v39 = vmul.f32 %v9508_v53, %v4892_v36  ;;  %v6778_v62 = vpop.f32.mrb[146].mxu0 }
 0x525   : > { %v4995_v15 = vadd.f32 %v9515_v11, %v4956_v21  ;;  %v4957_v52 = vmul.f32 %v6778_v62, %v9508_v53  ;;  %v4895_v17 = vpop.f32.mrb[147].mxu0 }
 0x526   : > { %v4993_v33 = vadd.f32 %v9515_v11, %v4954_v39  ;;  %v4955_v59 = vmul.f32 %v9508_v53, %v4895_v17 }
 0x527   : > { %v5091_v50 = vadd.f32 %v5655_v27, %v4995_v15  ;;  %v4996_v32 = vadd.f32 %v9515_v11, %v4957_v52 }
 0x528   : > { %v5089_v23 = vadd.f32 %v5651_v13, %v4993_v33  ;;  %v4994_v58 = vadd.f32 %v9515_v11, %v4955_v59 }
 0x529   : > { %v5092_v10 = vadd.f32 %v5656_v61, %v4996_v32  ;;  %v5123_v41 = vmax.f32 %v5091_v50, 0.0 }
 0x52a   : > { %v5090_v38 = vadd.f32 %v5652_v30, %v4994_v58  ;;  %v5121_v12 = vmax.f32 %v5089_v23, 0.0 }
 0x52b   : > { %v5124_v1 = vmax.f32 %v5092_v10, 0.0 }
 0x52c   : > { %v5122_v63 = vmax.f32 %v5090_v38, 0.0  ;;  %v6781_v19 = vpop.f32.mrb[148].mxu0 }
 0x52d   : > { %v5733_v3 = vpack.c.bf16 %v5124_v1, %v5123_v41  ;;  %v4960_v40 = vmul.f32 %v6781_v19, %v9508_v53  ;;  %v4908_v48 = vpop.f32.mrb[149].mxu0 }
 0x52e   : > { %v5728_v42 = vpack.c.bf16 %v5122_v63, %v5121_v12  ;;  %v4958_v51 = vmul.f32 %v9508_v53, %v4908_v48  ;;  %v6782_v6 = vpop.f32.mrb[150].mxu0 }
 0x52f   : > { %5772 = vst [vmem:[%s9531_s21 + $0x68] sm:$0xff] %v5733_v3   ;;  %v4999_v46 = vadd.f32 %v9515_v11, %v4960_v40  ;;  %v4961_v5 = vmul.f32 %v6782_v6, %v9508_v53  ;;  %v4911_v29 = vpop.f32.mrb[151].mxu0 }
 0x530   : > { %5771 = vst [vmem:[%s9531_s21 + $0x60] sm:$0xff] %v5728_v42   ;;  %v4997_v9 = vadd.f32 %v9515_v11, %v4958_v51  ;;  %v4959_v35 = vmul.f32 %v9508_v53, %v4911_v29 }
 0x531   : > { %v5095_v56 = vadd.f32 %v5663_v57, %v4999_v46  ;;  %v5000_v43 = vadd.f32 %v9515_v11, %v4961_v5 }
 0x532   : > { %v5093_v7 = vadd.f32 %v5659_v44, %v4997_v9  ;;  %v4998_v18 = vadd.f32 %v9515_v11, %v4959_v35 }
 0x533   : > { %v5096_v55 = vadd.f32 %v5664_v20, %v5000_v43  ;;  %v5127_v16 = vmax.f32 %v5095_v56, 0.0 }
 0x534   : > { %v5094_v47 = vadd.f32 %v5660_v24, %v4998_v18  ;;  %v5125_v45 = vmax.f32 %v5093_v7, 0.0 }
 0x535   : > { %v5128_v60 = vmax.f32 %v5096_v55, 0.0 }
 0x536   : > { %v5126_v14 = vmax.f32 %v5094_v47, 0.0 }
 0x537   : > { %v5743_v53 = vpack.c.bf16 %v5128_v60, %v5127_v16 }
 0x538   : > { %v5738_v11 = vpack.c.bf16 %v5126_v14, %v5125_v45 }
 0x539   : > { %5774 = vst [vmem:[%s9531_s21 + $0x78] sm:$0xff] %v5743_v53  }
 0x53a   : > { %5773 = vst [vmem:[%s9531_s21 + $0x70] sm:$0xff] %v5738_v11  }
 0x53b   : > { %7468 = shalt.err (!%p7465_p4)
}
 0x53c   : > { %s7469_s27 = scalar_lea.hbm %s9618_s26, 2048  ;;  %s7473_s21 = scalar_lea.hbm %s10126_s29, 4096 }
 0x53d   : > { %p7470_p9 = scmp.ne.s32.totalorder %s9618_s26, %s7469_s27  ;;  %p7474_p8 = scmp.lt.u32.totalorder %s9618_s26, %s10126_s29 }
 0x53e   : > { %p7475_p13 = scmp.lt.u32.totalorder %s7473_s21, %s7469_s27  ;;  %p7477_p10 = scmp.lt.u32.totalorder %s7469_s27, %s9618_s26 }
 0x53f   : > { %p7471_p0 = pnand %p7470_p9, %p7751_p5 }
 0x540   : > { %p7476_p6 = por %p7475_p13, %p7474_p8 }
 0x541   : > { %p7472_p11 = pneg %p7471_p0 }
 0x542   : > { %p7478_p3 = por %p7477_p10, %p7476_p6 }
 0x544   : > { %p7479_p7 = pnand %p7478_p3, %p7472_p11 }
 0x546   : > { %7482 = shalt.err (!%p7479_p7)
}
 0x547   : > { %s7540_s11 = smov 64   ;;  %s7541_s24 = smov 4  }
 0x548   : > { %7168 = dma.vmem_to_hbm [thread:$0]  (%p7751_p5), %s9620_s9, 2048, %s9618_s26, %s5290_s17, %s7540_s11, %s7540_s11, %s7541_s24  }
 0x549 PF: > { %s10127_s12 = sld [smem:[#allocation16_spill]]  ;;  %s10128_s18 = sld [smem:[#allocation17_spill]] }
 0x54a   : > { %p10130_p1 = scmp.ge.s32.totalorder %s7529_s16, 2 }
 0x54f   : > { %s5318_s28 = sand.u32 1, %s10127_s12   ;;  %p10129_p12 = scmp.ne.s32.totalorder %s10128_s18, 0 }
 0x550   : > { %s5319_s27 = scalar_lea.sflag [#allocation5], %s5318_s28 }
 0x551   : > { %p7185_p2 = pnand %p10130_p1, %p10129_p12 }
 0x553   : > { %7512 = dma.done.wait (!%p7185_p2), %s5319_s27, 2048  }
 0x554   : > { %7514 = vsyncadd (!%p7185_p2), %s5319_s27, 4294965248  ;;  %s10131_s23 = smov %s7747_s13  ;;  %p25_p4 = scmp.ge.s32.totalorder %s7737_s22, 4  }
 0x555   : > { %s10132_s13 = smov %s7521_s14  ;;  %s10133_s14 = smov %s7525_s15 }
 0x556   : > { %s10134_s15 = smov %s10131_s23  ;;  %s10135_s16 = smov %s7737_s22 }
 0x557   :  { %27 = sbr.rel (!%p25_p4) target bundleno = 10 (0xa), region = 128 }
 0x55e   :  { %5324 = vsyncpa [#allocation4], 1 }
 0x55f   :  { %5326 = vsyncpa [#allocation4 + $0x1], 1 }
 0x560   :  { %5327 = vsyncpa [#allocation7], 1 }
 0x561   :  { %5328 = vsyncpa [#allocation10], 1 }
 0x562   :  { %5329 = vsyncpa [#allocation5], 1 }
 0x563   :  { %5331 = vsyncpa [#allocation5 + $0x1], 1 }

</bundles_post_ra>
